<compile_context>
chip_gen: v6e
topology: v6e:2x2x1
jax: 0.10.0
libtpu: 0.0.40
codegen_flags: <defaults>
</compile_context>

<pallas_src>
import jax
import jax.numpy as jnp
from jax.experimental import pallas as pl
from jax.experimental.pallas import tpu as pltpu


def _round_up(v, m):
    return ((v + m - 1) // m) * m


def _vmem_capacity_bytes():
    """Physical VMEM (falls back to a conservative 64 MiB, the v7x per-TC size)."""
    try:
        return int(pltpu.get_tpu_info().vmem_capacity_bytes)
    except Exception:
        return 64 * 1024 * 1024


def _stable_sigmoid(z):
    """Numerically stable sigmoid whose transcendentals (exp + approximate reciprocal)
    both land in the EUP slot instead of a VPU Newton-iteration divide."""
    e = jnp.exp(-jnp.abs(z))
    r = pl.reciprocal(1.0 + e, approx=True)
    return jnp.where(z >= 0.0, r, e * r)


def _make_stsgcm_kernel(num_layers, n_pad, btile, layer_cins, cout_pad,
                        activation, fc_first, compute_dtype):
    """Fused STSGCM over one batch block of `btile` samples.

    Layout: node dim on sublanes, batch*channels (slot-major) on lanes.
      x slab: (2*n_pad, btile*Cin)     adj: (2*n_pad, 2*n_pad)
    Per layer: one wide aggregation matmul + `btile` dense lane-aligned FC matmuls
    (or the reverse order when the FC narrows the slab), GLU/relu, running max of
    the lower vertex half.
    """
    two_n = 2 * n_pad

    def kernel(adj_ref, x_ref, *refs):
        out_ref = refs[-1]
        prm = refs[:-1]
        adj = adj_ref[...]                            # (2N, 2N)
        x = x_ref[...]                                # (2N, btile*Cin0)
        acc = None
        for l in range(num_layers):
            cin_l = layer_cins[l]
            if activation == 'GLU':
                wb = [(prm[4 * l][...], prm[4 * l + 1][...]),
                      (prm[4 * l + 2][...], prm[4 * l + 3][...])]
            else:
                wb = [(prm[2 * l][...], prm[2 * l + 1][...])]

            zs = []
            if fc_first[l]:
                # FC first: A @ (X @ W) == (A @ X) @ W; cheaper when Cout(total) < Cin.
                for (w, b) in wb:
                    parts = [jnp.dot(x[:, s * cin_l:(s + 1) * cin_l], w,
                                     preferred_element_type=jnp.float32)
                             for s in range(btile)]
                    t = jnp.concatenate(parts, axis=-1).astype(compute_dtype)
                    zs.append(jnp.dot(adj, t,
                                      preferred_element_type=jnp.float32) + b)
            else:
                # Aggregation first: one wide matmul feeding the MXU's N dimension.
                y = jnp.dot(adj, x, preferred_element_type=jnp.float32)
                y = y.astype(compute_dtype)
                for (w, b) in wb:
                    parts = [jnp.dot(y[:, s * cin_l:(s + 1) * cin_l], w,
                                     preferred_element_type=jnp.float32)
                             for s in range(btile)]
                    zs.append(jnp.concatenate(parts, axis=-1) + b)

            if activation == 'GLU':
                h = zs[0] * _stable_sigmoid(zs[1])    # f32 on VPU + EUP
            else:
                h = jnp.maximum(zs[0], 0.0)

            sl = h[n_pad:two_n, :]                    # lower vertex half (8-aligned)
            acc = sl if acc is None else jnp.maximum(acc, sl)
            x = h.astype(compute_dtype)               # next layer's MXU operand
        out_ref[...] = acc.astype(out_ref.dtype)      # lane-dense (n_pad, btile*Cout)

    return kernel


def stsgcm_forward(adj, x, params, num_vertices, out_dims, mask=None,
                   activation='GLU', batch_block=None,
                   compute_dtype=jnp.bfloat16, out_dtype=jnp.bfloat16):
    """
    adj:    (2N, 2N) float32 adjacency
    x:      (2N, B, Cin) float32
    params: list of (w, b) per layer; w: (Cin_l, 2*Cout) for GLU, (Cin_l, Cout) for relu
    returns (N, B, Cout) float32
    """
    assert activation in ('GLU', 'relu')
    num_layers = len(out_dims)
    assert len(params) == num_layers
    out_dim = out_dims[0]
    assert all(d == out_dim for d in out_dims), \
        "torch.max over stacked layer outputs requires equal out_dims"

    two_n, batch, in_dim = x.shape
    assert two_n == 2 * num_vertices

    # Padded geometry: vertices -> multiples of 8 (sublane-aligned h[N:2N] slice),
    # channels -> multiples of 128 (aligned lane slices, unmasked full-width stores).
    n_pad = _round_up(num_vertices, 8)
    two_n_pad = 2 * n_pad
    cin_pad = _round_up(in_dim, 128)
    cout_pad = _round_up(out_dim, 128)
    cout_total = cout_pad * (2 if activation == 'GLU' else 1)
    layer_cins = tuple([cin_pad] + [cout_pad] * (num_layers - 1))
    fc_first = tuple(cout_total < c for c in layer_cins)

    # --- adjacency: fold mask once, pad each vertex half, cast for the MXU ---
    adj = jnp.asarray(adj, jnp.float32)
    if mask is not None:
        adj = adj * jnp.asarray(mask, jnp.float32)
    if n_pad != num_vertices:
        n = num_vertices
        adj_p = jnp.zeros((two_n_pad, two_n_pad), jnp.float32)
        for ro, rs in ((0, 0), (n_pad, n)):
            for co, cs in ((0, 0), (n_pad, n)):
                adj_p = adj_p.at[ro:ro + n, co:co + n].set(adj[rs:rs + n, cs:cs + n])
        adj = adj_p
    adj_c = adj.astype(compute_dtype)

    # --- input: pad, then lane-fuse the batch (slot-major: lane = b*Cin + c) ---
    x = jnp.asarray(x, jnp.float32)
    x_p = jnp.zeros((two_n_pad, batch, cin_pad), jnp.float32)
    x_p = x_p.at[:num_vertices, :, :in_dim].set(x[:num_vertices])
    x_p = x_p.at[n_pad:n_pad + num_vertices, :, :in_dim].set(x[num_vertices:two_n])
    x_flat = x_p.reshape(two_n_pad, batch * cin_pad).astype(compute_dtype)

    # --- pick the batch block from the real per-generation VMEM budget ---
    vmem_cap = _vmem_capacity_bytes()
    vmem_usable = min(int(vmem_cap * 0.85), 112 * 1024 * 1024)
    out_isz = jnp.dtype(out_dtype).itemsize
    cdt_isz = jnp.dtype(compute_dtype).itemsize
    lane_unit = max(max(layer_cins), cout_total)

    def _vmem_need(bt):
        resident = two_n_pad * two_n_pad * cdt_isz            # adj (single-buffered)
        for c in layer_cins:
            resident += c * cout_total * cdt_isz              # weights (single-buffered)
            resident += bt * cout_total * 4                   # tiled f32 biases
        streamed = 2 * two_n_pad * bt * cin_pad * cdt_isz     # x block (double-buffered)
        streamed += 2 * n_pad * bt * cout_pad * out_isz       # out block (double-buffered)
        live = 4 * two_n_pad * bt * lane_unit * 4             # in-flight f32 slabs
        return resident + streamed + live

    if batch_block is None:
        divisors = [d for d in range(1, batch + 1) if batch % d == 0]
        feasible = [d for d in divisors
                    if _vmem_need(d) <= vmem_usable and d * lane_unit <= 4096]
        if not feasible:
            feasible = [1]
        # Prefer an even grid (both v7x TensorCores busy), then the widest lane slab.
        even_grid = [d for d in feasible if (batch // d) % 2 == 0]
        batch_block = max(even_grid) if even_grid else max(feasible)
    assert batch % batch_block == 0
    btile = batch_block
    nb = batch // btile
    vmem_bytes = int(min(vmem_usable, max(_vmem_need(btile) + (8 << 20), 32 << 20)))

    # --- per-layer weights: original (un-kron'd) matrices, zero-padded; GLU halves
    #     pre-split; biases pre-tiled to the slot-major lane layout (f32) ---
    flat_params = []
    for l, (w, b) in enumerate(params):
        w = jnp.asarray(w, jnp.float32)
        b = jnp.asarray(b, jnp.float32)
        cin_l_true = w.shape[0]
        if activation == 'GLU':
            halves = [(w[:, :out_dim], b[:out_dim]), (w[:, out_dim:], b[out_dim:])]
        else:
            halves = [(w, b)]
        for wh, bh in halves:
            w_p = jnp.zeros((layer_cins[l], cout_pad), jnp.float32)
            w_p = w_p.at[:cin_l_true, :out_dim].set(wh)
            b_p = jnp.zeros((cout_pad,), jnp.float32).at[:out_dim].set(bh)
            flat_params.append(w_p.astype(compute_dtype))
            flat_params.append(jnp.tile(b_p, btile).reshape(1, btile * cout_pad))

    kernel = _make_stsgcm_kernel(num_layers, n_pad, btile, layer_cins, cout_pad,
                                 activation, fc_first, compute_dtype)
    out_shape = jax.ShapeDtypeStruct((n_pad, batch * cout_pad), out_dtype)

    def _call(single_buffer_consts):
        def rep_spec(a):
            # Replicated operands are fetched once; single-buffering them halves
            # their resident VMEM (matters most on v7x's 64 MiB per TensorCore).
            if single_buffer_consts:
                return pl.BlockSpec(a.shape, lambda g: (0, 0),
                                    pipeline_mode=pl.Buffered(1))
            return pl.BlockSpec(a.shape, lambda g: (0, 0))

        in_specs = [rep_spec(adj_c),
                    pl.BlockSpec((two_n_pad, btile * cin_pad), lambda g: (0, g))]
        in_specs += [rep_spec(a) for a in flat_params]
        out_specs = pl.BlockSpec((n_pad, btile * cout_pad), lambda g: (0, g))
        return pl.pallas_call(
            kernel,
            grid=(nb,),
            in_specs=in_specs,
            out_specs=out_specs,
            out_shape=out_shape,
            compiler_params=pltpu.CompilerParams(
                dimension_semantics=("parallel",),
                vmem_limit_bytes=vmem_bytes),
        )(adj_c, x_flat, *flat_params)

    try:
        out_flat = _call(True)
    except Exception:
        out_flat = _call(False)   # fall back to default buffering if Buffered(1) rejected

    out = out_flat.reshape(n_pad, batch, cout_pad)[:num_vertices, :, :out_dim]
    return out.astype(jnp.float32)


def stsgcm_reference(adj, x, params, num_vertices, out_dims, mask=None,
                     activation='GLU'):
    """Pure-JAX f32 reference mirroring the PyTorch forward."""
    adj = jnp.asarray(adj, jnp.float32)
    if mask is not None:
        adj = adj * jnp.asarray(mask, jnp.float32)
    x = jnp.asarray(x, jnp.float32)
    concat = []
    for (w, b) in params:
        w = jnp.asarray(w, jnp.float32)
        b = jnp.asarray(b, jnp.float32)
        x = jnp.einsum('nm,mbc->nbc', adj, x)
        z = jnp.einsum('nbc,cd->nbd', x, w) + b
        if activation == 'GLU':
            c = w.shape[1] // 2
            x = z[..., :c] * jax.nn.sigmoid(z[..., c:])
        else:
            x = jax.nn.relu(z)
        concat.append(x[num_vertices:2 * num_vertices])
    return jnp.max(jnp.stack(concat, axis=0), axis=0)


if __name__ == "__main__":
    def _run_case(N, B, in_dim, out_dims, activation, key):
        k_adj, k_x, *kp = jax.random.split(key, 2 + 2 * len(out_dims))
        adj = jax.random.normal(k_adj, (2 * N, 2 * N), dtype=jnp.float32) * 0.2
        x = jax.random.normal(k_x, (2 * N, B, in_dim), dtype=jnp.float32)
        params = []
        prev = in_dim
        for i, c in enumerate(out_dims):
            width = 2 * c if activation == 'GLU' else c
            w = jax.random.normal(kp[2 * i], (prev, width), dtype=jnp.float32) * 0.1
            b = jax.random.normal(kp[2 * i + 1], (width,), dtype=jnp.float32) * 0.1
            params.append((w, b))
            prev = c
        out = jax.block_until_ready(
            stsgcm_forward(adj, x, params, num_vertices=N, out_dims=out_dims,
                           activation=activation))
        ref = jax.block_until_ready(
            stsgcm_reference(adj, x, params, num_vertices=N, out_dims=out_dims,
                             activation=activation))
        assert out.shape == (N, B, out_dims[-1]), out.shape
        if not jnp.allclose(out, ref, rtol=2e-2, atol=2e-2):
            err = float(jnp.max(jnp.abs(out - ref)))
            raise RuntimeError(f"{activation}: kernel does not match reference "
                               f"(max abs err={err})")

    key = jax.random.PRNGKey(0)
    k1, k2 = jax.random.split(key)
    # GLU (module default): N=8, B=8, Cin=Cout=128, 3 layers -> btile=4, grid of 2.
    _run_case(N=8, B=8, in_dim=128, out_dims=[128, 128, 128], activation='GLU', key=k1)
    # relu: exercises vertex padding (N=12 -> 16) and the FC-first reorder (128 < 256).
    _run_case(N=12, B=4, in_dim=256, out_dims=[128, 128], activation='relu', key=k2)
    print("KERNEL_OK")
</pallas_src>

<mosaic_0001>
module attributes {stable_mosaic.version = 11 : i64} {
  func.func @kernel(%arg0: i32, %arg1: memref<16x16xbf16, #tpu.memory_space<vmem>>, %arg2: memref<16x512xbf16, #tpu.memory_space<vmem>>, %arg3: memref<128x128xbf16, #tpu.memory_space<vmem>>, %arg4: memref<1x512xf32, #tpu.memory_space<vmem>>, %arg5: memref<128x128xbf16, #tpu.memory_space<vmem>>, %arg6: memref<1x512xf32, #tpu.memory_space<vmem>>, %arg7: memref<128x128xbf16, #tpu.memory_space<vmem>>, %arg8: memref<1x512xf32, #tpu.memory_space<vmem>>, %arg9: memref<128x128xbf16, #tpu.memory_space<vmem>>, %arg10: memref<1x512xf32, #tpu.memory_space<vmem>>, %arg11: memref<128x128xbf16, #tpu.memory_space<vmem>>, %arg12: memref<1x512xf32, #tpu.memory_space<vmem>>, %arg13: memref<128x128xbf16, #tpu.memory_space<vmem>>, %arg14: memref<1x512xf32, #tpu.memory_space<vmem>>, %arg15: memref<8x512xbf16, #tpu.memory_space<vmem>>) attributes {dimension_semantics = [#tpu.dimension_semantics<parallel>], iteration_bounds = array<i64: 2>, scalar_prefetch = 0 : i64, scratch_operands = 0 : i64, tpu.core_type = #tpu.core_type<tc>, window_params = [{pipeline_mode = #tpu.pipeline_mode<synchronous>, transform_indices = @transform_0, window_bounds = array<i64: 16, 16>}, {transform_indices = @transform_1, window_bounds = array<i64: 16, 512>}, {pipeline_mode = #tpu.pipeline_mode<synchronous>, transform_indices = @transform_2, window_bounds = array<i64: 128, 128>}, {pipeline_mode = #tpu.pipeline_mode<synchronous>, transform_indices = @transform_3, window_bounds = array<i64: 1, 512>}, {pipeline_mode = #tpu.pipeline_mode<synchronous>, transform_indices = @transform_4, window_bounds = array<i64: 128, 128>}, {pipeline_mode = #tpu.pipeline_mode<synchronous>, transform_indices = @transform_5, window_bounds = array<i64: 1, 512>}, {pipeline_mode = #tpu.pipeline_mode<synchronous>, transform_indices = @transform_6, window_bounds = array<i64: 128, 128>}, {pipeline_mode = #tpu.pipeline_mode<synchronous>, transform_indices = @transform_7, window_bounds = array<i64: 1, 512>}, {pipeline_mode = #tpu.pipeline_mode<synchronous>, transform_indices = @transform_8, window_bounds = array<i64: 128, 128>}, {pipeline_mode = #tpu.pipeline_mode<synchronous>, transform_indices = @transform_9, window_bounds = array<i64: 1, 512>}, {pipeline_mode = #tpu.pipeline_mode<synchronous>, transform_indices = @transform_10, window_bounds = array<i64: 128, 128>}, {pipeline_mode = #tpu.pipeline_mode<synchronous>, transform_indices = @transform_11, window_bounds = array<i64: 1, 512>}, {pipeline_mode = #tpu.pipeline_mode<synchronous>, transform_indices = @transform_12, window_bounds = array<i64: 128, 128>}, {pipeline_mode = #tpu.pipeline_mode<synchronous>, transform_indices = @transform_13, window_bounds = array<i64: 1, 512>}, {transform_indices = @transform_14, window_bounds = array<i64: 8, 512>}]} {
    %c0 = arith.constant 0 : index
    %c0_0 = arith.constant 0 : index
    %0 = vector.load %arg1[%c0, %c0_0] : memref<16x16xbf16, #tpu.memory_space<vmem>>, vector<16x16xbf16>
    %c0_1 = arith.constant 0 : index
    %c0_2 = arith.constant 0 : index
    %1 = vector.load %arg2[%c0_1, %c0_2] : memref<16x512xbf16, #tpu.memory_space<vmem>>, vector<16x512xbf16>
    %c0_3 = arith.constant 0 : index
    %c0_4 = arith.constant 0 : index
    %2 = vector.load %arg3[%c0_3, %c0_4] : memref<128x128xbf16, #tpu.memory_space<vmem>>, vector<128x128xbf16>
    %c0_5 = arith.constant 0 : index
    %c0_6 = arith.constant 0 : index
    %3 = vector.load %arg4[%c0_5, %c0_6] : memref<1x512xf32, #tpu.memory_space<vmem>>, vector<1x512xf32>
    %c0_7 = arith.constant 0 : index
    %c0_8 = arith.constant 0 : index
    %4 = vector.load %arg5[%c0_7, %c0_8] : memref<128x128xbf16, #tpu.memory_space<vmem>>, vector<128x128xbf16>
    %c0_9 = arith.constant 0 : index
    %c0_10 = arith.constant 0 : index
    %5 = vector.load %arg6[%c0_9, %c0_10] : memref<1x512xf32, #tpu.memory_space<vmem>>, vector<1x512xf32>
    %cst = arith.constant dense<0.000000e+00> : vector<16x512xf32>
    %6 = tpu.matmul %0, %1, %cst {dimension_numbers = #tpu.dot_dimension_numbers<[1], [0], [0], [1], [0, 0, 1, 1], [], []>} : vector<16x16xbf16>, vector<16x512xbf16>, vector<16x512xf32> -> vector<16x512xf32>
    %7 = arith.truncf %6 : vector<16x512xf32> to vector<16x512xbf16>
    %8 = vector.extract_strided_slice %7 {offsets = [0, 0], sizes = [16, 128], strides = [1, 1]} : vector<16x512xbf16> to vector<16x128xbf16>
    %cst_11 = arith.constant dense<0.000000e+00> : vector<16x128xf32>
    %9 = tpu.matmul %8, %2, %cst_11 {dimension_numbers = #tpu.dot_dimension_numbers<[1], [0], [0], [1], [0, 0, 1, 1], [], []>} : vector<16x128xbf16>, vector<128x128xbf16>, vector<16x128xf32> -> vector<16x128xf32>
    %10 = vector.extract_strided_slice %7 {offsets = [0, 128], sizes = [16, 128], strides = [1, 1]} : vector<16x512xbf16> to vector<16x128xbf16>
    %cst_12 = arith.constant dense<0.000000e+00> : vector<16x128xf32>
    %11 = tpu.matmul %10, %2, %cst_12 {dimension_numbers = #tpu.dot_dimension_numbers<[1], [0], [0], [1], [0, 0, 1, 1], [], []>} : vector<16x128xbf16>, vector<128x128xbf16>, vector<16x128xf32> -> vector<16x128xf32>
    %12 = vector.extract_strided_slice %7 {offsets = [0, 256], sizes = [16, 128], strides = [1, 1]} : vector<16x512xbf16> to vector<16x128xbf16>
    %cst_13 = arith.constant dense<0.000000e+00> : vector<16x128xf32>
    %13 = tpu.matmul %12, %2, %cst_13 {dimension_numbers = #tpu.dot_dimension_numbers<[1], [0], [0], [1], [0, 0, 1, 1], [], []>} : vector<16x128xbf16>, vector<128x128xbf16>, vector<16x128xf32> -> vector<16x128xf32>
    %14 = vector.extract_strided_slice %7 {offsets = [0, 384], sizes = [16, 128], strides = [1, 1]} : vector<16x512xbf16> to vector<16x128xbf16>
    %cst_14 = arith.constant dense<0.000000e+00> : vector<16x128xf32>
    %15 = tpu.matmul %14, %2, %cst_14 {dimension_numbers = #tpu.dot_dimension_numbers<[1], [0], [0], [1], [0, 0, 1, 1], [], []>} : vector<16x128xbf16>, vector<128x128xbf16>, vector<16x128xf32> -> vector<16x128xf32>
    %16 = tpu.concatenate %9, %11, %13, %15 in 1 : vector<16x128xf32>, vector<16x128xf32>, vector<16x128xf32>, vector<16x128xf32> -> vector<16x512xf32>
    %17 = vector.broadcast %3 : vector<1x512xf32> to vector<16x512xf32>
    %18 = arith.addf %16, %17 : vector<16x512xf32>
    %19 = vector.extract_strided_slice %7 {offsets = [0, 0], sizes = [16, 128], strides = [1, 1]} : vector<16x512xbf16> to vector<16x128xbf16>
    %cst_15 = arith.constant dense<0.000000e+00> : vector<16x128xf32>
    %20 = tpu.matmul %19, %4, %cst_15 {dimension_numbers = #tpu.dot_dimension_numbers<[1], [0], [0], [1], [0, 0, 1, 1], [], []>} : vector<16x128xbf16>, vector<128x128xbf16>, vector<16x128xf32> -> vector<16x128xf32>
    %21 = vector.extract_strided_slice %7 {offsets = [0, 128], sizes = [16, 128], strides = [1, 1]} : vector<16x512xbf16> to vector<16x128xbf16>
    %cst_16 = arith.constant dense<0.000000e+00> : vector<16x128xf32>
    %22 = tpu.matmul %21, %4, %cst_16 {dimension_numbers = #tpu.dot_dimension_numbers<[1], [0], [0], [1], [0, 0, 1, 1], [], []>} : vector<16x128xbf16>, vector<128x128xbf16>, vector<16x128xf32> -> vector<16x128xf32>
    %23 = vector.extract_strided_slice %7 {offsets = [0, 256], sizes = [16, 128], strides = [1, 1]} : vector<16x512xbf16> to vector<16x128xbf16>
    %cst_17 = arith.constant dense<0.000000e+00> : vector<16x128xf32>
    %24 = tpu.matmul %23, %4, %cst_17 {dimension_numbers = #tpu.dot_dimension_numbers<[1], [0], [0], [1], [0, 0, 1, 1], [], []>} : vector<16x128xbf16>, vector<128x128xbf16>, vector<16x128xf32> -> vector<16x128xf32>
    %25 = vector.extract_strided_slice %7 {offsets = [0, 384], sizes = [16, 128], strides = [1, 1]} : vector<16x512xbf16> to vector<16x128xbf16>
    %cst_18 = arith.constant dense<0.000000e+00> : vector<16x128xf32>
    %26 = tpu.matmul %25, %4, %cst_18 {dimension_numbers = #tpu.dot_dimension_numbers<[1], [0], [0], [1], [0, 0, 1, 1], [], []>} : vector<16x128xbf16>, vector<128x128xbf16>, vector<16x128xf32> -> vector<16x128xf32>
    %27 = tpu.concatenate %20, %22, %24, %26 in 1 : vector<16x128xf32>, vector<16x128xf32>, vector<16x128xf32>, vector<16x128xf32> -> vector<16x512xf32>
    %28 = vector.broadcast %5 : vector<1x512xf32> to vector<16x512xf32>
    %29 = arith.addf %27, %28 : vector<16x512xf32>
    %30 = math.absf %29 : vector<16x512xf32>
    %cst_19 = arith.constant 0.000000e+00 : f32
    %31 = vector.broadcast %cst_19 : f32 to vector<16x512xf32>
    %32 = arith.subf %31, %30 : vector<16x512xf32>
    %33 = math.exp %32 : vector<16x512xf32>
    %cst_20 = arith.constant 1.000000e+00 : f32
    %34 = vector.broadcast %cst_20 : f32 to vector<16x512xf32>
    %35 = arith.addf %34, %33 : vector<16x512xf32>
    %36 = tpu.reciprocal %35 {approx = true} : vector<16x512xf32> -> vector<16x512xf32>
    %cst_21 = arith.constant 0.000000e+00 : f32
    %37 = vector.broadcast %cst_21 : f32 to vector<16x512xf32>
    %38 = arith.cmpf oge, %29, %37 : vector<16x512xf32>
    %39 = arith.mulf %33, %36 : vector<16x512xf32>
    %40 = arith.select %38, %36, %39 : vector<16x512xi1>, vector<16x512xf32>
    %41 = arith.mulf %18, %40 : vector<16x512xf32>
    %42 = vector.extract_strided_slice %41 {offsets = [8, 0], sizes = [8, 512], strides = [1, 1]} : vector<16x512xf32> to vector<8x512xf32>
    %43 = arith.truncf %41 : vector<16x512xf32> to vector<16x512xbf16>
    %c0_22 = arith.constant 0 : index
    %c0_23 = arith.constant 0 : index
    %44 = vector.load %arg7[%c0_22, %c0_23] : memref<128x128xbf16, #tpu.memory_space<vmem>>, vector<128x128xbf16>
    %c0_24 = arith.constant 0 : index
    %c0_25 = arith.constant 0 : index
    %45 = vector.load %arg8[%c0_24, %c0_25] : memref<1x512xf32, #tpu.memory_space<vmem>>, vector<1x512xf32>
    %c0_26 = arith.constant 0 : index
    %c0_27 = arith.constant 0 : index
    %46 = vector.load %arg9[%c0_26, %c0_27] : memref<128x128xbf16, #tpu.memory_space<vmem>>, vector<128x128xbf16>
    %c0_28 = arith.constant 0 : index
    %c0_29 = arith.constant 0 : index
    %47 = vector.load %arg10[%c0_28, %c0_29] : memref<1x512xf32, #tpu.memory_space<vmem>>, vector<1x512xf32>
    %cst_30 = arith.constant dense<0.000000e+00> : vector<16x512xf32>
    %48 = tpu.matmul %0, %43, %cst_30 {dimension_numbers = #tpu.dot_dimension_numbers<[1], [0], [0], [1], [0, 0, 1, 1], [], []>} : vector<16x16xbf16>, vector<16x512xbf16>, vector<16x512xf32> -> vector<16x512xf32>
    %49 = arith.truncf %48 : vector<16x512xf32> to vector<16x512xbf16>
    %50 = vector.extract_strided_slice %49 {offsets = [0, 0], sizes = [16, 128], strides = [1, 1]} : vector<16x512xbf16> to vector<16x128xbf16>
    %cst_31 = arith.constant dense<0.000000e+00> : vector<16x128xf32>
    %51 = tpu.matmul %50, %44, %cst_31 {dimension_numbers = #tpu.dot_dimension_numbers<[1], [0], [0], [1], [0, 0, 1, 1], [], []>} : vector<16x128xbf16>, vector<128x128xbf16>, vector<16x128xf32> -> vector<16x128xf32>
    %52 = vector.extract_strided_slice %49 {offsets = [0, 128], sizes = [16, 128], strides = [1, 1]} : vector<16x512xbf16> to vector<16x128xbf16>
    %cst_32 = arith.constant dense<0.000000e+00> : vector<16x128xf32>
    %53 = tpu.matmul %52, %44, %cst_32 {dimension_numbers = #tpu.dot_dimension_numbers<[1], [0], [0], [1], [0, 0, 1, 1], [], []>} : vector<16x128xbf16>, vector<128x128xbf16>, vector<16x128xf32> -> vector<16x128xf32>
    %54 = vector.extract_strided_slice %49 {offsets = [0, 256], sizes = [16, 128], strides = [1, 1]} : vector<16x512xbf16> to vector<16x128xbf16>
    %cst_33 = arith.constant dense<0.000000e+00> : vector<16x128xf32>
    %55 = tpu.matmul %54, %44, %cst_33 {dimension_numbers = #tpu.dot_dimension_numbers<[1], [0], [0], [1], [0, 0, 1, 1], [], []>} : vector<16x128xbf16>, vector<128x128xbf16>, vector<16x128xf32> -> vector<16x128xf32>
    %56 = vector.extract_strided_slice %49 {offsets = [0, 384], sizes = [16, 128], strides = [1, 1]} : vector<16x512xbf16> to vector<16x128xbf16>
    %cst_34 = arith.constant dense<0.000000e+00> : vector<16x128xf32>
    %57 = tpu.matmul %56, %44, %cst_34 {dimension_numbers = #tpu.dot_dimension_numbers<[1], [0], [0], [1], [0, 0, 1, 1], [], []>} : vector<16x128xbf16>, vector<128x128xbf16>, vector<16x128xf32> -> vector<16x128xf32>
    %58 = tpu.concatenate %51, %53, %55, %57 in 1 : vector<16x128xf32>, vector<16x128xf32>, vector<16x128xf32>, vector<16x128xf32> -> vector<16x512xf32>
    %59 = vector.broadcast %45 : vector<1x512xf32> to vector<16x512xf32>
    %60 = arith.addf %58, %59 : vector<16x512xf32>
    %61 = vector.extract_strided_slice %49 {offsets = [0, 0], sizes = [16, 128], strides = [1, 1]} : vector<16x512xbf16> to vector<16x128xbf16>
    %cst_35 = arith.constant dense<0.000000e+00> : vector<16x128xf32>
    %62 = tpu.matmul %61, %46, %cst_35 {dimension_numbers = #tpu.dot_dimension_numbers<[1], [0], [0], [1], [0, 0, 1, 1], [], []>} : vector<16x128xbf16>, vector<128x128xbf16>, vector<16x128xf32> -> vector<16x128xf32>
    %63 = vector.extract_strided_slice %49 {offsets = [0, 128], sizes = [16, 128], strides = [1, 1]} : vector<16x512xbf16> to vector<16x128xbf16>
    %cst_36 = arith.constant dense<0.000000e+00> : vector<16x128xf32>
    %64 = tpu.matmul %63, %46, %cst_36 {dimension_numbers = #tpu.dot_dimension_numbers<[1], [0], [0], [1], [0, 0, 1, 1], [], []>} : vector<16x128xbf16>, vector<128x128xbf16>, vector<16x128xf32> -> vector<16x128xf32>
    %65 = vector.extract_strided_slice %49 {offsets = [0, 256], sizes = [16, 128], strides = [1, 1]} : vector<16x512xbf16> to vector<16x128xbf16>
    %cst_37 = arith.constant dense<0.000000e+00> : vector<16x128xf32>
    %66 = tpu.matmul %65, %46, %cst_37 {dimension_numbers = #tpu.dot_dimension_numbers<[1], [0], [0], [1], [0, 0, 1, 1], [], []>} : vector<16x128xbf16>, vector<128x128xbf16>, vector<16x128xf32> -> vector<16x128xf32>
    %67 = vector.extract_strided_slice %49 {offsets = [0, 384], sizes = [16, 128], strides = [1, 1]} : vector<16x512xbf16> to vector<16x128xbf16>
    %cst_38 = arith.constant dense<0.000000e+00> : vector<16x128xf32>
    %68 = tpu.matmul %67, %46, %cst_38 {dimension_numbers = #tpu.dot_dimension_numbers<[1], [0], [0], [1], [0, 0, 1, 1], [], []>} : vector<16x128xbf16>, vector<128x128xbf16>, vector<16x128xf32> -> vector<16x128xf32>
    %69 = tpu.concatenate %62, %64, %66, %68 in 1 : vector<16x128xf32>, vector<16x128xf32>, vector<16x128xf32>, vector<16x128xf32> -> vector<16x512xf32>
    %70 = vector.broadcast %47 : vector<1x512xf32> to vector<16x512xf32>
    %71 = arith.addf %69, %70 : vector<16x512xf32>
    %72 = math.absf %71 : vector<16x512xf32>
    %cst_39 = arith.constant 0.000000e+00 : f32
    %73 = vector.broadcast %cst_39 : f32 to vector<16x512xf32>
    %74 = arith.subf %73, %72 : vector<16x512xf32>
    %75 = math.exp %74 : vector<16x512xf32>
    %cst_40 = arith.constant 1.000000e+00 : f32
    %76 = vector.broadcast %cst_40 : f32 to vector<16x512xf32>
    %77 = arith.addf %76, %75 : vector<16x512xf32>
    %78 = tpu.reciprocal %77 {approx = true} : vector<16x512xf32> -> vector<16x512xf32>
    %cst_41 = arith.constant 0.000000e+00 : f32
    %79 = vector.broadcast %cst_41 : f32 to vector<16x512xf32>
    %80 = arith.cmpf oge, %71, %79 : vector<16x512xf32>
    %81 = arith.mulf %75, %78 : vector<16x512xf32>
    %82 = arith.select %80, %78, %81 : vector<16x512xi1>, vector<16x512xf32>
    %83 = arith.mulf %60, %82 : vector<16x512xf32>
    %84 = vector.extract_strided_slice %83 {offsets = [8, 0], sizes = [8, 512], strides = [1, 1]} : vector<16x512xf32> to vector<8x512xf32>
    %85 = arith.maximumf %42, %84 : vector<8x512xf32>
    %86 = arith.truncf %83 : vector<16x512xf32> to vector<16x512xbf16>
    %c0_42 = arith.constant 0 : index
    %c0_43 = arith.constant 0 : index
    %87 = vector.load %arg11[%c0_42, %c0_43] : memref<128x128xbf16, #tpu.memory_space<vmem>>, vector<128x128xbf16>
    %c0_44 = arith.constant 0 : index
    %c0_45 = arith.constant 0 : index
    %88 = vector.load %arg12[%c0_44, %c0_45] : memref<1x512xf32, #tpu.memory_space<vmem>>, vector<1x512xf32>
    %c0_46 = arith.constant 0 : index
    %c0_47 = arith.constant 0 : index
    %89 = vector.load %arg13[%c0_46, %c0_47] : memref<128x128xbf16, #tpu.memory_space<vmem>>, vector<128x128xbf16>
    %c0_48 = arith.constant 0 : index
    %c0_49 = arith.constant 0 : index
    %90 = vector.load %arg14[%c0_48, %c0_49] : memref<1x512xf32, #tpu.memory_space<vmem>>, vector<1x512xf32>
    %cst_50 = arith.constant dense<0.000000e+00> : vector<16x512xf32>
    %91 = tpu.matmul %0, %86, %cst_50 {dimension_numbers = #tpu.dot_dimension_numbers<[1], [0], [0], [1], [0, 0, 1, 1], [], []>} : vector<16x16xbf16>, vector<16x512xbf16>, vector<16x512xf32> -> vector<16x512xf32>
    %92 = arith.truncf %91 : vector<16x512xf32> to vector<16x512xbf16>
    %93 = vector.extract_strided_slice %92 {offsets = [0, 0], sizes = [16, 128], strides = [1, 1]} : vector<16x512xbf16> to vector<16x128xbf16>
    %cst_51 = arith.constant dense<0.000000e+00> : vector<16x128xf32>
    %94 = tpu.matmul %93, %87, %cst_51 {dimension_numbers = #tpu.dot_dimension_numbers<[1], [0], [0], [1], [0, 0, 1, 1], [], []>} : vector<16x128xbf16>, vector<128x128xbf16>, vector<16x128xf32> -> vector<16x128xf32>
    %95 = vector.extract_strided_slice %92 {offsets = [0, 128], sizes = [16, 128], strides = [1, 1]} : vector<16x512xbf16> to vector<16x128xbf16>
    %cst_52 = arith.constant dense<0.000000e+00> : vector<16x128xf32>
    %96 = tpu.matmul %95, %87, %cst_52 {dimension_numbers = #tpu.dot_dimension_numbers<[1], [0], [0], [1], [0, 0, 1, 1], [], []>} : vector<16x128xbf16>, vector<128x128xbf16>, vector<16x128xf32> -> vector<16x128xf32>
    %97 = vector.extract_strided_slice %92 {offsets = [0, 256], sizes = [16, 128], strides = [1, 1]} : vector<16x512xbf16> to vector<16x128xbf16>
    %cst_53 = arith.constant dense<0.000000e+00> : vector<16x128xf32>
    %98 = tpu.matmul %97, %87, %cst_53 {dimension_numbers = #tpu.dot_dimension_numbers<[1], [0], [0], [1], [0, 0, 1, 1], [], []>} : vector<16x128xbf16>, vector<128x128xbf16>, vector<16x128xf32> -> vector<16x128xf32>
    %99 = vector.extract_strided_slice %92 {offsets = [0, 384], sizes = [16, 128], strides = [1, 1]} : vector<16x512xbf16> to vector<16x128xbf16>
    %cst_54 = arith.constant dense<0.000000e+00> : vector<16x128xf32>
    %100 = tpu.matmul %99, %87, %cst_54 {dimension_numbers = #tpu.dot_dimension_numbers<[1], [0], [0], [1], [0, 0, 1, 1], [], []>} : vector<16x128xbf16>, vector<128x128xbf16>, vector<16x128xf32> -> vector<16x128xf32>
    %101 = tpu.concatenate %94, %96, %98, %100 in 1 : vector<16x128xf32>, vector<16x128xf32>, vector<16x128xf32>, vector<16x128xf32> -> vector<16x512xf32>
    %102 = vector.broadcast %88 : vector<1x512xf32> to vector<16x512xf32>
    %103 = arith.addf %101, %102 : vector<16x512xf32>
    %104 = vector.extract_strided_slice %92 {offsets = [0, 0], sizes = [16, 128], strides = [1, 1]} : vector<16x512xbf16> to vector<16x128xbf16>
    %cst_55 = arith.constant dense<0.000000e+00> : vector<16x128xf32>
    %105 = tpu.matmul %104, %89, %cst_55 {dimension_numbers = #tpu.dot_dimension_numbers<[1], [0], [0], [1], [0, 0, 1, 1], [], []>} : vector<16x128xbf16>, vector<128x128xbf16>, vector<16x128xf32> -> vector<16x128xf32>
    %106 = vector.extract_strided_slice %92 {offsets = [0, 128], sizes = [16, 128], strides = [1, 1]} : vector<16x512xbf16> to vector<16x128xbf16>
    %cst_56 = arith.constant dense<0.000000e+00> : vector<16x128xf32>
    %107 = tpu.matmul %106, %89, %cst_56 {dimension_numbers = #tpu.dot_dimension_numbers<[1], [0], [0], [1], [0, 0, 1, 1], [], []>} : vector<16x128xbf16>, vector<128x128xbf16>, vector<16x128xf32> -> vector<16x128xf32>
    %108 = vector.extract_strided_slice %92 {offsets = [0, 256], sizes = [16, 128], strides = [1, 1]} : vector<16x512xbf16> to vector<16x128xbf16>
    %cst_57 = arith.constant dense<0.000000e+00> : vector<16x128xf32>
    %109 = tpu.matmul %108, %89, %cst_57 {dimension_numbers = #tpu.dot_dimension_numbers<[1], [0], [0], [1], [0, 0, 1, 1], [], []>} : vector<16x128xbf16>, vector<128x128xbf16>, vector<16x128xf32> -> vector<16x128xf32>
    %110 = vector.extract_strided_slice %92 {offsets = [0, 384], sizes = [16, 128], strides = [1, 1]} : vector<16x512xbf16> to vector<16x128xbf16>
    %cst_58 = arith.constant dense<0.000000e+00> : vector<16x128xf32>
    %111 = tpu.matmul %110, %89, %cst_58 {dimension_numbers = #tpu.dot_dimension_numbers<[1], [0], [0], [1], [0, 0, 1, 1], [], []>} : vector<16x128xbf16>, vector<128x128xbf16>, vector<16x128xf32> -> vector<16x128xf32>
    %112 = tpu.concatenate %105, %107, %109, %111 in 1 : vector<16x128xf32>, vector<16x128xf32>, vector<16x128xf32>, vector<16x128xf32> -> vector<16x512xf32>
    %113 = vector.broadcast %90 : vector<1x512xf32> to vector<16x512xf32>
    %114 = arith.addf %112, %113 : vector<16x512xf32>
    %115 = math.absf %114 : vector<16x512xf32>
    %cst_59 = arith.constant 0.000000e+00 : f32
    %116 = vector.broadcast %cst_59 : f32 to vector<16x512xf32>
    %117 = arith.subf %116, %115 : vector<16x512xf32>
    %118 = math.exp %117 : vector<16x512xf32>
    %cst_60 = arith.constant 1.000000e+00 : f32
    %119 = vector.broadcast %cst_60 : f32 to vector<16x512xf32>
    %120 = arith.addf %119, %118 : vector<16x512xf32>
    %121 = tpu.reciprocal %120 {approx = true} : vector<16x512xf32> -> vector<16x512xf32>
    %cst_61 = arith.constant 0.000000e+00 : f32
    %122 = vector.broadcast %cst_61 : f32 to vector<16x512xf32>
    %123 = arith.cmpf oge, %114, %122 : vector<16x512xf32>
    %124 = arith.mulf %118, %121 : vector<16x512xf32>
    %125 = arith.select %123, %121, %124 : vector<16x512xi1>, vector<16x512xf32>
    %126 = arith.mulf %103, %125 : vector<16x512xf32>
    %127 = vector.extract_strided_slice %126 {offsets = [8, 0], sizes = [8, 512], strides = [1, 1]} : vector<16x512xf32> to vector<8x512xf32>
    %128 = arith.maximumf %85, %127 : vector<8x512xf32>
    %129 = arith.truncf %128 : vector<8x512xf32> to vector<8x512xbf16>
    %c0_62 = arith.constant 0 : index
    %c0_63 = arith.constant 0 : index
    %130 = vector.load %arg15[%c0_62, %c0_63] : memref<8x512xbf16, #tpu.memory_space<vmem>>, vector<8x512xbf16>
    tpu.vector_store %arg15[%c0_62, %c0_63], %129 {strides = array<i32>} : memref<8x512xbf16, #tpu.memory_space<vmem>>, vector<8x512xbf16>,
    return
  }
  func.func @transform_0(%arg0: i32) -> (i32, i32) {
    %c0_i32 = arith.constant 0 : i32
    %c0_i32_0 = arith.constant 0 : i32
    %c0_i32_1 = arith.constant 0 : i32
    return %c0_i32, %c0_i32_0 : i32, i32
  }
  func.func @transform_1(%arg0: i32) -> (i32, i32) {
    %c0_i32 = arith.constant 0 : i32
    %c0_i32_0 = arith.constant 0 : i32
    return %c0_i32, %arg0 : i32, i32
  }
  func.func @transform_2(%arg0: i32) -> (i32, i32) {
    %c0_i32 = arith.constant 0 : i32
    %c0_i32_0 = arith.constant 0 : i32
    %c0_i32_1 = arith.constant 0 : i32
    return %c0_i32, %c0_i32_0 : i32, i32
  }
  func.func @transform_3(%arg0: i32) -> (i32, i32) {
    %c0_i32 = arith.constant 0 : i32
    %c0_i32_0 = arith.constant 0 : i32
    %c0_i32_1 = arith.constant 0 : i32
    return %c0_i32, %c0_i32_0 : i32, i32
  }
  func.func @transform_4(%arg0: i32) -> (i32, i32) {
    %c0_i32 = arith.constant 0 : i32
    %c0_i32_0 = arith.constant 0 : i32
    %c0_i32_1 = arith.constant 0 : i32
    return %c0_i32, %c0_i32_0 : i32, i32
  }
  func.func @transform_5(%arg0: i32) -> (i32, i32) {
    %c0_i32 = arith.constant 0 : i32
    %c0_i32_0 = arith.constant 0 : i32
    %c0_i32_1 = arith.constant 0 : i32
    return %c0_i32, %c0_i32_0 : i32, i32
  }
  func.func @transform_6(%arg0: i32) -> (i32, i32) {
    %c0_i32 = arith.constant 0 : i32
    %c0_i32_0 = arith.constant 0 : i32
    %c0_i32_1 = arith.constant 0 : i32
    return %c0_i32, %c0_i32_0 : i32, i32
  }
  func.func @transform_7(%arg0: i32) -> (i32, i32) {
    %c0_i32 = arith.constant 0 : i32
    %c0_i32_0 = arith.constant 0 : i32
    %c0_i32_1 = arith.constant 0 : i32
    return %c0_i32, %c0_i32_0 : i32, i32
  }
  func.func @transform_8(%arg0: i32) -> (i32, i32) {
    %c0_i32 = arith.constant 0 : i32
    %c0_i32_0 = arith.constant 0 : i32
    %c0_i32_1 = arith.constant 0 : i32
    return %c0_i32, %c0_i32_0 : i32, i32
  }
  func.func @transform_9(%arg0: i32) -> (i32, i32) {
    %c0_i32 = arith.constant 0 : i32
    %c0_i32_0 = arith.constant 0 : i32
    %c0_i32_1 = arith.constant 0 : i32
    return %c0_i32, %c0_i32_0 : i32, i32
  }
  func.func @transform_10(%arg0: i32) -> (i32, i32) {
    %c0_i32 = arith.constant 0 : i32
    %c0_i32_0 = arith.constant 0 : i32
    %c0_i32_1 = arith.constant 0 : i32
    return %c0_i32, %c0_i32_0 : i32, i32
  }
  func.func @transform_11(%arg0: i32) -> (i32, i32) {
    %c0_i32 = arith.constant 0 : i32
    %c0_i32_0 = arith.constant 0 : i32
    %c0_i32_1 = arith.constant 0 : i32
    return %c0_i32, %c0_i32_0 : i32, i32
  }
  func.func @transform_12(%arg0: i32) -> (i32, i32) {
    %c0_i32 = arith.constant 0 : i32
    %c0_i32_0 = arith.constant 0 : i32
    %c0_i32_1 = arith.constant 0 : i32
    return %c0_i32, %c0_i32_0 : i32, i32
  }
  func.func @transform_13(%arg0: i32) -> (i32, i32) {
    %c0_i32 = arith.constant 0 : i32
    %c0_i32_0 = arith.constant 0 : i32
    %c0_i32_1 = arith.constant 0 : i32
    return %c0_i32, %c0_i32_0 : i32, i32
  }
  func.func @transform_14(%arg0: i32) -> (i32, i32) {
    %c0_i32 = arith.constant 0 : i32
    %c0_i32_0 = arith.constant 0 : i32
    return %c0_i32, %arg0 : i32, i32
  }
}

module attributes {stable_mosaic.version = 11 : i64} {
  func.func @kernel(%arg0: i32, %arg1: memref<16x16xbf16, #tpu.memory_space<vmem>>, %arg2: memref<16x512xbf16, #tpu.memory_space<vmem>>, %arg3: memref<128x128xbf16, #tpu.memory_space<vmem>>, %arg4: memref<1x512xf32, #tpu.memory_space<vmem>>, %arg5: memref<128x128xbf16, #tpu.memory_space<vmem>>, %arg6: memref<1x512xf32, #tpu.memory_space<vmem>>, %arg7: memref<128x128xbf16, #tpu.memory_space<vmem>>, %arg8: memref<1x512xf32, #tpu.memory_space<vmem>>, %arg9: memref<128x128xbf16, #tpu.memory_space<vmem>>, %arg10: memref<1x512xf32, #tpu.memory_space<vmem>>, %arg11: memref<128x128xbf16, #tpu.memory_space<vmem>>, %arg12: memref<1x512xf32, #tpu.memory_space<vmem>>, %arg13: memref<128x128xbf16, #tpu.memory_space<vmem>>, %arg14: memref<1x512xf32, #tpu.memory_space<vmem>>, %arg15: memref<8x512xbf16, #tpu.memory_space<vmem>>) attributes {dimension_semantics = [#tpu.dimension_semantics<parallel>], iteration_bounds = array<i64: 2>, scalar_prefetch = 0 : i64, scratch_operands = 0 : i64, tpu.core_type = #tpu.core_type<tc>, window_params = [{pipeline_mode = #tpu.pipeline_mode<synchronous>, transform_indices = @transform_0, window_bounds = array<i64: 16, 16>}, {transform_indices = @transform_1, window_bounds = array<i64: 16, 512>}, {pipeline_mode = #tpu.pipeline_mode<synchronous>, transform_indices = @transform_2, window_bounds = array<i64: 128, 128>}, {pipeline_mode = #tpu.pipeline_mode<synchronous>, transform_indices = @transform_3, window_bounds = array<i64: 1, 512>}, {pipeline_mode = #tpu.pipeline_mode<synchronous>, transform_indices = @transform_4, window_bounds = array<i64: 128, 128>}, {pipeline_mode = #tpu.pipeline_mode<synchronous>, transform_indices = @transform_5, window_bounds = array<i64: 1, 512>}, {pipeline_mode = #tpu.pipeline_mode<synchronous>, transform_indices = @transform_6, window_bounds = array<i64: 128, 128>}, {pipeline_mode = #tpu.pipeline_mode<synchronous>, transform_indices = @transform_7, window_bounds = array<i64: 1, 512>}, {pipeline_mode = #tpu.pipeline_mode<synchronous>, transform_indices = @transform_8, window_bounds = array<i64: 128, 128>}, {pipeline_mode = #tpu.pipeline_mode<synchronous>, transform_indices = @transform_9, window_bounds = array<i64: 1, 512>}, {pipeline_mode = #tpu.pipeline_mode<synchronous>, transform_indices = @transform_10, window_bounds = array<i64: 128, 128>}, {pipeline_mode = #tpu.pipeline_mode<synchronous>, transform_indices = @transform_11, window_bounds = array<i64: 1, 512>}, {pipeline_mode = #tpu.pipeline_mode<synchronous>, transform_indices = @transform_12, window_bounds = array<i64: 128, 128>}, {pipeline_mode = #tpu.pipeline_mode<synchronous>, transform_indices = @transform_13, window_bounds = array<i64: 1, 512>}, {transform_indices = @transform_14, window_bounds = array<i64: 8, 512>}]} {
    %c0 = arith.constant 0 : index
    %c0_0 = arith.constant 0 : index
    %0 = vector.load %arg1[%c0, %c0_0] : memref<16x16xbf16, #tpu.memory_space<vmem>>, vector<16x16xbf16>
    %c0_1 = arith.constant 0 : index
    %c0_2 = arith.constant 0 : index
    %1 = vector.load %arg2[%c0_1, %c0_2] : memref<16x512xbf16, #tpu.memory_space<vmem>>, vector<16x512xbf16>
    %c0_3 = arith.constant 0 : index
    %c0_4 = arith.constant 0 : index
    %2 = vector.load %arg3[%c0_3, %c0_4] : memref<128x128xbf16, #tpu.memory_space<vmem>>, vector<128x128xbf16>
    %c0_5 = arith.constant 0 : index
    %c0_6 = arith.constant 0 : index
    %3 = vector.load %arg4[%c0_5, %c0_6] : memref<1x512xf32, #tpu.memory_space<vmem>>, vector<1x512xf32>
    %c0_7 = arith.constant 0 : index
    %c0_8 = arith.constant 0 : index
    %4 = vector.load %arg5[%c0_7, %c0_8] : memref<128x128xbf16, #tpu.memory_space<vmem>>, vector<128x128xbf16>
    %c0_9 = arith.constant 0 : index
    %c0_10 = arith.constant 0 : index
    %5 = vector.load %arg6[%c0_9, %c0_10] : memref<1x512xf32, #tpu.memory_space<vmem>>, vector<1x512xf32>
    %cst = arith.constant dense<0.000000e+00> : vector<16x512xf32>
    %6 = tpu.matmul %0, %1, %cst {dimension_numbers = #tpu.dot_dimension_numbers<[1], [0], [0], [1], [0, 0, 1, 1], [], []>} : vector<16x16xbf16>, vector<16x512xbf16>, vector<16x512xf32> -> vector<16x512xf32>
    %7 = arith.truncf %6 : vector<16x512xf32> to vector<16x512xbf16>
    %8 = vector.extract_strided_slice %7 {offsets = [0, 0], sizes = [16, 128], strides = [1, 1]} : vector<16x512xbf16> to vector<16x128xbf16>
    %cst_11 = arith.constant dense<0.000000e+00> : vector<16x128xf32>
    %9 = tpu.matmul %8, %2, %cst_11 {dimension_numbers = #tpu.dot_dimension_numbers<[1], [0], [0], [1], [0, 0, 1, 1], [], []>} : vector<16x128xbf16>, vector<128x128xbf16>, vector<16x128xf32> -> vector<16x128xf32>
    %10 = vector.extract_strided_slice %7 {offsets = [0, 128], sizes = [16, 128], strides = [1, 1]} : vector<16x512xbf16> to vector<16x128xbf16>
    %cst_12 = arith.constant dense<0.000000e+00> : vector<16x128xf32>
    %11 = tpu.matmul %10, %2, %cst_12 {dimension_numbers = #tpu.dot_dimension_numbers<[1], [0], [0], [1], [0, 0, 1, 1], [], []>} : vector<16x128xbf16>, vector<128x128xbf16>, vector<16x128xf32> -> vector<16x128xf32>
    %12 = vector.extract_strided_slice %7 {offsets = [0, 256], sizes = [16, 128], strides = [1, 1]} : vector<16x512xbf16> to vector<16x128xbf16>
    %cst_13 = arith.constant dense<0.000000e+00> : vector<16x128xf32>
    %13 = tpu.matmul %12, %2, %cst_13 {dimension_numbers = #tpu.dot_dimension_numbers<[1], [0], [0], [1], [0, 0, 1, 1], [], []>} : vector<16x128xbf16>, vector<128x128xbf16>, vector<16x128xf32> -> vector<16x128xf32>
    %14 = vector.extract_strided_slice %7 {offsets = [0, 384], sizes = [16, 128], strides = [1, 1]} : vector<16x512xbf16> to vector<16x128xbf16>
    %cst_14 = arith.constant dense<0.000000e+00> : vector<16x128xf32>
    %15 = tpu.matmul %14, %2, %cst_14 {dimension_numbers = #tpu.dot_dimension_numbers<[1], [0], [0], [1], [0, 0, 1, 1], [], []>} : vector<16x128xbf16>, vector<128x128xbf16>, vector<16x128xf32> -> vector<16x128xf32>
    %16 = tpu.concatenate %9, %11, %13, %15 in 1 : vector<16x128xf32>, vector<16x128xf32>, vector<16x128xf32>, vector<16x128xf32> -> vector<16x512xf32>
    %17 = vector.broadcast %3 : vector<1x512xf32> to vector<16x512xf32>
    %18 = arith.addf %16, %17 : vector<16x512xf32>
    %19 = vector.extract_strided_slice %7 {offsets = [0, 0], sizes = [16, 128], strides = [1, 1]} : vector<16x512xbf16> to vector<16x128xbf16>
    %cst_15 = arith.constant dense<0.000000e+00> : vector<16x128xf32>
    %20 = tpu.matmul %19, %4, %cst_15 {dimension_numbers = #tpu.dot_dimension_numbers<[1], [0], [0], [1], [0, 0, 1, 1], [], []>} : vector<16x128xbf16>, vector<128x128xbf16>, vector<16x128xf32> -> vector<16x128xf32>
    %21 = vector.extract_strided_slice %7 {offsets = [0, 128], sizes = [16, 128], strides = [1, 1]} : vector<16x512xbf16> to vector<16x128xbf16>
    %cst_16 = arith.constant dense<0.000000e+00> : vector<16x128xf32>
    %22 = tpu.matmul %21, %4, %cst_16 {dimension_numbers = #tpu.dot_dimension_numbers<[1], [0], [0], [1], [0, 0, 1, 1], [], []>} : vector<16x128xbf16>, vector<128x128xbf16>, vector<16x128xf32> -> vector<16x128xf32>
    %23 = vector.extract_strided_slice %7 {offsets = [0, 256], sizes = [16, 128], strides = [1, 1]} : vector<16x512xbf16> to vector<16x128xbf16>
    %cst_17 = arith.constant dense<0.000000e+00> : vector<16x128xf32>
    %24 = tpu.matmul %23, %4, %cst_17 {dimension_numbers = #tpu.dot_dimension_numbers<[1], [0], [0], [1], [0, 0, 1, 1], [], []>} : vector<16x128xbf16>, vector<128x128xbf16>, vector<16x128xf32> -> vector<16x128xf32>
    %25 = vector.extract_strided_slice %7 {offsets = [0, 384], sizes = [16, 128], strides = [1, 1]} : vector<16x512xbf16> to vector<16x128xbf16>
    %cst_18 = arith.constant dense<0.000000e+00> : vector<16x128xf32>
    %26 = tpu.matmul %25, %4, %cst_18 {dimension_numbers = #tpu.dot_dimension_numbers<[1], [0], [0], [1], [0, 0, 1, 1], [], []>} : vector<16x128xbf16>, vector<128x128xbf16>, vector<16x128xf32> -> vector<16x128xf32>
    %27 = tpu.concatenate %20, %22, %24, %26 in 1 : vector<16x128xf32>, vector<16x128xf32>, vector<16x128xf32>, vector<16x128xf32> -> vector<16x512xf32>
    %28 = vector.broadcast %5 : vector<1x512xf32> to vector<16x512xf32>
    %29 = arith.addf %27, %28 : vector<16x512xf32>
    %30 = math.absf %29 : vector<16x512xf32>
    %cst_19 = arith.constant 0.000000e+00 : f32
    %31 = vector.broadcast %cst_19 : f32 to vector<16x512xf32>
    %32 = arith.subf %31, %30 : vector<16x512xf32>
    %33 = math.exp %32 : vector<16x512xf32>
    %cst_20 = arith.constant 1.000000e+00 : f32
    %34 = vector.broadcast %cst_20 : f32 to vector<16x512xf32>
    %35 = arith.addf %34, %33 : vector<16x512xf32>
    %36 = tpu.reciprocal %35 {approx = true} : vector<16x512xf32> -> vector<16x512xf32>
    %cst_21 = arith.constant 0.000000e+00 : f32
    %37 = vector.broadcast %cst_21 : f32 to vector<16x512xf32>
    %38 = arith.cmpf oge, %29, %37 : vector<16x512xf32>
    %39 = arith.mulf %33, %36 : vector<16x512xf32>
    %40 = arith.select %38, %36, %39 : vector<16x512xi1>, vector<16x512xf32>
    %41 = arith.mulf %18, %40 : vector<16x512xf32>
    %42 = vector.extract_strided_slice %41 {offsets = [8, 0], sizes = [8, 512], strides = [1, 1]} : vector<16x512xf32> to vector<8x512xf32>
    %43 = arith.truncf %41 : vector<16x512xf32> to vector<16x512xbf16>
    %c0_22 = arith.constant 0 : index
    %c0_23 = arith.constant 0 : index
    %44 = vector.load %arg7[%c0_22, %c0_23] : memref<128x128xbf16, #tpu.memory_space<vmem>>, vector<128x128xbf16>
    %c0_24 = arith.constant 0 : index
    %c0_25 = arith.constant 0 : index
    %45 = vector.load %arg8[%c0_24, %c0_25] : memref<1x512xf32, #tpu.memory_space<vmem>>, vector<1x512xf32>
    %c0_26 = arith.constant 0 : index
    %c0_27 = arith.constant 0 : index
    %46 = vector.load %arg9[%c0_26, %c0_27] : memref<128x128xbf16, #tpu.memory_space<vmem>>, vector<128x128xbf16>
    %c0_28 = arith.constant 0 : index
    %c0_29 = arith.constant 0 : index
    %47 = vector.load %arg10[%c0_28, %c0_29] : memref<1x512xf32, #tpu.memory_space<vmem>>, vector<1x512xf32>
    %cst_30 = arith.constant dense<0.000000e+00> : vector<16x512xf32>
    %48 = tpu.matmul %0, %43, %cst_30 {dimension_numbers = #tpu.dot_dimension_numbers<[1], [0], [0], [1], [0, 0, 1, 1], [], []>} : vector<16x16xbf16>, vector<16x512xbf16>, vector<16x512xf32> -> vector<16x512xf32>
    %49 = arith.truncf %48 : vector<16x512xf32> to vector<16x512xbf16>
    %50 = vector.extract_strided_slice %49 {offsets = [0, 0], sizes = [16, 128], strides = [1, 1]} : vector<16x512xbf16> to vector<16x128xbf16>
    %cst_31 = arith.constant dense<0.000000e+00> : vector<16x128xf32>
    %51 = tpu.matmul %50, %44, %cst_31 {dimension_numbers = #tpu.dot_dimension_numbers<[1], [0], [0], [1], [0, 0, 1, 1], [], []>} : vector<16x128xbf16>, vector<128x128xbf16>, vector<16x128xf32> -> vector<16x128xf32>
    %52 = vector.extract_strided_slice %49 {offsets = [0, 128], sizes = [16, 128], strides = [1, 1]} : vector<16x512xbf16> to vector<16x128xbf16>
    %cst_32 = arith.constant dense<0.000000e+00> : vector<16x128xf32>
    %53 = tpu.matmul %52, %44, %cst_32 {dimension_numbers = #tpu.dot_dimension_numbers<[1], [0], [0], [1], [0, 0, 1, 1], [], []>} : vector<16x128xbf16>, vector<128x128xbf16>, vector<16x128xf32> -> vector<16x128xf32>
    %54 = vector.extract_strided_slice %49 {offsets = [0, 256], sizes = [16, 128], strides = [1, 1]} : vector<16x512xbf16> to vector<16x128xbf16>
    %cst_33 = arith.constant dense<0.000000e+00> : vector<16x128xf32>
    %55 = tpu.matmul %54, %44, %cst_33 {dimension_numbers = #tpu.dot_dimension_numbers<[1], [0], [0], [1], [0, 0, 1, 1], [], []>} : vector<16x128xbf16>, vector<128x128xbf16>, vector<16x128xf32> -> vector<16x128xf32>
    %56 = vector.extract_strided_slice %49 {offsets = [0, 384], sizes = [16, 128], strides = [1, 1]} : vector<16x512xbf16> to vector<16x128xbf16>
    %cst_34 = arith.constant dense<0.000000e+00> : vector<16x128xf32>
    %57 = tpu.matmul %56, %44, %cst_34 {dimension_numbers = #tpu.dot_dimension_numbers<[1], [0], [0], [1], [0, 0, 1, 1], [], []>} : vector<16x128xbf16>, vector<128x128xbf16>, vector<16x128xf32> -> vector<16x128xf32>
    %58 = tpu.concatenate %51, %53, %55, %57 in 1 : vector<16x128xf32>, vector<16x128xf32>, vector<16x128xf32>, vector<16x128xf32> -> vector<16x512xf32>
    %59 = vector.broadcast %45 : vector<1x512xf32> to vector<16x512xf32>
    %60 = arith.addf %58, %59 : vector<16x512xf32>
    %61 = vector.extract_strided_slice %49 {offsets = [0, 0], sizes = [16, 128], strides = [1, 1]} : vector<16x512xbf16> to vector<16x128xbf16>
    %cst_35 = arith.constant dense<0.000000e+00> : vector<16x128xf32>
    %62 = tpu.matmul %61, %46, %cst_35 {dimension_numbers = #tpu.dot_dimension_numbers<[1], [0], [0], [1], [0, 0, 1, 1], [], []>} : vector<16x128xbf16>, vector<128x128xbf16>, vector<16x128xf32> -> vector<16x128xf32>
    %63 = vector.extract_strided_slice %49 {offsets = [0, 128], sizes = [16, 128], strides = [1, 1]} : vector<16x512xbf16> to vector<16x128xbf16>
    %cst_36 = arith.constant dense<0.000000e+00> : vector<16x128xf32>
    %64 = tpu.matmul %63, %46, %cst_36 {dimension_numbers = #tpu.dot_dimension_numbers<[1], [0], [0], [1], [0, 0, 1, 1], [], []>} : vector<16x128xbf16>, vector<128x128xbf16>, vector<16x128xf32> -> vector<16x128xf32>
    %65 = vector.extract_strided_slice %49 {offsets = [0, 256], sizes = [16, 128], strides = [1, 1]} : vector<16x512xbf16> to vector<16x128xbf16>
    %cst_37 = arith.constant dense<0.000000e+00> : vector<16x128xf32>
    %66 = tpu.matmul %65, %46, %cst_37 {dimension_numbers = #tpu.dot_dimension_numbers<[1], [0], [0], [1], [0, 0, 1, 1], [], []>} : vector<16x128xbf16>, vector<128x128xbf16>, vector<16x128xf32> -> vector<16x128xf32>
    %67 = vector.extract_strided_slice %49 {offsets = [0, 384], sizes = [16, 128], strides = [1, 1]} : vector<16x512xbf16> to vector<16x128xbf16>
    %cst_38 = arith.constant dense<0.000000e+00> : vector<16x128xf32>
    %68 = tpu.matmul %67, %46, %cst_38 {dimension_numbers = #tpu.dot_dimension_numbers<[1], [0], [0], [1], [0, 0, 1, 1], [], []>} : vector<16x128xbf16>, vector<128x128xbf16>, vector<16x128xf32> -> vector<16x128xf32>
    %69 = tpu.concatenate %62, %64, %66, %68 in 1 : vector<16x128xf32>, vector<16x128xf32>, vector<16x128xf32>, vector<16x128xf32> -> vector<16x512xf32>
    %70 = vector.broadcast %47 : vector<1x512xf32> to vector<16x512xf32>
    %71 = arith.addf %69, %70 : vector<16x512xf32>
    %72 = math.absf %71 : vector<16x512xf32>
    %cst_39 = arith.constant 0.000000e+00 : f32
    %73 = vector.broadcast %cst_39 : f32 to vector<16x512xf32>
    %74 = arith.subf %73, %72 : vector<16x512xf32>
    %75 = math.exp %74 : vector<16x512xf32>
    %cst_40 = arith.constant 1.000000e+00 : f32
    %76 = vector.broadcast %cst_40 : f32 to vector<16x512xf32>
    %77 = arith.addf %76, %75 : vector<16x512xf32>
    %78 = tpu.reciprocal %77 {approx = true} : vector<16x512xf32> -> vector<16x512xf32>
    %cst_41 = arith.constant 0.000000e+00 : f32
    %79 = vector.broadcast %cst_41 : f32 to vector<16x512xf32>
    %80 = arith.cmpf oge, %71, %79 : vector<16x512xf32>
    %81 = arith.mulf %75, %78 : vector<16x512xf32>
    %82 = arith.select %80, %78, %81 : vector<16x512xi1>, vector<16x512xf32>
    %83 = arith.mulf %60, %82 : vector<16x512xf32>
    %84 = vector.extract_strided_slice %83 {offsets = [8, 0], sizes = [8, 512], strides = [1, 1]} : vector<16x512xf32> to vector<8x512xf32>
    %85 = arith.maximumf %42, %84 : vector<8x512xf32>
    %86 = arith.truncf %83 : vector<16x512xf32> to vector<16x512xbf16>
    %c0_42 = arith.constant 0 : index
    %c0_43 = arith.constant 0 : index
    %87 = vector.load %arg11[%c0_42, %c0_43] : memref<128x128xbf16, #tpu.memory_space<vmem>>, vector<128x128xbf16>
    %c0_44 = arith.constant 0 : index
    %c0_45 = arith.constant 0 : index
    %88 = vector.load %arg12[%c0_44, %c0_45] : memref<1x512xf32, #tpu.memory_space<vmem>>, vector<1x512xf32>
    %c0_46 = arith.constant 0 : index
    %c0_47 = arith.constant 0 : index
    %89 = vector.load %arg13[%c0_46, %c0_47] : memref<128x128xbf16, #tpu.memory_space<vmem>>, vector<128x128xbf16>
    %c0_48 = arith.constant 0 : index
    %c0_49 = arith.constant 0 : index
    %90 = vector.load %arg14[%c0_48, %c0_49] : memref<1x512xf32, #tpu.memory_space<vmem>>, vector<1x512xf32>
    %cst_50 = arith.constant dense<0.000000e+00> : vector<16x512xf32>
    %91 = tpu.matmul %0, %86, %cst_50 {dimension_numbers = #tpu.dot_dimension_numbers<[1], [0], [0], [1], [0, 0, 1, 1], [], []>} : vector<16x16xbf16>, vector<16x512xbf16>, vector<16x512xf32> -> vector<16x512xf32>
    %92 = arith.truncf %91 : vector<16x512xf32> to vector<16x512xbf16>
    %93 = vector.extract_strided_slice %92 {offsets = [0, 0], sizes = [16, 128], strides = [1, 1]} : vector<16x512xbf16> to vector<16x128xbf16>
    %cst_51 = arith.constant dense<0.000000e+00> : vector<16x128xf32>
    %94 = tpu.matmul %93, %87, %cst_51 {dimension_numbers = #tpu.dot_dimension_numbers<[1], [0], [0], [1], [0, 0, 1, 1], [], []>} : vector<16x128xbf16>, vector<128x128xbf16>, vector<16x128xf32> -> vector<16x128xf32>
    %95 = vector.extract_strided_slice %92 {offsets = [0, 128], sizes = [16, 128], strides = [1, 1]} : vector<16x512xbf16> to vector<16x128xbf16>
    %cst_52 = arith.constant dense<0.000000e+00> : vector<16x128xf32>
    %96 = tpu.matmul %95, %87, %cst_52 {dimension_numbers = #tpu.dot_dimension_numbers<[1], [0], [0], [1], [0, 0, 1, 1], [], []>} : vector<16x128xbf16>, vector<128x128xbf16>, vector<16x128xf32> -> vector<16x128xf32>
    %97 = vector.extract_strided_slice %92 {offsets = [0, 256], sizes = [16, 128], strides = [1, 1]} : vector<16x512xbf16> to vector<16x128xbf16>
    %cst_53 = arith.constant dense<0.000000e+00> : vector<16x128xf32>
    %98 = tpu.matmul %97, %87, %cst_53 {dimension_numbers = #tpu.dot_dimension_numbers<[1], [0], [0], [1], [0, 0, 1, 1], [], []>} : vector<16x128xbf16>, vector<128x128xbf16>, vector<16x128xf32> -> vector<16x128xf32>
    %99 = vector.extract_strided_slice %92 {offsets = [0, 384], sizes = [16, 128], strides = [1, 1]} : vector<16x512xbf16> to vector<16x128xbf16>
    %cst_54 = arith.constant dense<0.000000e+00> : vector<16x128xf32>
    %100 = tpu.matmul %99, %87, %cst_54 {dimension_numbers = #tpu.dot_dimension_numbers<[1], [0], [0], [1], [0, 0, 1, 1], [], []>} : vector<16x128xbf16>, vector<128x128xbf16>, vector<16x128xf32> -> vector<16x128xf32>
    %101 = tpu.concatenate %94, %96, %98, %100 in 1 : vector<16x128xf32>, vector<16x128xf32>, vector<16x128xf32>, vector<16x128xf32> -> vector<16x512xf32>
    %102 = vector.broadcast %88 : vector<1x512xf32> to vector<16x512xf32>
    %103 = arith.addf %101, %102 : vector<16x512xf32>
    %104 = vector.extract_strided_slice %92 {offsets = [0, 0], sizes = [16, 128], strides = [1, 1]} : vector<16x512xbf16> to vector<16x128xbf16>
    %cst_55 = arith.constant dense<0.000000e+00> : vector<16x128xf32>
    %105 = tpu.matmul %104, %89, %cst_55 {dimension_numbers = #tpu.dot_dimension_numbers<[1], [0], [0], [1], [0, 0, 1, 1], [], []>} : vector<16x128xbf16>, vector<128x128xbf16>, vector<16x128xf32> -> vector<16x128xf32>
    %106 = vector.extract_strided_slice %92 {offsets = [0, 128], sizes = [16, 128], strides = [1, 1]} : vector<16x512xbf16> to vector<16x128xbf16>
    %cst_56 = arith.constant dense<0.000000e+00> : vector<16x128xf32>
    %107 = tpu.matmul %106, %89, %cst_56 {dimension_numbers = #tpu.dot_dimension_numbers<[1], [0], [0], [1], [0, 0, 1, 1], [], []>} : vector<16x128xbf16>, vector<128x128xbf16>, vector<16x128xf32> -> vector<16x128xf32>
    %108 = vector.extract_strided_slice %92 {offsets = [0, 256], sizes = [16, 128], strides = [1, 1]} : vector<16x512xbf16> to vector<16x128xbf16>
    %cst_57 = arith.constant dense<0.000000e+00> : vector<16x128xf32>
    %109 = tpu.matmul %108, %89, %cst_57 {dimension_numbers = #tpu.dot_dimension_numbers<[1], [0], [0], [1], [0, 0, 1, 1], [], []>} : vector<16x128xbf16>, vector<128x128xbf16>, vector<16x128xf32> -> vector<16x128xf32>
    %110 = vector.extract_strided_slice %92 {offsets = [0, 384], sizes = [16, 128], strides = [1, 1]} : vector<16x512xbf16> to vector<16x128xbf16>
    %cst_58 = arith.constant dense<0.000000e+00> : vector<16x128xf32>
    %111 = tpu.matmul %110, %89, %cst_58 {dimension_numbers = #tpu.dot_dimension_numbers<[1], [0], [0], [1], [0, 0, 1, 1], [], []>} : vector<16x128xbf16>, vector<128x128xbf16>, vector<16x128xf32> -> vector<16x128xf32>
    %112 = tpu.concatenate %105, %107, %109, %111 in 1 : vector<16x128xf32>, vector<16x128xf32>, vector<16x128xf32>, vector<16x128xf32> -> vector<16x512xf32>
    %113 = vector.broadcast %90 : vector<1x512xf32> to vector<16x512xf32>
    %114 = arith.addf %112, %113 : vector<16x512xf32>
    %115 = math.absf %114 : vector<16x512xf32>
    %cst_59 = arith.constant 0.000000e+00 : f32
    %116 = vector.broadcast %cst_59 : f32 to vector<16x512xf32>
    %117 = arith.subf %116, %115 : vector<16x512xf32>
    %118 = math.exp %117 : vector<16x512xf32>
    %cst_60 = arith.constant 1.000000e+00 : f32
    %119 = vector.broadcast %cst_60 : f32 to vector<16x512xf32>
    %120 = arith.addf %119, %118 : vector<16x512xf32>
    %121 = tpu.reciprocal %120 {approx = true} : vector<16x512xf32> -> vector<16x512xf32>
    %cst_61 = arith.constant 0.000000e+00 : f32
    %122 = vector.broadcast %cst_61 : f32 to vector<16x512xf32>
    %123 = arith.cmpf oge, %114, %122 : vector<16x512xf32>
    %124 = arith.mulf %118, %121 : vector<16x512xf32>
    %125 = arith.select %123, %121, %124 : vector<16x512xi1>, vector<16x512xf32>
    %126 = arith.mulf %103, %125 : vector<16x512xf32>
    %127 = vector.extract_strided_slice %126 {offsets = [8, 0], sizes = [8, 512], strides = [1, 1]} : vector<16x512xf32> to vector<8x512xf32>
    %128 = arith.maximumf %85, %127 : vector<8x512xf32>
    %129 = arith.truncf %128 : vector<8x512xf32> to vector<8x512xbf16>
    %c0_62 = arith.constant 0 : index
    %c0_63 = arith.constant 0 : index
    %130 = vector.load %arg15[%c0_62, %c0_63] : memref<8x512xbf16, #tpu.memory_space<vmem>>, vector<8x512xbf16>
    tpu.vector_store %arg15[%c0_62, %c0_63], %129 {strides = array<i32>} : memref<8x512xbf16, #tpu.memory_space<vmem>>, vector<8x512xbf16>,
    return
  }
  func.func @transform_0(%arg0: i32) -> (i32, i32) {
    %c0_i32 = arith.constant 0 : i32
    %c0_i32_0 = arith.constant 0 : i32
    %c0_i32_1 = arith.constant 0 : i32
    return %c0_i32, %c0_i32_0 : i32, i32
  }
  func.func @transform_1(%arg0: i32) -> (i32, i32) {
    %c0_i32 = arith.constant 0 : i32
    %c0_i32_0 = arith.constant 0 : i32
    return %c0_i32, %arg0 : i32, i32
  }
  func.func @transform_2(%arg0: i32) -> (i32, i32) {
    %c0_i32 = arith.constant 0 : i32
    %c0_i32_0 = arith.constant 0 : i32
    %c0_i32_1 = arith.constant 0 : i32
    return %c0_i32, %c0_i32_0 : i32, i32
  }
  func.func @transform_3(%arg0: i32) -> (i32, i32) {
    %c0_i32 = arith.constant 0 : i32
    %c0_i32_0 = arith.constant 0 : i32
    %c0_i32_1 = arith.constant 0 : i32
    return %c0_i32, %c0_i32_0 : i32, i32
  }
  func.func @transform_4(%arg0: i32) -> (i32, i32) {
    %c0_i32 = arith.constant 0 : i32
    %c0_i32_0 = arith.constant 0 : i32
    %c0_i32_1 = arith.constant 0 : i32
    return %c0_i32, %c0_i32_0 : i32, i32
  }
  func.func @transform_5(%arg0: i32) -> (i32, i32) {
    %c0_i32 = arith.constant 0 : i32
    %c0_i32_0 = arith.constant 0 : i32
    %c0_i32_1 = arith.constant 0 : i32
    return %c0_i32, %c0_i32_0 : i32, i32
  }
  func.func @transform_6(%arg0: i32) -> (i32, i32) {
    %c0_i32 = arith.constant 0 : i32
    %c0_i32_0 = arith.constant 0 : i32
    %c0_i32_1 = arith.constant 0 : i32
    return %c0_i32, %c0_i32_0 : i32, i32
  }
  func.func @transform_7(%arg0: i32) -> (i32, i32) {
    %c0_i32 = arith.constant 0 : i32
    %c0_i32_0 = arith.constant 0 : i32
    %c0_i32_1 = arith.constant 0 : i32
    return %c0_i32, %c0_i32_0 : i32, i32
  }
  func.func @transform_8(%arg0: i32) -> (i32, i32) {
    %c0_i32 = arith.constant 0 : i32
    %c0_i32_0 = arith.constant 0 : i32
    %c0_i32_1 = arith.constant 0 : i32
    return %c0_i32, %c0_i32_0 : i32, i32
  }
  func.func @transform_9(%arg0: i32) -> (i32, i32) {
    %c0_i32 = arith.constant 0 : i32
    %c0_i32_0 = arith.constant 0 : i32
    %c0_i32_1 = arith.constant 0 : i32
    return %c0_i32, %c0_i32_0 : i32, i32
  }
  func.func @transform_10(%arg0: i32) -> (i32, i32) {
    %c0_i32 = arith.constant 0 : i32
    %c0_i32_0 = arith.constant 0 : i32
    %c0_i32_1 = arith.constant 0 : i32
    return %c0_i32, %c0_i32_0 : i32, i32
  }
  func.func @transform_11(%arg0: i32) -> (i32, i32) {
    %c0_i32 = arith.constant 0 : i32
    %c0_i32_0 = arith.constant 0 : i32
    %c0_i32_1 = arith.constant 0 : i32
    return %c0_i32, %c0_i32_0 : i32, i32
  }
  func.func @transform_12(%arg0: i32) -> (i32, i32) {
    %c0_i32 = arith.constant 0 : i32
    %c0_i32_0 = arith.constant 0 : i32
    %c0_i32_1 = arith.constant 0 : i32
    return %c0_i32, %c0_i32_0 : i32, i32
  }
  func.func @transform_13(%arg0: i32) -> (i32, i32) {
    %c0_i32 = arith.constant 0 : i32
    %c0_i32_0 = arith.constant 0 : i32
    %c0_i32_1 = arith.constant 0 : i32
    return %c0_i32, %c0_i32_0 : i32, i32
  }
  func.func @transform_14(%arg0: i32) -> (i32, i32) {
    %c0_i32 = arith.constant 0 : i32
    %c0_i32_0 = arith.constant 0 : i32
    return %c0_i32, %arg0 : i32, i32
  }
}

</mosaic_0001>

<bundles_post_ra>
// kernel: tpu_custom_call.1
= control target key start
LH: loop header
LB: loop body
LE: loop exit
PB: predicated region body
PF: predicated region fallthrough
CT: control target
= control target key end

     0   :  { %s5199_s0 = inlined_call_operand.hbm [shape: bf16[16,16], index: 0, kind: input, shape index: {}]   ;;  %s5200_s1 = inlined_call_operand.hbm [shape: bf16[16,1024], index: 1, kind: input, shape index: {}]   ;;  %s5201_s2 = inlined_call_operand.hbm [shape: bf16[128,128], index: 2, kind: input, shape index: {}]   ;;  %s5202_s3 = inlined_call_operand.vmem [shape: f32[1,512], index: 3, kind: input, shape index: {}]   ;;  %s5203_s4 = inlined_call_operand.hbm [shape: bf16[128,128], index: 4, kind: input, shape index: {}]   ;;  %s5204_s5 = inlined_call_operand.vmem [shape: f32[1,512], index: 5, kind: input, shape index: {}]   ;;  %s5205_s6 = inlined_call_operand.hbm [shape: bf16[128,128], index: 6, kind: input, shape index: {}]   ;;  %s5206_s7 = inlined_call_operand.vmem [shape: f32[1,512], index: 7, kind: input, shape index: {}]   ;;  %s5207_s8 = inlined_call_operand.hbm [shape: bf16[128,128], index: 8, kind: input, shape index: {}]   ;;  %s5208_s9 = inlined_call_operand.vmem [shape: f32[1,512], index: 9, kind: input, shape index: {}]   ;;  %s5209_s10 = inlined_call_operand.hbm [shape: bf16[128,128], index: 10, kind: input, shape index: {}]   ;;  %s5210_s11 = inlined_call_operand.vmem [shape: f32[1,512], index: 11, kind: input, shape index: {}]   ;;  %s5211_s12 = inlined_call_operand.hbm [shape: bf16[128,128], index: 12, kind: input, shape index: {}]   ;;  %s5212_s13 = inlined_call_operand.hbm [shape: f32[1,512], index: 13, kind: input, shape index: {}]   ;;  %s5213_s14 = inlined_call_operand.hbm [shape: bf16[8,1024], index: 14, kind: output, shape index: {}]  }
   0x1   :  { %5219 = sst [smem:[#allocation25_spill]] %s5199_s0 }
   0x2   :  { %5220 = sst [smem:[#allocation26_spill]] %s5201_s2 }
   0x3   :  { %5221 = sst [smem:[#allocation27_spill]] %s5203_s4 }
   0x4   :  { %5222 = sst [smem:[#allocation28_spill]] %s5205_s6 }
   0x5   :  { %5223 = sst [smem:[#allocation29_spill]] %s5207_s8 }
   0x6   :  { %5224 = sst [smem:[#allocation30_spill]] %s5209_s10 }
   0x7   :  { %5225 = sst [smem:[#allocation31_spill]] %s5211_s12 }
   0x8   :  { %5226 = sst [smem:[#allocation32_spill]] %s5213_s14 }
   0x9   :  { %19 = vsyncpa [#allocation3], 0 }
   0xa   :  { %20 = vsyncpa [#allocation6], 0 }
   0xb   :  { %22 = vsyncpa [#allocation6 + $0x1], 0 }
   0xc   :  { %23 = vsyncpa [#allocation9], 0 }
   0xd   :  { %24 = vsyncpa [#allocation12], 0 }
   0xe   :  { %25 = vsyncpa [#allocation15], 0 }
   0xf   :  { %26 = vsyncpa [#allocation4], 0 }
  0x10   :  { %28 = vsyncpa [#allocation4 + $0x1], 0  ;;  %s4314_s29 = smov 0   ;;  %s4316_s30 = smov 0  }
  0x11   :  { %s4318_s15 = smov 0   ;;  %s4320_s16 = smov 0  }
  0x12 LB: > { %s4335_s17 = sadd.s32 4294967295, %s4219_s16   ;;  %p2838_p0 = scmp.ge.s32.totalorder %s4219_s16, 1  ;;  %s4219_s16 = sphi %s4320_s16, %s5261_s16   ;;  %s4215_s15 = sphi %s4318_s15, %s5260_s15   ;;  %s4211_s30 = sphi %s4316_s30, %s5259_s30   ;;  %s4207_s29 = sphi %s4314_s29, %s5258_s29  }
  0x13   : > { %p5215_p1 = scmp.eq.s32.totalorder %s4335_s17, 0  ;;  %p364_p2 = scmp.lt.s32.totalorder %s4219_s16, 3 }
  0x14   : > { %s4221_s19 = smov [#allocation7]   ;;  %s4222_s21 = smov [#allocation8]  }
  0x15   : > { %p4340_p3 = pnand %p2838_p0, %p364_p2  ;;  %s389_s20 = sshll.u32 %s4221_s19, 4  ;;  %s390_s20 = int_to_ptr.vmem [resolvable:$true] %s389_s20 }
  0x16   : > { %s405_s22 = sshll.u32 %s4222_s21, 4  ;;  %s4223_s24 = smov [#allocation11]   ;;  %s4353_s22 = int_to_ptr.vmem [resolvable:$true] %s405_s22 }
  0x17   : > { %s5227_s18 = scalar_select %p4340_p3, 1, 0 }
  0x18   : > { %p3664_p5 = pneg %p4340_p3  ;;  %s437_s25 = sshll.u32 %s4223_s24, 4  ;;  %s4355_s25 = int_to_ptr.vmem [resolvable:$true] %s437_s25 }
  0x19   : > { %s3910_s27 = scalar_lea.vmem %s390_s20, 1024  ;;  %p3918_p11 = scmp.lt.s32.totalorder %s390_s20, %s390_s20 }
  0x1a   : > { %p4349_p6 = pnand %p3664_p5, %p5215_p1  ;;  %p3911_p8 = scmp.ne.s32.totalorder %s390_s20, %s3910_s27 }
  0x1b   : > { %p3919_p12 = scmp.lt.s32.totalorder %s3910_s27, %s3910_s27 }
  0x1c   : > { %p4359_p7 = pneg %p4349_p6 }
  0x1d   : > { %p3920_p13 = por %p3919_p12, %p3918_p11 }
  0x1e   : > { %p3913_p9 = pnand %p3911_p8, %p4359_p7 }
  0x20   : > { %p3914_p10 = pneg %p3913_p9 }
  0x22   : > { %p3921_p0 = pnand %p3920_p13, %p3914_p10 }
  0x24   : > { %3924 = shalt.err (!%p3921_p0)
}
  0x25   : > { %s4224_s28 = smov 64   ;;  %s4225_s19 = smov 4  }
  0x26   : > { %s5230_s2 = sld [smem:[#allocation26_spill]]  ;;  %s3936_s14 = scalar_lea.vmem %s4353_s22, 1024 }
  0x27   : > { %p3937_p2 = scmp.ne.s32.totalorder %s4353_s22, %s3936_s14  ;;  %p3944_p9 = scmp.lt.s32.totalorder %s4353_s22, %s4353_s22 }
  0x28   : > { %p3945_p10 = scmp.lt.s32.totalorder %s3936_s14, %s3936_s14 }
  0x29   : > { %p3939_p5 = pnand %p3937_p2, %p4359_p7 }
  0x2a   : > { %p3946_p11 = por %p3945_p10, %p3944_p9 }
  0x2b   : > { %p3940_p8 = pneg %p3939_p5 }
  0x2c   : > { %3670 = dma.hbm_to_vmem [thread:$0]  (!%p4349_p6), %s5230_s2, 1024, %s390_s20, [#allocation6], %s4224_s28, %s4224_s28, %s4225_s19  }
  0x2d   : > { %p3947_p12 = pnand %p3946_p11, %p3940_p8 }
  0x2f   : > { %3950 = shalt.err (!%p3947_p12)
}
  0x30   : > { %s5231_s4 = sld [smem:[#allocation27_spill]]  ;;  %s3962_s20 = scalar_lea.vmem %s4355_s25, 1024 }
  0x31   : > { %p3963_p13 = scmp.ne.s32.totalorder %s4355_s25, %s3962_s20  ;;  %p3970_p5 = scmp.lt.s32.totalorder %s4355_s25, %s4355_s25 }
  0x32   : > { %p3971_p8 = scmp.lt.s32.totalorder %s3962_s20, %s3962_s20 }
  0x33   : > { %p3965_p0 = pnand %p3963_p13, %p4359_p7 }
  0x34   : > { %p3972_p9 = por %p3971_p8, %p3970_p5 }
  0x35   : > { %p3966_p2 = pneg %p3965_p0 }
  0x36   : > { %3673 = dma.hbm_to_vmem [thread:$0]  (!%p4349_p6), %s5231_s4, 1024, %s4353_s22, [#allocation9], %s4224_s28, %s4224_s28, %s4225_s19  }
  0x37   : > { %p3973_p10 = pnand %p3972_p9, %p3966_p2 }
  0x39   : > { %3976 = shalt.err (!%p3973_p10)
}
  0x3a   : > { %s5232_s8 = sld [smem:[#allocation29_spill]]  ;;  %s4226_s22 = smov [#allocation14]  }
  0x3b   : > { %s469_s27 = sshll.u32 %s4226_s22, 4  ;;  %s4227_s21 = smov [#allocation2]   ;;  %s470_s27 = int_to_ptr.vmem [resolvable:$true] %s469_s27 }
  0x3c   : > { %s376_s2 = sshll.u32 %s4227_s21, 4  ;;  %s3988_s20 = scalar_lea.vmem %s470_s27, 1024  ;;  %s377_s2 = int_to_ptr.vmem [resolvable:$true] %s376_s2 }
  0x3d   : > { %p3989_p11 = scmp.ne.s32.totalorder %s470_s27, %s3988_s20  ;;  %p3996_p0 = scmp.lt.s32.totalorder %s470_s27, %s470_s27 }
  0x3e   : > { %p3997_p2 = scmp.lt.s32.totalorder %s3988_s20, %s3988_s20 }
  0x3f   : > { %p3991_p12 = pnand %p3989_p11, %p4359_p7 }
  0x40   : > { %3679 = dma.hbm_to_vmem [thread:$0]  (!%p4349_p6), %s5232_s8, 1024, %s4355_s25, [#allocation12], %s4224_s28, %s4224_s28, %s4225_s19  }
  0x41   : > { %p3992_p13 = pneg %p3991_p12  ;;  %p3998_p5 = por %p3997_p2, %p3996_p0 }
  0x43   : > { %p3999_p8 = pnand %p3998_p5, %p3992_p13 }
  0x45   : > { %4002 = shalt.err (!%p3999_p8)
}
  0x46   : > { %s5233_s12 = sld [smem:[#allocation31_spill]]  ;;  %s4014_s24 = scalar_lea.vmem %s377_s2, 128 }
  0x47   : > { %p4015_p9 = scmp.ne.s32.totalorder %s377_s2, %s4014_s24  ;;  %p4022_p12 = scmp.lt.s32.totalorder %s377_s2, %s377_s2 }
  0x48   : > { %p4023_p0 = scmp.lt.s32.totalorder %s4014_s24, %s4014_s24 }
  0x49   : > { %p4017_p10 = pnand %p4015_p9, %p4359_p7 }
  0x4a   : > { %p4024_p13 = por %p4023_p0, %p4022_p12 }
  0x4b   : > { %p4018_p11 = pneg %p4017_p10 }
  0x4c   : > { %3685 = dma.hbm_to_vmem [thread:$0]  (!%p4349_p6), %s5233_s12, 1024, %s470_s27, [#allocation15], %s4224_s28, %s4224_s28, %s4225_s19  }
  0x4d   : > { %p4025_p2 = pnand %p4024_p13, %p4018_p11 }
  0x4f   : > { %4028 = shalt.err (!%p4025_p2)
}
  0x50   : > { %s5234_s0 = sld [smem:[#allocation25_spill]]  ;;  %s4228_s27 = smov [#allocation10]  }
  0x51   : > { %s421_s20 = sshll.u32 %s4228_s27, 4  ;;  %s4229_s25 = smov [#allocation13]   ;;  %s422_s20 = int_to_ptr.vmem [resolvable:$true] %s421_s20 }
  0x52   : > { %s453_s14 = sshll.u32 %s4229_s25, 4  ;;  %s4040_s4 = scalar_lea.vmem %s422_s20, 1024  ;;  %s454_s14 = int_to_ptr.vmem [resolvable:$true] %s453_s14 }
  0x53   : > { %p4041_p5 = scmp.ne.s32.totalorder %s422_s20, %s4040_s4  ;;  %p4048_p10 = scmp.lt.s32.totalorder %s422_s20, %s422_s20 }
  0x54   : > { %p4049_p11 = scmp.lt.s32.totalorder %s4040_s4, %s4040_s4 }
  0x55   : > { %p4043_p8 = pnand %p4041_p5, %p4359_p7 }
  0x56   : > { %3667 = dma.hbm_to_vmem [thread:$0]  (!%p4349_p6), %s5234_s0, 128, %s377_s2, [#allocation3], %s4224_s28, %s4224_s28, %s4225_s19  }
  0x57   : > { %p4044_p9 = pneg %p4043_p8  ;;  %p4050_p12 = por %p4049_p11, %p4048_p10 }
  0x59   : > { %p4051_p0 = pnand %p4050_p12, %p4044_p9 }
  0x5b   : > { %4054 = shalt.err (!%p4051_p0)
}
  0x5c   : > { %s5235_s6 = sld [smem:[#allocation28_spill]]  ;;  %s4066_s22 = scalar_lea.vmem %s454_s14, 1024 }
  0x5d   : > { %p4067_p13 = scmp.ne.s32.totalorder %s454_s14, %s4066_s22  ;;  %p4074_p8 = scmp.lt.s32.totalorder %s454_s14, %s454_s14 }
  0x5e   : > { %p4075_p10 = scmp.lt.s32.totalorder %s4066_s22, %s4066_s22 }
  0x5f   : > { %p4069_p2 = pnand %p4067_p13, %p4359_p7 }
  0x60   : > { %p4076_p9 = por %p4075_p10, %p4074_p8 }
  0x61   : > { %p4070_p5 = pneg %p4069_p2 }
  0x62   : > { %3676 = dma.hbm_to_vmem [thread:$0]  (!%p4349_p6), %s5235_s6, 1024, %s422_s20, [#allocation9], %s4224_s28, %s4224_s28, %s4225_s19  }
  0x63   : > { %p4077_p11 = pnand %p4076_p9, %p4070_p5 }
  0x65   : > { %4080 = shalt.err (!%p4077_p11)
}
  0x66   : > { %s5236_s10 = sld [smem:[#allocation30_spill]]  ;;  %s4230_s27 = smov [#allocation16]  }
  0x67   : > { %s483_s20 = sshll.u32 %s4230_s27, 4  ;;  %s484_s20 = int_to_ptr.vmem [resolvable:$true] %s483_s20 }
  0x68   : > { %s4092_s25 = scalar_lea.vmem %s484_s20, 64  ;;  %p4100_p2 = scmp.lt.s32.totalorder %s484_s20, %s484_s20 }
  0x69   : > { %p4093_p12 = scmp.ne.s32.totalorder %s484_s20, %s4092_s25  ;;  %p4101_p5 = scmp.lt.s32.totalorder %s4092_s25, %s4092_s25 }
  0x6b   : > { %p4095_p0 = pnand %p4093_p12, %p4359_p7  ;;  %p4102_p8 = por %p4101_p5, %p4100_p2 }
  0x6c   : > { %3682 = dma.hbm_to_vmem [thread:$0]  (!%p4349_p6), %s5236_s10, 1024, %s454_s14, [#allocation12], %s4224_s28, %s4224_s28, %s4225_s19  }
  0x6d   : > { %p4096_p13 = pneg %p4095_p0 }
  0x6f   : > { %p4103_p10 = pnand %p4102_p8, %p4096_p13 }
  0x71   : > { %4106 = shalt.err (!%p4103_p10)
}
  0x72   : > { %3688 = dma.hbm_to_vmem [thread:$0]  (!%p4349_p6), %s5212_s13, 64, %s484_s20, [#allocation15]  }
  0x73   : > { %s2837_s26 = sadd.s32 4294967294, %s4219_s16   ;;  %s4452_s23 = sadd.s32 1, %s4219_s16  }
  0x74   : > { %s59_s28 = ssub.s32 %s4219_s16, %s4452_s23  ;;  %s62_s19 = sadd.s32 1, %s4215_s15 }
  0x75   : > { %p60_p7 = scmp.eq.s32.totalorder %s59_s28, 0  ;;  %p69_p9 = scmp.ne.s32.totalorder %s4215_s15, %s4211_s30 }
  0x76   : > { %p70_p11 = scmp.eq.s32.totalorder %s4219_s16, 0  ;;  %p75_p12 = scmp.ne.s32.totalorder %s4211_s30, %s4207_s29 }
  0x77   : > { %s4463_s14 = scalar_select %p60_p7, %s4215_s15, %s62_s19  }
  0x78   : > { %p4465_p0 = por %p70_p11, %p69_p9  ;;  %p4471_p6 = por %p5215_p1, %p75_p12 }
  0x79   : > { %p351_p13 = scmp.eq.s32.totalorder %s4335_s17, 1  ;;  %p357_p2 = scmp.eq.s32.totalorder %s2837_s26, 1 }
  0x7a   : > { %s5238_s4 = scalar_select %p4471_p6, 1, 0 }
  0x7b   : > { %p3705_p5 = scmp.lt.s32.totalorder %s4219_s16, 2  ;;  %s494_s21 = sand.u32 1, %s4219_s16  }
  0x7c   : > { %p4478_p8 = por %p351_p13, %p69_p9  ;;  %p4482_p10 = por %p357_p2, %p75_p12 }
  0x7d   : > { %s496_s25 = sand.u32 1, %s4215_s15   ;;  %s2928_s24 = sshll.u32 %s4219_s16, 8 }
  0x7e   : > { %s5239_s27 = scalar_select %p4478_p8, 1, 0 }
  0x7f   : > { %s5240_s20 = scalar_select %p4482_p10, 1, 0 }
  0x80   : > { %s2848_s2 = sshll.u32 %s496_s25, 5  ;;  %s4491_s0 = scalar_lea.hbm %s5200_s1, %s2928_s24 }
  0x81   : > { %s498_s26 = scalar_lea.vmem [#allocation5], %s2848_s2  ;;  %p4495_p7 = pnand %p3705_p5, %p4465_p0 }
  0x82   : > { %s505_s6 = sshll.u32 %s498_s26, 4  ;;  %s4501_s25 = scalar_lea.sflag [#allocation6], %s494_s21  ;;  %s4499_s6 = int_to_ptr.vmem [resolvable:$true] %s505_s6 }
  0x83   : > { %s4107_s10 = scalar_lea.hbm %s4491_s0, 512  ;;  %p4109_p11 = pneg %p4495_p7 }
  0x84   : > { %p4108_p9 = scmp.ne.s32.totalorder %s4491_s0, %s4107_s10  ;;  %s4112_s2 = scalar_lea.hbm %s5200_s1, 1024 }
  0x85   : > { %p4113_p0 = scmp.lt.s32.totalorder %s4491_s0, %s5200_s1  ;;  %p4114_p2 = scmp.lt.s32.totalorder %s4112_s2, %s4107_s10 }
  0x86   : > { %p4110_p12 = pnand %p4109_p11, %p4108_p9 }
  0x87   : > { %p4115_p5 = por %p4114_p2, %p4113_p0 }
  0x88   : > { %p4111_p13 = pneg %p4110_p12 }
  0x8a   : > { %p4116_p4 = pnand %p4115_p5, %p4111_p13 }
  0x8c   : > { %4119 = shalt.err (!%p4116_p4)
}
  0x8d   : > { %s4120_s21 = scalar_lea.vmem %s4499_s6, 512  ;;  %s4231_s26 = smov [#allocation5]  }
  0x8e   : > { %p4121_p1 = scmp.ne.s32.totalorder %s4499_s6, %s4120_s21  ;;  %s4125_s12 = sshll.u32 %s4231_s26, 4  ;;  %s4126_s12 = int_to_ptr.vmem [resolvable:$false] %s4125_s12 }
  0x8f   : > { %s4127_s24 = scalar_lea.vmem %s4126_s12, 1024  ;;  %p4128_p12 = scmp.lt.s32.totalorder %s4499_s6, %s4126_s12 }
  0x90   : > { %p4123_p10 = pnand %p4121_p1, %p4109_p11  ;;  %p4129_p8 = scmp.lt.s32.totalorder %s4127_s24, %s4120_s21 }
  0x92   : > { %p4124_p9 = pneg %p4123_p10  ;;  %p4130_p6 = por %p4129_p8, %p4128_p12 }
  0x94   : > { %p4131_p3 = pnand %p4130_p6, %p4124_p9 }
  0x96   : > { %4134 = shalt.err (!%p4131_p3)
}
  0x97   : > { %s4232_s10 = smov 512   ;;  %s4233_s28 = smov 256  }
  0x98   : > { %s4234_s2 = smov 16   ;;  %p5242_p1 = scmp.ne.s32.totalorder %s5227_s18, 0 }
  0x99   : > { %3692 = dma.hbm_to_vmem [thread:$0]  (!%p4495_p7), %s4491_s0, 512, %s4499_s6, %s4501_s25, %s4232_s10, %s4233_s28, %s4234_s2  }
  0x9a   : > { %517 = sbr.rel (%p5242_p1) target bundleno = 1761 (0x6e1), region = 76  ;;  %p5243_p4 = scmp.eq.s32.totalorder (!%p5242_p1), %s4335_s17, 0 }
  0x9f   : > { %4178 = dma.done.wait (%p5243_p4), [#allocation3], 128   ;;  %p5244_p10 = pmov %p5243_p4 }
  0xa0   : > { %s523_s12 = sand.u32 1, %s4335_s17   ;;  %s4530_s22 = sand.u32 1, %s4211_s30  }
  0xa1   : > { %4180 = vsyncadd (%p5244_p10), [#allocation3], 4294967168  ;;  %s2853_s19 = sshll.u32 %s4530_s22, 5  ;;  %s524_s21 = scalar_lea.sflag [#allocation6], %s523_s12 }
  0xa2   : > { %s527_s8 = scalar_lea.vmem [#allocation5], %s2853_s19  ;;  %p5245_p3 = scmp.ne.s32.totalorder %s5238_s4, 0 }
  0xa4   : > { %4182 = dma.done.wait (%p5245_p3), %s524_s21, 512  }
  0xa5   : > { %4184 = vsyncadd (%p5245_p3), %s524_s21, 4294966784  ;;  %p5246_p6 = pmov %p5243_p4 }
  0xa6   : > { %p5247_p8 = pmov %p5243_p4 }
  0xa7   : > { %4186 = dma.done.wait (%p5246_p6), [#allocation6], 1024  }
  0xa8   : > { %4188 = vsyncadd (%p5247_p8), [#allocation6], 4294966272  ;;  %p5248_p7 = pmov %p5243_p4 }
  0xa9   : > { %p5249_p11 = pmov %p5243_p4 }
  0xaa   : > { %4190 = dma.done.wait (%p5248_p7), [#allocation9], 2048  }
  0xab   : > { %4192 = vsyncadd (%p5249_p11), [#allocation9], 4294965248  ;;  %p5250_p13 = pmov %p5243_p4 }
  0xac   : > { %p5251_p0 = pmov %p5243_p4 }
  0xad   : > { %4194 = dma.done.wait (%p5250_p13), [#allocation12], 2048  }
  0xae   : > { %4196 = vsyncadd (%p5251_p0), [#allocation12], 4294965248  ;;  %p5252_p2 = pmov %p5251_p0 }
  0xaf   : > { %p5253_p5 = pmov %p5251_p0 }
  0xb0   : > { %4198 = dma.done.wait (%p5252_p2), [#allocation15], 1088  }
  0xb1   : > { %4200 = vsyncadd (%p5253_p5), [#allocation15], 4294966208  ;;  %v4235_v0 = vmov 0   ;;  %v3763_v1 = vld [vmem:[%s527_s8 + $0x4] ss:$16 sps:$4 sm:$0xff]   ;;  %v4555_v3 = vld [vmem:[#allocation2] sm:$0xff]   ;;  %v975_v51 = vlaneseq }
  0xb2   : > { %704 = vmatprep.mubr.bf16.mxu0 %v4235_v0  ;;  %747 = vmatprep.mubr.bf16.mxu1 %v4235_v0  ;;  %v3765_v2 = vld [vmem:[%s527_s8] ss:$16 sps:$4 sm:$0xff]   ;;  %vm668_vm0 = vcmask 130048   ;;  %v3767_v4 = vld [vmem:[%s527_s8 + $0xc] ss:$16 sps:$4 sm:$0xff]   ;;  %v4236_v6 = vmov 0.0  }
  0xb3   : > { %686 = vmatprep.subr.bf16.mxu0 %v3763_v1  ;;  %v3769_v5 = vld [vmem:[%s527_s8 + $0x8] ss:$16 sps:$4 sm:$0xff]   ;;  %729 = vmatprep.subr.bf16.mxu1 %v3767_v4  ;;  %v3771_v8 = vld [vmem:[#allocation7 + $0x30] sm:$0xff]   ;;  %v3773_v10 = vld [vmem:[#allocation7 + $0x20] sm:$0xff]   ;;  %vm4237_vm1 = vmmov 0   ;;  %v976_v52 = vshrl.u32 %v975_v51, 7 }
  0xb4   : > { %687 = vmatpush1.bf16.msra.mxu0 %v3765_v2  ;;  %v3770_v7 = vld [vmem:[#allocation7 + $0x38] sm:$0xff]   ;;  %730 = vmatpush1.bf16.msra.mxu1 %v3769_v5  ;;  %v3772_v9 = vld [vmem:[#allocation7 + $0x28] sm:$0xff]   ;;  %v3775_v12 = vld [vmem:[#allocation7 + $0x10] sm:$0xff]   ;;  %s2861_s12 = sshll.u32 %s4530_s22, 4  ;;  %s2931_s21 = sshll.u32 %s4335_s17, 8 }
  0xb5   : > { %3148 = vmatprep.subr.bf16.mxu0 %v4236_v6  ;;  %3168 = vmatprep.subr.bf16.mxu1 %v4236_v6  ;;  %v3774_v11 = vld [vmem:[#allocation7 + $0x18] sm:$0xff]   ;;  %v3776_v13 = vld [vmem:[#allocation7 + $0x8] sm:$0xff]   ;;  %v3777_v14 = vld [vmem:[#allocation7] sm:$0xff]   ;;  %v4678_v54 = vsub.s32 0, %v976_v52  ;;  %v4680_v55 = vsub.s32 1, %v976_v52  ;;  %s5151_s19 = scalar_lea.vmem [#allocation17], %s2861_s12 }
  0xb6   : > { %v3778_v25 = vld [vmem:[#allocation8 + $0x38] sm:$0xff]   ;;  %v3779_v28 = vld [vmem:[#allocation8 + $0x30] sm:$0xff]   ;;  %v3780_v29 = vld [vmem:[#allocation8 + $0x28] sm:$0xff]   ;;  %s2689_s8 = sshll.u32 %s5151_s19, 4  ;;  %s5254_s18 = sld [smem:[#allocation32_spill]]  ;;  %s2690_s8 = int_to_ptr.vmem [resolvable:$true] %s2689_s8 }
  0xb7   : > { %2867 = vmatmul.mubr.msk.bf16.vlgmr.msra.gmra.mxu0 %vm668_vm0, %v4555_v3  ;;  %2868 = vmatmul.mubr.msk.bf16.vlgmr.msra.gmra.mxu1 %vm668_vm0, %v4555_v3  ;;  %v3781_v30 = vld [vmem:[#allocation8 + $0x20] sm:$0xff]   ;;  %v3782_v31 = vld [vmem:[#allocation8 + $0x18] sm:$0xff]   ;;  %v3783_v32 = vld [vmem:[#allocation8 + $0x10] sm:$0xff]   ;;  %s2675_s25 = scalar_lea.sflag [#allocation4], %s4530_s22  ;;  %s4135_s26 = scalar_lea.vmem %s2690_s8, 256 }
  0xb8   : > { %3149 = vmatpush3.bf16.msra.mxu0 %v3770_v7  ;;  %3169 = vmatpush3.bf16.msra.mxu1 %v3770_v7  ;;  %v3784_v33 = vld [vmem:[#allocation8 + $0x8] sm:$0xff]   ;;  %v3785_v34 = vld [vmem:[#allocation8] sm:$0xff]   ;;  %v642_v53 = vld [vmem:[%s5204_s5] sm:$0xf]  ;;  %p4136_p9 = scmp.ne.s32.totalorder %s2690_s8, %s4135_s26  ;;  %p5255_p12 = scmp.ne.s32.totalorder %s5239_s27, 0 }
  0xb9   : > { %3150 = vmatprep.subr.bf16.mxu0 %v4236_v6  ;;  %3170 = vmatprep.subr.bf16.mxu1 %v4236_v6  ;;  %v1219_v56 = vrot.slane %v642_v53, %v4678_v54  ;;  %v1223_v57 = vrot.slane %v642_v53, %v4680_v55  ;;  %s4238_s24 = smov [#allocation17]  }
  0xba   : > { %3164 = vmatprep.mubr.msk.bf16.mxu0 %vm4237_vm1, %v4236_v6  ;;  %3184 = vmatprep.mubr.msk.bf16.mxu1 %vm4237_vm1, %v4236_v6  ;;  %p4137_p1 = pnand %p4136_p9, %p5255_p12  ;;  %s4139_s10 = sshll.u32 %s4238_s24, 4  ;;  %s4140_s10 = int_to_ptr.vmem [resolvable:$false] %s4139_s10 }
  0xbb   : > { %s4141_s28 = scalar_lea.vmem %s4140_s10, 512  ;;  %p4142_p10 = scmp.lt.s32.totalorder %s2690_s8, %s4140_s10 }
  0xbc   : > { %3151 = vmatpush3.bf16.msra.mxu0 %v3771_v8  ;;  %3171 = vmatpush3.bf16.msra.mxu1 %v3771_v8  ;;  %s2687_s4 = scalar_lea.hbm %s5254_s18, %s2931_s21  ;;  %p4138_p4 = pneg %p4137_p1 }
  0xbd   : > { %3152 = vmatprep.subr.bf16.mxu0 %v4236_v6  ;;  %3172 = vmatprep.subr.bf16.mxu1 %v4236_v6  ;;  %p4143_p3 = scmp.lt.s32.totalorder %s4141_s28, %s4135_s26 }
  0xbf   : > { %p4144_p6 = por %p4143_p3, %p4142_p10 }
  0xc0   : > { %3153 = vmatpush3.bf16.msra.mxu0 %v3772_v9  ;;  %3173 = vmatpush3.bf16.msra.mxu1 %v3772_v9 }
  0xc1   : > { %3154 = vmatprep.subr.bf16.mxu0 %v4236_v6  ;;  %3174 = vmatprep.subr.bf16.mxu1 %v4236_v6  ;;  %p4145_p8 = pnand %p4144_p6, %p4138_p4 }
  0xc4   : > { %3155 = vmatpush3.bf16.msra.mxu0 %v3773_v10  ;;  %3175 = vmatpush3.bf16.msra.mxu1 %v3773_v10 }
  0xc5   : > { %3156 = vmatprep.subr.bf16.mxu0 %v4236_v6  ;;  %3176 = vmatprep.subr.bf16.mxu1 %v4236_v6 }
  0xc8   : > { %3157 = vmatpush3.bf16.msra.mxu0 %v3774_v11  ;;  %3177 = vmatpush3.bf16.msra.mxu1 %v3774_v11 }
  0xc9   : > { %3158 = vmatprep.subr.bf16.mxu0 %v4236_v6  ;;  %3178 = vmatprep.subr.bf16.mxu1 %v4236_v6 }
  0xcc   : > { %3159 = vmatpush3.bf16.msra.mxu0 %v3775_v12  ;;  %3179 = vmatpush3.bf16.msra.mxu1 %v3775_v12 }
  0xcd   : > { %3160 = vmatprep.subr.bf16.mxu0 %v4236_v6  ;;  %3180 = vmatprep.subr.bf16.mxu1 %v4236_v6 }
  0xd0   : > { %3161 = vmatpush3.bf16.msra.mxu0 %v3776_v13  ;;  %3181 = vmatpush3.bf16.msra.mxu1 %v3776_v13 }
  0xd1   : > { %3162 = vmatprep.subr.bf16.mxu0 %v4236_v6  ;;  %3182 = vmatprep.subr.bf16.mxu1 %v4236_v6 }
  0xd4   : > { %3163 = vmatpush3.bf16.msra.mxu0 %v3777_v14  ;;  %3183 = vmatpush3.bf16.msra.mxu1 %v3777_v14 }
  0xd5   : > { %3188 = vmatprep.subr.bf16.mxu0 %v4236_v6  ;;  %3208 = vmatprep.subr.bf16.mxu1 %v4236_v6 }
 0x177   : > { %v706_v15 = vpop.f32.mrf.mxu0  ;;  %v749_v21 = vpop.f32.mrf.mxu1 }
 0x179   : > { %v708_v16 = vpop.f32.mrf.mxu0  ;;  %v751_v22 = vpop.f32.mrf.mxu1 }
 0x17b   : > { %v710_v17 = vpop.f32.mrf.mxu0  ;;  %v753_v23 = vpop.f32.mrf.mxu1 }
 0x17c   : > { %v4583_v18 = vpack.c.bf16 %v710_v17, %v706_v15  ;;  %v4607_v26 = vpack.c.bf16 %v753_v23, %v749_v21 }
 0x17d   : > { %v712_v19 = vpop.f32.mrf.mxu0  ;;  %v755_v24 = vpop.f32.mrf.mxu1 }
 0x17e   : > { %v4585_v20 = vpack.c.bf16 %v712_v19, %v708_v16  ;;  %3165 = vmatmul.mubr.bf16.vlgmr.msra.gmra.mxu0 %v4583_v18  ;;  %v4610_v27 = vpack.c.bf16 %v755_v24, %v751_v22 }
 0x17f   : > { %3189 = vmatpush3.bf16.msra.mxu0 %v3770_v7  ;;  %3204 = vmatprep.mubr.msk.bf16.mxu0 %vm4237_vm1, %v4236_v6 }
 0x180   : > { %3185 = vmatmul.mubr.bf16.vlgmr.msra.gmra.mxu1 %v4585_v20  ;;  %3190 = vmatprep.subr.bf16.mxu0 %v4236_v6 }
 0x181   : > { %3209 = vmatpush3.bf16.msra.mxu1 %v3770_v7  ;;  %3224 = vmatprep.mubr.msk.bf16.mxu1 %vm4237_vm1, %v4236_v6 }
 0x182   : > { %3210 = vmatprep.subr.bf16.mxu1 %v4236_v6 }
 0x183   : > { %3191 = vmatpush3.bf16.msra.mxu0 %v3771_v8 }
 0x184   : > { %3192 = vmatprep.subr.bf16.mxu0 %v4236_v6 }
 0x185   : > { %3211 = vmatpush3.bf16.msra.mxu1 %v3771_v8 }
 0x186   : > { %3212 = vmatprep.subr.bf16.mxu1 %v4236_v6 }
 0x187   : > { %3193 = vmatpush3.bf16.msra.mxu0 %v3772_v9 }
 0x188   : > { %3194 = vmatprep.subr.bf16.mxu0 %v4236_v6 }
 0x189   : > { %3213 = vmatpush3.bf16.msra.mxu1 %v3772_v9 }
 0x18a   : > { %3214 = vmatprep.subr.bf16.mxu1 %v4236_v6 }
 0x18b   : > { %3195 = vmatpush3.bf16.msra.mxu0 %v3773_v10 }
 0x18c   : > { %3196 = vmatprep.subr.bf16.mxu0 %v4236_v6 }
 0x18d   : > { %3215 = vmatpush3.bf16.msra.mxu1 %v3773_v10 }
 0x18e   : > { %3216 = vmatprep.subr.bf16.mxu1 %v4236_v6 }
 0x18f   : > { %3197 = vmatpush3.bf16.msra.mxu0 %v3774_v11 }
 0x190   : > { %3198 = vmatprep.subr.bf16.mxu0 %v4236_v6 }
 0x191   : > { %3217 = vmatpush3.bf16.msra.mxu1 %v3774_v11 }
 0x192   : > { %3218 = vmatprep.subr.bf16.mxu1 %v4236_v6 }
 0x193   : > { %3199 = vmatpush3.bf16.msra.mxu0 %v3775_v12 }
 0x194   : > { %3200 = vmatprep.subr.bf16.mxu0 %v4236_v6 }
 0x195   : > { %3219 = vmatpush3.bf16.msra.mxu1 %v3775_v12 }
 0x196   : > { %3220 = vmatprep.subr.bf16.mxu1 %v4236_v6 }
 0x197   : > { %3201 = vmatpush3.bf16.msra.mxu0 %v3776_v13 }
 0x198   : > { %3202 = vmatprep.subr.bf16.mxu0 %v4236_v6 }
 0x199   : > { %3221 = vmatpush3.bf16.msra.mxu1 %v3776_v13 }
 0x19a   : > { %3222 = vmatprep.subr.bf16.mxu1 %v4236_v6 }
 0x19b   : > { %3203 = vmatpush3.bf16.msra.mxu0 %v3777_v14 }
 0x19c   : > { %3228 = vmatprep.subr.bf16.mxu0 %v4236_v6 }
 0x19d   : > { %3223 = vmatpush3.bf16.msra.mxu1 %v3777_v14 }
 0x19e   : > { %3205 = vmatmul.mubr.bf16.vlgmr.msra.gmra.mxu0 %v4607_v26  ;;  %3248 = vmatprep.subr.bf16.mxu1 %v4236_v6 }
 0x19f   : > { %3229 = vmatpush3.bf16.msra.mxu0 %v3778_v25  ;;  %3244 = vmatprep.mubr.msk.bf16.mxu0 %vm4237_vm1, %v4236_v6 }
 0x1a0   : > { %3225 = vmatmul.mubr.bf16.vlgmr.msra.gmra.mxu1 %v4610_v27  ;;  %3230 = vmatprep.subr.bf16.mxu0 %v4236_v6 }
 0x1a1   : > { %3249 = vmatpush3.bf16.msra.mxu1 %v3778_v25  ;;  %3264 = vmatprep.mubr.msk.bf16.mxu1 %vm4237_vm1, %v4236_v6 }
 0x1a2   : > { %3250 = vmatprep.subr.bf16.mxu1 %v4236_v6 }
 0x1a3   : > { %3231 = vmatpush3.bf16.msra.mxu0 %v3779_v28 }
 0x1a4   : > { %3232 = vmatprep.subr.bf16.mxu0 %v4236_v6 }
 0x1a5   : > { %3251 = vmatpush3.bf16.msra.mxu1 %v3779_v28 }
 0x1a6   : > { %3252 = vmatprep.subr.bf16.mxu1 %v4236_v6 }
 0x1a7   : > { %3233 = vmatpush3.bf16.msra.mxu0 %v3780_v29 }
 0x1a8   : > { %3234 = vmatprep.subr.bf16.mxu0 %v4236_v6 }
 0x1a9   : > { %3253 = vmatpush3.bf16.msra.mxu1 %v3780_v29 }
 0x1aa   : > { %3254 = vmatprep.subr.bf16.mxu1 %v4236_v6 }
 0x1ab   : > { %3235 = vmatpush3.bf16.msra.mxu0 %v3781_v30 }
 0x1ac   : > { %3236 = vmatprep.subr.bf16.mxu0 %v4236_v6 }
 0x1ad   : > { %3255 = vmatpush3.bf16.msra.mxu1 %v3781_v30 }
 0x1ae   : > { %3256 = vmatprep.subr.bf16.mxu1 %v4236_v6 }
 0x1af   : > { %3237 = vmatpush3.bf16.msra.mxu0 %v3782_v31 }
 0x1b0   : > { %3238 = vmatprep.subr.bf16.mxu0 %v4236_v6 }
 0x1b1   : > { %3257 = vmatpush3.bf16.msra.mxu1 %v3782_v31 }
 0x1b2   : > { %3258 = vmatprep.subr.bf16.mxu1 %v4236_v6 }
 0x1b3   : > { %3239 = vmatpush3.bf16.msra.mxu0 %v3783_v32 }
 0x1b4   : > { %3240 = vmatprep.subr.bf16.mxu0 %v4236_v6 }
 0x1b5   : > { %3259 = vmatpush3.bf16.msra.mxu1 %v3783_v32 }
 0x1b6   : > { %3260 = vmatprep.subr.bf16.mxu1 %v4236_v6 }
 0x1b7   : > { %3241 = vmatpush3.bf16.msra.mxu0 %v3784_v33 }
 0x1b8   : > { %3242 = vmatprep.subr.bf16.mxu0 %v4236_v6 }
 0x1b9   : > { %3261 = vmatpush3.bf16.msra.mxu1 %v3784_v33 }
 0x1ba   : > { %3262 = vmatprep.subr.bf16.mxu1 %v4236_v6 }
 0x1bb   : > { %3243 = vmatpush3.bf16.msra.mxu0 %v3785_v34 }
 0x1bc   : > { %3268 = vmatprep.subr.bf16.mxu0 %v4236_v6 }
 0x1bd   : > { %3263 = vmatpush3.bf16.msra.mxu1 %v3785_v34 }
 0x1be   : > { %3245 = vmatmul.mubr.bf16.vlgmr.msra.gmra.mxu0 %v4583_v18  ;;  %3288 = vmatprep.subr.bf16.mxu1 %v4236_v6 }
 0x1bf   : > { %3269 = vmatpush3.bf16.msra.mxu0 %v3778_v25  ;;  %3284 = vmatprep.mubr.msk.bf16.mxu0 %vm4237_vm1, %v4236_v6 }
 0x1c0   : > { %3265 = vmatmul.mubr.bf16.vlgmr.msra.gmra.mxu1 %v4585_v20  ;;  %3270 = vmatprep.subr.bf16.mxu0 %v4236_v6 }
 0x1c1   : > { %3289 = vmatpush3.bf16.msra.mxu1 %v3778_v25  ;;  %3304 = vmatprep.mubr.msk.bf16.mxu1 %vm4237_vm1, %v4236_v6 }
 0x1c2   : > { %3290 = vmatprep.subr.bf16.mxu1 %v4236_v6 }
 0x1c3   : > { %3271 = vmatpush3.bf16.msra.mxu0 %v3779_v28 }
 0x1c4   : > { %3272 = vmatprep.subr.bf16.mxu0 %v4236_v6 }
 0x1c5   : > { %3291 = vmatpush3.bf16.msra.mxu1 %v3779_v28 }
 0x1c6   : > { %3292 = vmatprep.subr.bf16.mxu1 %v4236_v6 }
 0x1c7   : > { %3273 = vmatpush3.bf16.msra.mxu0 %v3780_v29 }
 0x1c8   : > { %3274 = vmatprep.subr.bf16.mxu0 %v4236_v6 }
 0x1c9   : > { %3293 = vmatpush3.bf16.msra.mxu1 %v3780_v29  ;;  %v4698_v29 = vsub.s32 3, %v976_v52 }
 0x1ca   : > { %3294 = vmatprep.subr.bf16.mxu1 %v4236_v6 }
 0x1cb   : > { %3275 = vmatpush3.bf16.msra.mxu0 %v3781_v30 }
 0x1cc   : > { %3276 = vmatprep.subr.bf16.mxu0 %v4236_v6 }
 0x1cd   : > { %3295 = vmatpush3.bf16.msra.mxu1 %v3781_v30 }
 0x1ce   : > { %3296 = vmatprep.subr.bf16.mxu1 %v4236_v6 }
 0x1cf   : > { %3277 = vmatpush3.bf16.msra.mxu0 %v3782_v31 }
 0x1d0   : > { %3278 = vmatprep.subr.bf16.mxu0 %v4236_v6 }
 0x1d1   : > { %3297 = vmatpush3.bf16.msra.mxu1 %v3782_v31 }
 0x1d2   : > { %3298 = vmatprep.subr.bf16.mxu1 %v4236_v6 }
 0x1d3   : > { %3279 = vmatpush3.bf16.msra.mxu0 %v3783_v32 }
 0x1d4   : > { %3280 = vmatprep.subr.bf16.mxu0 %v4236_v6 }
 0x1d5   : > { %3299 = vmatpush3.bf16.msra.mxu1 %v3783_v32  ;;  %v1231_v32 = vrot.slane %v642_v53, %v4698_v29 }
 0x1d6   : > { %3300 = vmatprep.subr.bf16.mxu1 %v4236_v6 }
 0x1d7   : > { %3281 = vmatpush3.bf16.msra.mxu0 %v3784_v33 }
 0x1d8   : > { %3282 = vmatprep.subr.bf16.mxu0 %v4236_v6 }
 0x1d9   : > { %3301 = vmatpush3.bf16.msra.mxu1 %v3784_v33 }
 0x1da   : > { %3302 = vmatprep.subr.bf16.mxu1 %v4236_v6 }
 0x1db   : > { %3283 = vmatpush3.bf16.msra.mxu0 %v3785_v34 }
 0x1dd   : > { %3303 = vmatpush3.bf16.msra.mxu1 %v3785_v34 }
 0x1de   : > { %3285 = vmatmul.mubr.bf16.vlgmr.msra.gmra.mxu0 %v4607_v26  ;;  %v4696_v26 = vsub.s32 2, %v976_v52  ;;  %v4713_v52 = vld [vmem:[%s5202_s3] sm:$0xf] }
 0x1df   : > { %1394 = vmatprep.mubr.bf16.mxu0 %v4235_v0 }
 0x1e0   : > { %3305 = vmatmul.mubr.bf16.vlgmr.msra.gmra.mxu1 %v4610_v27  ;;  %v1227_v30 = vrot.slane %v642_v53, %v4696_v26 }
 0x1e1   : > { %1437 = vmatprep.mubr.bf16.mxu1 %v4235_v0 }
 0x23e   : > { %v4659_v35 = vpop.f32.mrf.mxu0 }
 0x240   : > { %v3166_v36 = vpop.f32.mrf.mxu0  ;;  %v4661_v37 = vpop.f32.mrf.mxu1 }
 0x242   : > { %v4663_v38 = vpop.f32.mrf.mxu0  ;;  %v3186_v39 = vpop.f32.mrf.mxu1 }
 0x244   : > { %v3167_v40 = vpop.f32.mrf.mxu0  ;;  %v4665_v41 = vpop.f32.mrf.mxu1 }
 0x246   : > { %v3187_v42 = vpop.f32.mrf.mxu1 }
 0x25e   : > { %v4667_v43 = vpop.f32.mrf.mxu0 }
 0x260   : > { %v3206_v44 = vpop.f32.mrf.mxu0  ;;  %v4669_v45 = vpop.f32.mrf.mxu1 }
 0x262   : > { %v4671_v46 = vpop.f32.mrf.mxu0  ;;  %v3226_v47 = vpop.f32.mrf.mxu1 }
 0x264   : > { %v3207_v48 = vpop.f32.mrf.mxu0  ;;  %v4673_v49 = vpop.f32.mrf.mxu1 }
 0x266   : > { %v3227_v50 = vpop.f32.mrf.mxu1 }
 0x27e   : > { %v1085_v58 = vpop.f32.mrf.mxu0 }
 0x27f   : > { %v4684_v59 = vadd.f32 %v1219_v56, %v1085_v58 }
 0x280   : > { %v3246_v60 = vpop.f32.mrf.mxu0  ;;  %v1126_v61 = vpop.f32.mrf.mxu1 }
 0x281   : > { %v1244_v62 = vand.u32 2147483647, %v4684_v59  ;;  %v4687_v63 = vadd.f32 %v1223_v57, %v1126_v61  ;;  %vm1292_vm3 = vcmp.ge.f32.partialorder %v4684_v59, 0.0 }
 0x282   : > { %v1088_v1 = vpop.f32.mrf.mxu0  ;;  %v3266_v2 = vpop.f32.mrf.mxu1 }
 0x283   : > { %v1252_v4 = vsub.f32 0.0, %v1244_v62  ;;  %v1245_v5 = vand.u32 2147483647, %v4687_v63  ;;  %v4690_v7 = vadd.f32 %v1219_v56, %v1088_v1  ;;  %vm1293_vm4 = vcmp.ge.f32.partialorder %v4687_v63, 0.0 }
 0x284   : > { %v3247_v8 = vpop.f32.mrf.mxu0  ;;  %v1129_v9 = vpop.f32.mrf.mxu1 }
 0x285   : > { %v1260_v10 = vmul.f32 1.442695, %v1252_v4  ;;  %v1253_v11 = vsub.f32 0.0, %v1245_v5  ;;  %v1248_v12 = vand.u32 2147483647, %v4690_v7  ;;  %v4693_v13 = vadd.f32 %v1223_v57, %v1129_v9 }
 0x286   : > { %v3267_v14 = vpop.f32.mrf.mxu1  ;;  %v978_v8 = vrot.slane %v4713_v52, %v4678_v54  ;;  %vm1296_vm2 = vcmp.ge.f32.partialorder %v4690_v7, 0.0 }
 0x287   : > { %3818 = vpow2.f32 %v1260_v10  ;;  %v1262_v15 = vmul.f32 1.442695, %v1253_v11  ;;  %v1256_v16 = vsub.f32 0.0, %v1248_v12  ;;  %v1249_v17 = vand.u32 2147483647, %v4693_v13 }
 0x288   : > { %v982_v12 = vrot.slane %v4713_v52, %v4680_v55  ;;  %vm1297_vm5 = vcmp.ge.f32.partialorder %v4693_v13, 0.0  ;;  %v995_v7 = vadd.f32 %v978_v8, %v4659_v35 }
 0x289   : > { %3820 = vpow2.f32 %v1262_v15  ;;  %v1268_v18 = vmul.f32 1.442695, %v1256_v16  ;;  %v1257_v19 = vsub.f32 0.0, %v1249_v17 }
 0x28b   : > { %3822 = vpow2.f32 %v1268_v18  ;;  %v1270_v20 = vmul.f32 1.442695, %v1257_v19  ;;  %v999_v19 = vadd.f32 %v978_v8, %v4663_v38 }
 0x28d   : > { %3824 = vpow2.f32 %v1270_v20 }
 0x294   : > { %v3819_v21 = vpop.eup %3818 }
 0x295   : > { %v1276_v22 = vadd.f32 1.0, %v3819_v21 }
 0x296   : > { %v3821_v23 = vpop.eup %3820 }
 0x297   : > { %v1277_v24 = vadd.f32 1.0, %v3821_v23  ;;  %3826 = vrcp.f32 %v1276_v22 }
 0x298   : > { %v3823_v25 = vpop.eup %3822 }
 0x299   : > { %3828 = vrcp.f32 %v1277_v24  ;;  %v1280_v27 = vadd.f32 1.0, %v3823_v25 }
 0x29a   : > { %v3825_v28 = vpop.eup %3824 }
 0x29b   : > { %3830 = vrcp.f32 %v1280_v27  ;;  %v1281_v31 = vadd.f32 1.0, %v3825_v28 }
 0x29d   : > { %3832 = vrcp.f32 %v1281_v31 }
 0x29e   : > { %v1167_v33 = vpop.f32.mrf.mxu0 }
 0x29f   : > { %v4702_v34 = vadd.f32 %v1227_v30, %v1167_v33 }
 0x2a0   : > { %v3286_v36 = vpop.f32.mrf.mxu0  ;;  %v1208_v39 = vpop.f32.mrf.mxu1 }
 0x2a1   : > { %v1246_v40 = vand.u32 2147483647, %v4702_v34  ;;  %v4705_v42 = vadd.f32 %v1231_v32, %v1208_v39  ;;  %v4743_v36 = vld [vmem:[#allocation10 + $0x30] sm:$0xff]   ;;  %vm1294_vm8 = vcmp.ge.f32.partialorder %v4702_v34, 0.0 }
 0x2a2   : > { %v1170_v44 = vpop.f32.mrf.mxu0  ;;  %v3306_v47 = vpop.f32.mrf.mxu1 }
 0x2a3   : > { %v1254_v48 = vsub.f32 0.0, %v1246_v40  ;;  %v1247_v50 = vand.u32 2147483647, %v4705_v42  ;;  %v4708_v51 = vadd.f32 %v1227_v30, %v1170_v44  ;;  %vm1295_vm6 = vcmp.ge.f32.partialorder %v4705_v42, 0.0 }
 0x2a4   : > { %v3287_v53 = vpop.f32.mrf.mxu0  ;;  %v1211_v56 = vpop.f32.mrf.mxu1 }
 0x2a5   : > { %v3827_v57 = vpop.eup %3826  ;;  %v1264_v58 = vmul.f32 1.442695, %v1254_v48  ;;  %v1255_v60 = vsub.f32 0.0, %v1247_v50  ;;  %v1250_v61 = vand.u32 2147483647, %v4708_v51  ;;  %v4716_v1 = vadd.f32 %v1231_v32, %v1211_v56  ;;  %v4749_v48 = vld [vmem:[#allocation10 + $0x28] sm:$0xff]  }
 0x2a6   : > { %v3829_v62 = vpop.eup %3828  ;;  %v3307_v2 = vpop.f32.mrf.mxu1  ;;  %v1300_v14 = vmul.f32 %v3827_v57, %v3819_v21  ;;  %v996_v21 = vadd.f32 %v982_v12, %v4661_v37  ;;  %v4753_v50 = vld [vmem:[#allocation10 + $0x20] sm:$0xff]   ;;  %v4757_v53 = vld [vmem:[#allocation10 + $0x18] sm:$0xff]   ;;  %vm1298_vm7 = vcmp.ge.f32.partialorder %v4708_v51, 0.0 }
 0x2a7   : > { %3834 = vpow2.f32 %v1264_v58  ;;  %v1266_v4 = vmul.f32 1.442695, %v1255_v60  ;;  %v1301_v9 = vmul.f32 %v3829_v62, %v3821_v23  ;;  %v1258_v10 = vsub.f32 0.0, %v1250_v61  ;;  %v4761_v60 = vld [vmem:[#allocation10 + $0x10] sm:$0xff]  }
 0x2a8   : > { %v3831_v5 = vpop.eup %3830  ;;  %v1251_v11 = vand.u32 2147483647, %v4716_v1  ;;  %v1308_v27 = vsel %vm1292_vm3, %v3827_v57, %v1300_v14  ;;  %v990_v2 = vrot.slane %v4713_v52, %v4698_v29  ;;  %v4773_v14 = vld [vmem:[#allocation10 + $0x8] sm:$0xff]   ;;  %vm1299_vm9 = vcmp.ge.f32.partialorder %v4716_v1, 0.0 }
 0x2a9   : > { %v1304_v15 = vmul.f32 %v3831_v5, %v3823_v25  ;;  %3836 = vpow2.f32 %v1266_v4  ;;  %v1272_v16 = vmul.f32 1.442695, %v1258_v10  ;;  %v1309_v22 = vsel %vm1293_vm4, %v3829_v62, %v1301_v9 }
 0x2aa   : > { %v1259_v17 = vsub.f32 0.0, %v1251_v11  ;;  %v3833_v18 = vpop.eup %3832  ;;  %v1000_v25 = vadd.f32 %v982_v12, %v4665_v41  ;;  %v1317_v59 = vmul.f32 %v1309_v22, %v996_v21  ;;  %v1316_v31 = vmul.f32 %v1308_v27, %v995_v7  ;;  %v4737_v41 = vld [vmem:[#allocation10 + $0x38] sm:$0xff]  }
 0x2ab   : > { %v1312_v20 = vsel %vm1296_vm2, %v3831_v5, %v1304_v15  ;;  %v1305_v23 = vmul.f32 %v3833_v18, %v3825_v28  ;;  %3838 = vpow2.f32 %v1272_v16  ;;  %v986_v62 = vrot.slane %v4713_v52, %v4696_v26  ;;  %v3794_v27 = vld [vmem:[#allocation11 + $0x38] sm:$0xff]  }
 0x2ac   : > { %v1274_v24 = vmul.f32 1.442695, %v1259_v17  ;;  %v4731_v30 = vmul.f32 %v1312_v20, %v999_v19  ;;  %v998_v52 = vadd.f32 %v990_v2, %v4669_v45  ;;  %v1002_v15 = vadd.f32 %v990_v2, %v4673_v49  ;;  %v1361_v2 = vld [vmem:[%s5208_s9] sm:$0xf] }
 0x2ad   : > { %v1313_v38 = vsel %vm1297_vm5, %v3833_v18, %v1305_v23  ;;  %v1001_v9 = vadd.f32 %v986_v62, %v4671_v46  ;;  %v997_v46 = vadd.f32 %v986_v62, %v4667_v43 }
 0x2ae   : > { %3840 = vpow2.f32 %v1274_v24  ;;  %v4733_v63 = vmul.f32 %v1313_v38, %v1000_v25  ;;  %v1324_v32 = vpack.c.bf16 %v4731_v30, %v1316_v31  ;;  %v3795_v31 = vld [vmem:[#allocation11 + $0x30] sm:$0xff]  }
 0x2b0   : > { %v1325_v28 = vpack.c.bf16 %v4733_v63, %v1317_v59 }
 0x2b2   : > { %1376 = vmatprep.subr.bf16.mxu0 %v1325_v28  ;;  %v3796_v28 = vld [vmem:[#allocation11 + $0x28] sm:$0xff]  }
 0x2b3   : > { %1377 = vmatpush1.bf16.msra.mxu0 %v1324_v32  ;;  %v3797_v32 = vld [vmem:[#allocation11 + $0x20] sm:$0xff]  }
 0x2b4   : > { %v3835_v37 = vpop.eup %3834  ;;  %3308 = vmatprep.subr.bf16.mxu0 %v4236_v6 }
 0x2b5   : > { %v1278_v13 = vadd.f32 1.0, %v3835_v37 }
 0x2b6   : > { %v3837_v35 = vpop.eup %3836  ;;  %2885 = vmatmul.mubr.msk.bf16.vlgmr.msra.gmra.mxu0 %vm668_vm0, %v4555_v3 }
 0x2b7   : > { %v1279_v33 = vadd.f32 1.0, %v3837_v35  ;;  %3842 = vrcp.f32 %v1278_v13  ;;  %3309 = vmatpush3.bf16.msra.mxu0 %v4737_v41  ;;  %3324 = vmatprep.mubr.msk.bf16.mxu0 %vm4237_vm1, %v4236_v6  ;;  %v3800_v13 = vld [vmem:[#allocation11 + $0x8] sm:$0xff]  }
 0x2b8   : > { %v3839_v39 = vpop.eup %3838  ;;  %3310 = vmatprep.subr.bf16.mxu0 %v4236_v6 }
 0x2b9   : > { %3844 = vrcp.f32 %v1279_v33  ;;  %v1282_v40 = vadd.f32 1.0, %v3839_v39 }
 0x2bb   : > { %v3841_v44 = vpop.eup %3840  ;;  %3846 = vrcp.f32 %v1282_v40  ;;  %3311 = vmatpush3.bf16.msra.mxu0 %v4743_v36 }
 0x2bc   : > { %v1283_v47 = vadd.f32 1.0, %v3841_v44  ;;  %3312 = vmatprep.subr.bf16.mxu0 %v4236_v6 }
 0x2be   : > { %3848 = vrcp.f32 %v1283_v47 }
 0x2bf   : > { %3313 = vmatpush3.bf16.msra.mxu0 %v4749_v48 }
 0x2c0   : > { %3314 = vmatprep.subr.bf16.mxu0 %v4236_v6 }
 0x2c3   : > { %3315 = vmatpush3.bf16.msra.mxu0 %v4753_v50 }
 0x2c4   : > { %v3843_v56 = vpop.eup %3842  ;;  %3316 = vmatprep.subr.bf16.mxu0 %v4236_v6 }
 0x2c5   : > { %v1302_v4 = vmul.f32 %v3843_v56, %v3835_v37  ;;  %v3798_v37 = vld [vmem:[#allocation11 + $0x18] sm:$0xff]  }
 0x2c6   : > { %v3845_v57 = vpop.eup %3844 }
 0x2c7   : > { %v1303_v58 = vmul.f32 %v3845_v57, %v3837_v35  ;;  %3317 = vmatpush3.bf16.msra.mxu0 %v4757_v53  ;;  %v1310_v16 = vsel %vm1294_vm8, %v3843_v56, %v1302_v4  ;;  %v3801_v35 = vld [vmem:[#allocation11] sm:$0xff]   ;;  %v1909_v4 = vrot.slane %v1361_v2, %v4678_v54 }
 0x2c8   : > { %v3847_v61 = vpop.eup %3846  ;;  %3318 = vmatprep.subr.bf16.mxu0 %v4236_v6  ;;  %v1318_v18 = vmul.f32 %v1310_v16, %v997_v46 }
 0x2c9   : > { %v1306_v5 = vmul.f32 %v3847_v61, %v3839_v39  ;;  %v1311_v10 = vsel %vm1295_vm6, %v3845_v57, %v1303_v58 }
 0x2ca   : > { %v1319_v51 = vmul.f32 %v1311_v10, %v998_v52 }
 0x2cb   : > { %v3849_v8 = vpop.eup %3848  ;;  %v1314_v11 = vsel %vm1298_vm7, %v3847_v61, %v1306_v5  ;;  %3319 = vmatpush3.bf16.msra.mxu0 %v4761_v60  ;;  %v1913_v5 = vrot.slane %v1361_v2, %v4680_v55 }
 0x2cc   : > { %v1307_v12 = vmul.f32 %v3849_v8, %v3841_v44  ;;  %3320 = vmatprep.subr.bf16.mxu0 %v4236_v6  ;;  %v4780_v42 = vmul.f32 %v1314_v11, %v1001_v9 }
 0x2ce   : > { %v1315_v34 = vsel %vm1299_vm9, %v3849_v8, %v1307_v12  ;;  %v1326_v49 = vpack.c.bf16 %v4780_v42, %v1318_v18 }
 0x2cf   : > { %v4782_v17 = vmul.f32 %v1315_v34, %v1002_v15  ;;  %3321 = vmatpush3.bf16.msra.mxu0 %v4773_v14 }
 0x2d0   : > { %3322 = vmatprep.subr.bf16.mxu0 %v4236_v6 }
 0x2d1   : > { %v1327_v45 = vpack.c.bf16 %v4782_v17, %v1319_v51 }
 0x2d3   : > { %1419 = vmatprep.subr.bf16.mxu1 %v1327_v45 }
 0x2d4   : > { %1420 = vmatpush1.bf16.msra.mxu1 %v1326_v49 }
 0x2d5   : > { %3328 = vmatprep.subr.bf16.mxu1 %v4236_v6 }
 0x2d7   : > { %2886 = vmatmul.mubr.msk.bf16.vlgmr.msra.gmra.mxu1 %vm668_vm0, %v4555_v3  ;;  %v3793_v3 = vld [vmem:[#allocation10] sm:$0xff]  }
 0x2d8   : > { %3329 = vmatpush3.bf16.msra.mxu1 %v4737_v41  ;;  %3344 = vmatprep.mubr.msk.bf16.mxu1 %vm4237_vm1, %v4236_v6 }
 0x2d9   : > { %3330 = vmatprep.subr.bf16.mxu1 %v4236_v6  ;;  %3323 = vmatpush3.bf16.msra.mxu0 %v3793_v3 }
 0x2da   : > { %3348 = vmatprep.subr.bf16.mxu0 %v4236_v6 }
 0x2dc   : > { %3331 = vmatpush3.bf16.msra.mxu1 %v4743_v36 }
 0x2dd   : > { %3332 = vmatprep.subr.bf16.mxu1 %v4236_v6 }
 0x2e0   : > { %3333 = vmatpush3.bf16.msra.mxu1 %v4749_v48 }
 0x2e1   : > { %3334 = vmatprep.subr.bf16.mxu1 %v4236_v6 }
 0x2e4   : > { %3335 = vmatpush3.bf16.msra.mxu1 %v4753_v50 }
 0x2e5   : > { %3336 = vmatprep.subr.bf16.mxu1 %v4236_v6 }
 0x2e8   : > { %3337 = vmatpush3.bf16.msra.mxu1 %v4757_v53 }
 0x2e9   : > { %3338 = vmatprep.subr.bf16.mxu1 %v4236_v6 }
 0x2ec   : > { %3339 = vmatpush3.bf16.msra.mxu1 %v4761_v60 }
 0x2ed   : > { %3340 = vmatprep.subr.bf16.mxu1 %v4236_v6 }
 0x2f0   : > { %3341 = vmatpush3.bf16.msra.mxu1 %v4773_v14 }
 0x2f1   : > { %3342 = vmatprep.subr.bf16.mxu1 %v4236_v6 }
 0x2f4   : > { %3343 = vmatpush3.bf16.msra.mxu1 %v3793_v3 }
 0x2f5   : > { %3368 = vmatprep.subr.bf16.mxu1 %v4236_v6 }
 0x376   : > { %v1396_v43 = vpop.f32.mrf.mxu0 }
 0x378   : > { %v1398_v1 = vpop.f32.mrf.mxu0 }
 0x37a   : > { %v1400_v19 = vpop.f32.mrf.mxu0 }
 0x37b   : > { %v4809_v20 = vpack.c.bf16 %v1400_v19, %v1396_v43 }
 0x37c   : > { %v1402_v22 = vpop.f32.mrf.mxu0 }
 0x37d   : > { %v4811_v23 = vpack.c.bf16 %v1402_v22, %v1398_v1  ;;  %3325 = vmatmul.mubr.bf16.vlgmr.msra.gmra.mxu0 %v4809_v20 }
 0x37e   : > { %3349 = vmatpush3.bf16.msra.mxu0 %v4737_v41  ;;  %3364 = vmatprep.mubr.msk.bf16.mxu0 %vm4237_vm1, %v4236_v6 }
 0x37f   : > { %3345 = vmatmul.mubr.bf16.vlgmr.msra.gmra.mxu1 %v4811_v23  ;;  %3350 = vmatprep.subr.bf16.mxu0 %v4236_v6 }
 0x380   : > { %3369 = vmatpush3.bf16.msra.mxu1 %v4737_v41  ;;  %3384 = vmatprep.mubr.msk.bf16.mxu1 %vm4237_vm1, %v4236_v6  ;;  %v3799_v41 = vld [vmem:[#allocation11 + $0x10] sm:$0xff]  }
 0x381   : > { %3370 = vmatprep.subr.bf16.mxu1 %v4236_v6 }
 0x382   : > { %3351 = vmatpush3.bf16.msra.mxu0 %v4743_v36 }
 0x383   : > { %3352 = vmatprep.subr.bf16.mxu0 %v4236_v6 }
 0x384   : > { %3371 = vmatpush3.bf16.msra.mxu1 %v4743_v36 }
 0x385   : > { %3372 = vmatprep.subr.bf16.mxu1 %v4236_v6 }
 0x386   : > { %3353 = vmatpush3.bf16.msra.mxu0 %v4749_v48 }
 0x387   : > { %3354 = vmatprep.subr.bf16.mxu0 %v4236_v6 }
 0x388   : > { %3373 = vmatpush3.bf16.msra.mxu1 %v4749_v48 }
 0x389   : > { %3374 = vmatprep.subr.bf16.mxu1 %v4236_v6 }
 0x38a   : > { %3355 = vmatpush3.bf16.msra.mxu0 %v4753_v50 }
 0x38b   : > { %3356 = vmatprep.subr.bf16.mxu0 %v4236_v6 }
 0x38c   : > { %3375 = vmatpush3.bf16.msra.mxu1 %v4753_v50 }
 0x38d   : > { %3376 = vmatprep.subr.bf16.mxu1 %v4236_v6 }
 0x38e   : > { %3357 = vmatpush3.bf16.msra.mxu0 %v4757_v53 }
 0x38f   : > { %3358 = vmatprep.subr.bf16.mxu0 %v4236_v6 }
 0x390   : > { %3377 = vmatpush3.bf16.msra.mxu1 %v4757_v53 }
 0x391   : > { %3378 = vmatprep.subr.bf16.mxu1 %v4236_v6 }
 0x392   : > { %3359 = vmatpush3.bf16.msra.mxu0 %v4761_v60 }
 0x393   : > { %3360 = vmatprep.subr.bf16.mxu0 %v4236_v6 }
 0x394   : > { %3379 = vmatpush3.bf16.msra.mxu1 %v4761_v60 }
 0x395   : > { %3380 = vmatprep.subr.bf16.mxu1 %v4236_v6 }
 0x396   : > { %3361 = vmatpush3.bf16.msra.mxu0 %v4773_v14 }
 0x397   : > { %v1439_v24 = vpop.f32.mrf.mxu1  ;;  %3362 = vmatprep.subr.bf16.mxu0 %v4236_v6 }
 0x398   : > { %3381 = vmatpush3.bf16.msra.mxu1 %v4773_v14 }
 0x399   : > { %v1441_v21 = vpop.f32.mrf.mxu1  ;;  %3382 = vmatprep.subr.bf16.mxu1 %v4236_v6 }
 0x39a   : > { %3363 = vmatpush3.bf16.msra.mxu0 %v3793_v3 }
 0x39b   : > { %v1443_v25 = vpop.f32.mrf.mxu1  ;;  %3388 = vmatprep.subr.bf16.mxu0 %v4236_v6 }
 0x39c   : > { %v4847_v7 = vpack.c.bf16 %v1443_v25, %v1439_v24  ;;  %3383 = vmatpush3.bf16.msra.mxu1 %v3793_v3 }
 0x39d   : > { %v1445_v38 = vpop.f32.mrf.mxu1  ;;  %3408 = vmatprep.subr.bf16.mxu1 %v4236_v6 }
 0x39e   : > { %v4850_v59 = vpack.c.bf16 %v1445_v38, %v1441_v21  ;;  %3365 = vmatmul.mubr.bf16.vlgmr.msra.gmra.mxu0 %v4847_v7 }
 0x39f   : > { %3389 = vmatpush3.bf16.msra.mxu0 %v3794_v27  ;;  %3404 = vmatprep.mubr.msk.bf16.mxu0 %vm4237_vm1, %v4236_v6 }
 0x3a0   : > { %3385 = vmatmul.mubr.bf16.vlgmr.msra.gmra.mxu1 %v4850_v59  ;;  %3390 = vmatprep.subr.bf16.mxu0 %v4236_v6 }
 0x3a1   : > { %3409 = vmatpush3.bf16.msra.mxu1 %v3794_v27  ;;  %3424 = vmatprep.mubr.msk.bf16.mxu1 %vm4237_vm1, %v4236_v6 }
 0x3a2   : > { %3410 = vmatprep.subr.bf16.mxu1 %v4236_v6 }
 0x3a3   : > { %3391 = vmatpush3.bf16.msra.mxu0 %v3795_v31 }
 0x3a4   : > { %3392 = vmatprep.subr.bf16.mxu0 %v4236_v6 }
 0x3a5   : > { %3411 = vmatpush3.bf16.msra.mxu1 %v3795_v31 }
 0x3a6   : > { %3412 = vmatprep.subr.bf16.mxu1 %v4236_v6 }
 0x3a7   : > { %3393 = vmatpush3.bf16.msra.mxu0 %v3796_v28 }
 0x3a8   : > { %3394 = vmatprep.subr.bf16.mxu0 %v4236_v6 }
 0x3a9   : > { %3413 = vmatpush3.bf16.msra.mxu1 %v3796_v28 }
 0x3aa   : > { %3414 = vmatprep.subr.bf16.mxu1 %v4236_v6 }
 0x3ab   : > { %3395 = vmatpush3.bf16.msra.mxu0 %v3797_v32 }
 0x3ac   : > { %3396 = vmatprep.subr.bf16.mxu0 %v4236_v6 }
 0x3ad   : > { %3415 = vmatpush3.bf16.msra.mxu1 %v3797_v32 }
 0x3ae   : > { %3416 = vmatprep.subr.bf16.mxu1 %v4236_v6 }
 0x3af   : > { %3397 = vmatpush3.bf16.msra.mxu0 %v3798_v37 }
 0x3b0   : > { %3398 = vmatprep.subr.bf16.mxu0 %v4236_v6 }
 0x3b1   : > { %3417 = vmatpush3.bf16.msra.mxu1 %v3798_v37 }
 0x3b2   : > { %3418 = vmatprep.subr.bf16.mxu1 %v4236_v6 }
 0x3b3   : > { %3399 = vmatpush3.bf16.msra.mxu0 %v3799_v41 }
 0x3b4   : > { %3400 = vmatprep.subr.bf16.mxu0 %v4236_v6 }
 0x3b5   : > { %3419 = vmatpush3.bf16.msra.mxu1 %v3799_v41 }
 0x3b6   : > { %3420 = vmatprep.subr.bf16.mxu1 %v4236_v6 }
 0x3b7   : > { %3401 = vmatpush3.bf16.msra.mxu0 %v3800_v13 }
 0x3b8   : > { %3402 = vmatprep.subr.bf16.mxu0 %v4236_v6 }
 0x3b9   : > { %3421 = vmatpush3.bf16.msra.mxu1 %v3800_v13 }
 0x3ba   : > { %3422 = vmatprep.subr.bf16.mxu1 %v4236_v6 }
 0x3bb   : > { %3403 = vmatpush3.bf16.msra.mxu0 %v3801_v35 }
 0x3bc   : > { %3428 = vmatprep.subr.bf16.mxu0 %v4236_v6 }
 0x3bd   : > { %3423 = vmatpush3.bf16.msra.mxu1 %v3801_v35 }
 0x3be   : > { %3405 = vmatmul.mubr.bf16.vlgmr.msra.gmra.mxu0 %v4809_v20  ;;  %3448 = vmatprep.subr.bf16.mxu1 %v4236_v6 }
 0x3bf   : > { %3429 = vmatpush3.bf16.msra.mxu0 %v3794_v27  ;;  %3444 = vmatprep.mubr.msk.bf16.mxu0 %vm4237_vm1, %v4236_v6 }
 0x3c0   : > { %3425 = vmatmul.mubr.bf16.vlgmr.msra.gmra.mxu1 %v4811_v23  ;;  %3430 = vmatprep.subr.bf16.mxu0 %v4236_v6 }
 0x3c1   : > { %3449 = vmatpush3.bf16.msra.mxu1 %v3794_v27  ;;  %3464 = vmatprep.mubr.msk.bf16.mxu1 %vm4237_vm1, %v4236_v6 }
 0x3c2   : > { %3450 = vmatprep.subr.bf16.mxu1 %v4236_v6 }
 0x3c3   : > { %3431 = vmatpush3.bf16.msra.mxu0 %v3795_v31 }
 0x3c4   : > { %3432 = vmatprep.subr.bf16.mxu0 %v4236_v6 }
 0x3c5   : > { %3451 = vmatpush3.bf16.msra.mxu1 %v3795_v31 }
 0x3c6   : > { %3452 = vmatprep.subr.bf16.mxu1 %v4236_v6 }
 0x3c7   : > { %3433 = vmatpush3.bf16.msra.mxu0 %v3796_v28 }
 0x3c8   : > { %3434 = vmatprep.subr.bf16.mxu0 %v4236_v6 }
 0x3c9   : > { %3453 = vmatpush3.bf16.msra.mxu1 %v3796_v28 }
 0x3ca   : > { %3454 = vmatprep.subr.bf16.mxu1 %v4236_v6 }
 0x3cb   : > { %3435 = vmatpush3.bf16.msra.mxu0 %v3797_v32 }
 0x3cc   : > { %3436 = vmatprep.subr.bf16.mxu0 %v4236_v6 }
 0x3cd   : > { %3455 = vmatpush3.bf16.msra.mxu1 %v3797_v32  ;;  %v1917_v32 = vrot.slane %v1361_v2, %v4696_v26 }
 0x3ce   : > { %3456 = vmatprep.subr.bf16.mxu1 %v4236_v6 }
 0x3cf   : > { %3437 = vmatpush3.bf16.msra.mxu0 %v3798_v37 }
 0x3d0   : > { %3438 = vmatprep.subr.bf16.mxu0 %v4236_v6 }
 0x3d1   : > { %3457 = vmatpush3.bf16.msra.mxu1 %v3798_v37 }
 0x3d2   : > { %3458 = vmatprep.subr.bf16.mxu1 %v4236_v6 }
 0x3d3   : > { %3439 = vmatpush3.bf16.msra.mxu0 %v3799_v41 }
 0x3d4   : > { %3440 = vmatprep.subr.bf16.mxu0 %v4236_v6 }
 0x3d5   : > { %3459 = vmatpush3.bf16.msra.mxu1 %v3799_v41  ;;  %v1921_v41 = vrot.slane %v1361_v2, %v4698_v29 }
 0x3d6   : > { %3460 = vmatprep.subr.bf16.mxu1 %v4236_v6 }
 0x3d7   : > { %3441 = vmatpush3.bf16.msra.mxu0 %v3800_v13 }
 0x3d8   : > { %3442 = vmatprep.subr.bf16.mxu0 %v4236_v6 }
 0x3d9   : > { %3461 = vmatpush3.bf16.msra.mxu1 %v3800_v13 }
 0x3da   : > { %3462 = vmatprep.subr.bf16.mxu1 %v4236_v6 }
 0x3db   : > { %3443 = vmatpush3.bf16.msra.mxu0 %v3801_v35 }
 0x3dd   : > { %3463 = vmatpush3.bf16.msra.mxu1 %v3801_v35 }
 0x3de   : > { %3445 = vmatmul.mubr.bf16.vlgmr.msra.gmra.mxu0 %v4847_v7 }
 0x3df   : > { %2088 = vmatprep.mubr.bf16.mxu0 %v4235_v0 }
 0x3e0   : > { %3465 = vmatmul.mubr.bf16.vlgmr.msra.gmra.mxu1 %v4850_v59 }
 0x3e1   : > { %2131 = vmatprep.mubr.bf16.mxu1 %v4235_v0 }
 0x43d   : > { %v4899_v33 = vpop.f32.mrf.mxu0 }
 0x43f   : > { %v3326_v36 = vpop.f32.mrf.mxu0  ;;  %v4901_v39 = vpop.f32.mrf.mxu1 }
 0x441   : > { %v4903_v40 = vpop.f32.mrf.mxu0  ;;  %v3346_v44 = vpop.f32.mrf.mxu1 }
 0x443   : > { %v3327_v47 = vpop.f32.mrf.mxu0  ;;  %v4905_v48 = vpop.f32.mrf.mxu1 }
 0x444   : > { %v4939_v47 = vld [vmem:[%s5206_s7] sm:$0xf] }
 0x445   : > { %v3347_v50 = vpop.f32.mrf.mxu1 }
 0x45e   : > { %v4907_v53 = vpop.f32.mrf.mxu0 }
 0x460   : > { %v3366_v56 = vpop.f32.mrf.mxu0  ;;  %v4909_v57 = vpop.f32.mrf.mxu1 }
 0x462   : > { %v4911_v58 = vpop.f32.mrf.mxu0  ;;  %v3386_v0 = vpop.f32.mrf.mxu1 }
 0x464   : > { %v3367_v60 = vpop.f32.mrf.mxu0  ;;  %v4913_v61 = vpop.f32.mrf.mxu1 }
 0x466   : > { %v3387_v62 = vpop.f32.mrf.mxu1 }
 0x47e   : > { %v1775_v8 = vpop.f32.mrf.mxu0 }
 0x47f   : > { %v4920_v9 = vadd.f32 %v1909_v4, %v1775_v8  ;;  %v1668_v8 = vrot.slane %v4939_v47, %v4678_v54 }
 0x480   : > { %v3406_v10 = vpop.f32.mrf.mxu0  ;;  %v1816_v11 = vpop.f32.mrf.mxu1 }
 0x481   : > { %v1934_v12 = vand.u32 2147483647, %v4920_v9  ;;  %v4923_v14 = vadd.f32 %v1913_v5, %v1816_v11  ;;  %vm1982_vm10 = vcmp.ge.f32.partialorder %v4920_v9, 0.0 }
 0x482   : > { %v1778_v52 = vpop.f32.mrf.mxu0  ;;  %v3426_v15 = vpop.f32.mrf.mxu1 }
 0x483   : > { %v1942_v16 = vsub.f32 0.0, %v1934_v12  ;;  %v1935_v46 = vand.u32 2147483647, %v4923_v14  ;;  %v4926_v34 = vadd.f32 %v1909_v4, %v1778_v52  ;;  %vm1983_vm11 = vcmp.ge.f32.partialorder %v4923_v14, 0.0 }
 0x484   : > { %v3407_v51 = vpop.f32.mrf.mxu0  ;;  %v1819_v18 = vpop.f32.mrf.mxu1 }
 0x485   : > { %v1950_v45 = vmul.f32 1.442695, %v1942_v16  ;;  %v1943_v49 = vsub.f32 0.0, %v1935_v46  ;;  %v1938_v3 = vand.u32 2147483647, %v4926_v34  ;;  %v4929_v43 = vadd.f32 %v1913_v5, %v1819_v18 }
 0x486   : > { %v3427_v1 = vpop.f32.mrf.mxu1  ;;  %vm1986_vm12 = vcmp.ge.f32.partialorder %v4926_v34, 0.0 }
 0x487   : > { %3850 = vpow2.f32 %v1950_v45  ;;  %v1952_v19 = vmul.f32 1.442695, %v1943_v49  ;;  %v1946_v20 = vsub.f32 0.0, %v1938_v3  ;;  %v1939_v22 = vand.u32 2147483647, %v4929_v43 }
 0x488   : > { %v1672_v1 = vrot.slane %v4939_v47, %v4680_v55  ;;  %vm1987_vm13 = vcmp.ge.f32.partialorder %v4929_v43, 0.0  ;;  %v3898_v43 = vld [vmem:[#allocation2] sm:$0xff]  }
 0x489   : > { %3852 = vpow2.f32 %v1952_v19  ;;  %v1958_v23 = vmul.f32 1.442695, %v1946_v20  ;;  %v1947_v24 = vsub.f32 0.0, %v1939_v22 }
 0x48b   : > { %3854 = vpow2.f32 %v1958_v23  ;;  %v1960_v21 = vmul.f32 1.442695, %v1947_v24  ;;  %v1685_v23 = vadd.f32 %v1668_v8, %v4899_v33  ;;  %v1689_v24 = vadd.f32 %v1668_v8, %v4903_v40  ;;  %v4980_v8 = vld [vmem:[#allocation13 + $0x28] sm:$0xff]  }
 0x48c   : > { %v1686_v33 = vadd.f32 %v1672_v1, %v4901_v39  ;;  %v1690_v40 = vadd.f32 %v1672_v1, %v4905_v48 }
 0x48d   : > { %3856 = vpow2.f32 %v1960_v21 }
 0x494   : > { %v3851_v25 = vpop.eup %3850 }
 0x495   : > { %v1966_v27 = vadd.f32 1.0, %v3851_v25 }
 0x496   : > { %v3853_v7 = vpop.eup %3852 }
 0x497   : > { %3858 = vrcp.f32 %v1966_v27  ;;  %v1967_v38 = vadd.f32 1.0, %v3853_v7 }
 0x498   : > { %v3855_v59 = vpop.eup %3854 }
 0x499   : > { %3860 = vrcp.f32 %v1967_v38  ;;  %v1970_v31 = vadd.f32 1.0, %v3855_v59 }
 0x49a   : > { %v3857_v28 = vpop.eup %3856 }
 0x49b   : > { %3862 = vrcp.f32 %v1970_v31  ;;  %v1971_v37 = vadd.f32 1.0, %v3857_v28 }
 0x49d   : > { %3864 = vrcp.f32 %v1971_v37 }
 0x49e   : > { %v1857_v13 = vpop.f32.mrf.mxu0 }
 0x49f   : > { %v4934_v35 = vadd.f32 %v1917_v32, %v1857_v13 }
 0x4a0   : > { %v3446_v36 = vpop.f32.mrf.mxu0  ;;  %v1898_v44 = vpop.f32.mrf.mxu1 }
 0x4a1   : > { %v1936_v50 = vand.u32 2147483647, %v4934_v35  ;;  %v4942_v56 = vadd.f32 %v1921_v41, %v1898_v44  ;;  %vm1984_vm14 = vcmp.ge.f32.partialorder %v4934_v35, 0.0  ;;  %v5006_v35 = vld [vmem:[#allocation13 + $0x8] sm:$0xff]  }
 0x4a2   : > { %v1860_v0 = vpop.f32.mrf.mxu0  ;;  %v3466_v60 = vpop.f32.mrf.mxu1 }
 0x4a3   : > { %v1944_v62 = vsub.f32 0.0, %v1936_v50  ;;  %v1937_v2 = vand.u32 2147483647, %v4942_v56  ;;  %v4945_v4 = vadd.f32 %v1917_v32, %v1860_v0  ;;  %v4974_v0 = vld [vmem:[#allocation13 + $0x30] sm:$0xff]   ;;  %vm1985_vm15 = vcmp.ge.f32.partialorder %v4942_v56, 0.0 }
 0x4a4   : > { %v3859_v5 = vpop.eup %3858  ;;  %v3447_v10 = vpop.f32.mrf.mxu0 }
 0x4a5   : > { %v1901_v11 = vpop.f32.mrf.mxu1  ;;  %v1990_v12 = vmul.f32 %v3859_v5, %v3851_v25  ;;  %v1954_v52 = vmul.f32 1.442695, %v1944_v62  ;;  %v1945_v15 = vsub.f32 0.0, %v1937_v2  ;;  %v1940_v16 = vand.u32 2147483647, %v4945_v4  ;;  %v4984_v10 = vld [vmem:[#allocation13 + $0x20] sm:$0xff]  }
 0x4a6   : > { %v3861_v46 = vpop.eup %3860  ;;  %v4950_v51 = vadd.f32 %v1921_v41, %v1901_v11  ;;  %vm1988_vm2 = vcmp.ge.f32.partialorder %v4945_v4, 0.0 }
 0x4a7   : > { %v3467_v18 = vpop.f32.mrf.mxu1  ;;  %v1991_v45 = vmul.f32 %v3861_v46, %v3853_v7  ;;  %3866 = vpow2.f32 %v1954_v52  ;;  %v1956_v49 = vmul.f32 1.442695, %v1945_v15  ;;  %v1998_v19 = vsel %vm1982_vm10, %v3859_v5, %v1990_v12  ;;  %v4988_v12 = vld [vmem:[#allocation13 + $0x18] sm:$0xff]  }
 0x4a8   : > { %v3863_v3 = vpop.eup %3862  ;;  %v1948_v20 = vsub.f32 0.0, %v1940_v16  ;;  %v1941_v22 = vand.u32 2147483647, %v4950_v51  ;;  %v2006_v7 = vmul.f32 %v1998_v19, %v1685_v23  ;;  %v1676_v16 = vrot.slane %v4939_v47, %v4696_v26 }
 0x4a9   : > { %v1994_v21 = vmul.f32 %v3863_v3, %v3855_v59  ;;  %3868 = vpow2.f32 %v1956_v49  ;;  %v1999_v38 = vsel %vm1983_vm11, %v3861_v46, %v1991_v45  ;;  %v1680_v46 = vrot.slane %v4939_v47, %v4698_v29  ;;  %v4996_v45 = vld [vmem:[#allocation13 + $0x10] sm:$0xff]  }
 0x4aa   : > { %v1962_v9 = vmul.f32 1.442695, %v1948_v20  ;;  %v1949_v25 = vsub.f32 0.0, %v1941_v22  ;;  %v3865_v27 = vpop.eup %3864  ;;  %v2007_v59 = vmul.f32 %v1999_v38, %v1686_v33  ;;  %v1687_v20 = vadd.f32 %v1676_v16, %v4907_v53 }
 0x4ab   : > { %v2002_v31 = vsel %vm1986_vm12, %v3863_v3, %v1994_v21  ;;  %v1995_v37 = vmul.f32 %v3865_v27, %v3857_v28  ;;  %v4969_v28 = vld [vmem:[#allocation13 + $0x38] sm:$0xff]   ;;  %v1691_v22 = vadd.f32 %v1676_v16, %v4911_v58  ;;  %v1688_v47 = vadd.f32 %v1680_v46, %v4909_v57 }
 0x4ac   : > { %v4960_v32 = vmul.f32 %v2002_v31, %v1689_v24  ;;  %3870 = vpow2.f32 %v1962_v9  ;;  %v1964_v41 = vmul.f32 1.442695, %v1949_v25  ;;  %v1692_v9 = vadd.f32 %v1680_v46, %v4913_v61  ;;  %v3809_v61 = vld [vmem:[#allocation13] sm:$0xff]  }
 0x4ad   : > { %v2003_v14 = vsel %vm1987_vm13, %v3865_v27, %v1995_v37  ;;  %vm1989_vm3 = vcmp.ge.f32.partialorder %v4950_v51, 0.0 }
 0x4ae   : > { %3872 = vpow2.f32 %v1964_v41  ;;  %v2018_v34 = vpack.c.bf16 %v4960_v32, %v2006_v7  ;;  %v4966_v13 = vmul.f32 %v2003_v14, %v1690_v40 }
 0x4b0   : > { %v2019_v36 = vpack.c.bf16 %v4966_v13, %v2007_v59 }
 0x4b2   : > { %2070 = vmatprep.subr.bf16.mxu0 %v2019_v36 }
 0x4b3   : > { %2071 = vmatpush1.bf16.msra.mxu0 %v2018_v34  ;;  %v3810_v34 = vld [vmem:[#allocation14 + $0x38] sm:$0xff]  }
 0x4b4   : > { %v3867_v44 = vpop.eup %3866  ;;  %3468 = vmatprep.subr.bf16.mxu0 %v4236_v6 }
 0x4b5   : > { %v1968_v50 = vadd.f32 1.0, %v3867_v44 }
 0x4b6   : > { %v3869_v39 = vpop.eup %3868  ;;  %2903 = vmatmul.mubr.msk.bf16.vlgmr.msra.gmra.mxu0 %vm668_vm0, %v3898_v43 }
 0x4b7   : > { %3874 = vrcp.f32 %v1968_v50  ;;  %v1969_v48 = vadd.f32 1.0, %v3869_v39  ;;  %3469 = vmatpush3.bf16.msra.mxu0 %v4969_v28  ;;  %3484 = vmatprep.mubr.msk.bf16.mxu0 %vm4237_vm1, %v4236_v6  ;;  %v3812_v50 = vld [vmem:[#allocation14 + $0x28] sm:$0xff]  }
 0x4b8   : > { %3470 = vmatprep.subr.bf16.mxu0 %v4236_v6 }
 0x4b9   : > { %v3871_v60 = vpop.eup %3870  ;;  %3876 = vrcp.f32 %v1969_v48  ;;  %v3814_v48 = vld [vmem:[#allocation14 + $0x18] sm:$0xff]  }
 0x4ba   : > { %v1972_v62 = vadd.f32 1.0, %v3871_v60 }
 0x4bb   : > { %v3873_v2 = vpop.eup %3872  ;;  %3471 = vmatpush3.bf16.msra.mxu0 %v4974_v0 }
 0x4bc   : > { %3878 = vrcp.f32 %v1972_v62  ;;  %v1973_v5 = vadd.f32 1.0, %v3873_v2  ;;  %3472 = vmatprep.subr.bf16.mxu0 %v4236_v6 }
 0x4be   : > { %3880 = vrcp.f32 %v1973_v5 }
 0x4bf   : > { %3473 = vmatpush3.bf16.msra.mxu0 %v4980_v8 }
 0x4c0   : > { %3474 = vmatprep.subr.bf16.mxu0 %v4236_v6 }
 0x4c3   : > { %3475 = vmatpush3.bf16.msra.mxu0 %v4984_v10 }
 0x4c4   : > { %v3875_v11 = vpop.eup %3874  ;;  %3476 = vmatprep.subr.bf16.mxu0 %v4236_v6 }
 0x4c5   : > { %v1992_v15 = vmul.f32 %v3875_v11, %v3867_v44 }
 0x4c6   : > { %v3877_v52 = vpop.eup %3876 }
 0x4c7   : > { %v1993_v18 = vmul.f32 %v3877_v52, %v3869_v39  ;;  %3477 = vmatpush3.bf16.msra.mxu0 %v4988_v12  ;;  %v2000_v3 = vsel %vm1984_vm14, %v3875_v11, %v1992_v15  ;;  %v3813_v39 = vld [vmem:[#allocation14 + $0x20] sm:$0xff]  }
 0x4c8   : > { %3478 = vmatprep.subr.bf16.mxu0 %v4236_v6  ;;  %v2008_v25 = vmul.f32 %v2000_v3, %v1687_v20 }
 0x4c9   : > { %v3879_v49 = vpop.eup %3878  ;;  %v2001_v23 = vsel %vm1985_vm15, %v3877_v52, %v1993_v18 }
 0x4ca   : > { %v1996_v1 = vmul.f32 %v3879_v49, %v3871_v60  ;;  %v2009_v58 = vmul.f32 %v2001_v23, %v1688_v47  ;;  %v3817_v60 = vld [vmem:[#allocation14] sm:$0xff]  }
 0x4cb   : > { %v3881_v19 = vpop.eup %3880  ;;  %3479 = vmatpush3.bf16.msra.mxu0 %v4996_v45 }
 0x4cc   : > { %v2004_v24 = vsel %vm1988_vm2, %v3879_v49, %v1996_v1  ;;  %v1997_v21 = vmul.f32 %v3881_v19, %v3873_v2  ;;  %3480 = vmatprep.subr.bf16.mxu0 %v4236_v6  ;;  %v2055_v1 = vld [vmem:[#allocation16] sm:$0xf] }
 0x4cd   : > { %v5009_v27 = vmul.f32 %v2004_v24, %v1691_v22  ;;  %v2591_v20 = vrot.slane %v2055_v1, %v4678_v54  ;;  %v2595_v23 = vrot.slane %v2055_v1, %v4680_v55 }
 0x4ce   : > { %v2005_v53 = vsel %vm1989_vm3, %v3881_v19, %v1997_v21 }
 0x4cf   : > { %v5013_v56 = vmul.f32 %v2005_v53, %v1692_v9  ;;  %v2020_v57 = vpack.c.bf16 %v5009_v27, %v2008_v25  ;;  %3481 = vmatpush3.bf16.msra.mxu0 %v5006_v35 }
 0x4d0   : > { %3482 = vmatprep.subr.bf16.mxu0 %v4236_v6 }
 0x4d1   : > { %v2021_v4 = vpack.c.bf16 %v5013_v56, %v2009_v58 }
 0x4d3   : > { %2113 = vmatprep.subr.bf16.mxu1 %v2021_v4  ;;  %3483 = vmatpush3.bf16.msra.mxu0 %v3809_v61 }
 0x4d4   : > { %2114 = vmatpush1.bf16.msra.mxu1 %v2020_v57  ;;  %3508 = vmatprep.subr.bf16.mxu0 %v4236_v6 }
 0x4d5   : > { %3488 = vmatprep.subr.bf16.mxu1 %v4236_v6 }
 0x4d7   : > { %2904 = vmatmul.mubr.msk.bf16.vlgmr.msra.gmra.mxu1 %vm668_vm0, %v3898_v43  ;;  %v3815_v43 = vld [vmem:[#allocation14 + $0x10] sm:$0xff]  }
 0x4d8   : > { %3489 = vmatpush3.bf16.msra.mxu1 %v4969_v28  ;;  %3504 = vmatprep.mubr.msk.bf16.mxu1 %vm4237_vm1, %v4236_v6 }
 0x4d9   : > { %3490 = vmatprep.subr.bf16.mxu1 %v4236_v6 }
 0x4dc   : > { %3491 = vmatpush3.bf16.msra.mxu1 %v4974_v0 }
 0x4dd   : > { %3492 = vmatprep.subr.bf16.mxu1 %v4236_v6 }
 0x4e0   : > { %3493 = vmatpush3.bf16.msra.mxu1 %v4980_v8 }
 0x4e1   : > { %3494 = vmatprep.subr.bf16.mxu1 %v4236_v6 }
 0x4e4   : > { %3495 = vmatpush3.bf16.msra.mxu1 %v4984_v10 }
 0x4e5   : > { %3496 = vmatprep.subr.bf16.mxu1 %v4236_v6 }
 0x4e8   : > { %3497 = vmatpush3.bf16.msra.mxu1 %v4988_v12 }
 0x4e9   : > { %3498 = vmatprep.subr.bf16.mxu1 %v4236_v6 }
 0x4ec   : > { %3499 = vmatpush3.bf16.msra.mxu1 %v4996_v45 }
 0x4ed   : > { %3500 = vmatprep.subr.bf16.mxu1 %v4236_v6 }
 0x4f0   : > { %3501 = vmatpush3.bf16.msra.mxu1 %v5006_v35 }
 0x4f1   : > { %3502 = vmatprep.subr.bf16.mxu1 %v4236_v6 }
 0x4f4   : > { %3503 = vmatpush3.bf16.msra.mxu1 %v3809_v61 }
 0x4f5   : > { %3528 = vmatprep.subr.bf16.mxu1 %v4236_v6 }
 0x576   : > { %v2090_v51 = vpop.f32.mrf.mxu0 }
 0x578   : > { %v2092_v7 = vpop.f32.mrf.mxu0 }
 0x57a   : > { %v2094_v38 = vpop.f32.mrf.mxu0 }
 0x57b   : > { %v5039_v31 = vpack.c.bf16 %v2094_v38, %v2090_v51 }
 0x57c   : > { %v2096_v37 = vpop.f32.mrf.mxu0 }
 0x57d   : > { %v5041_v41 = vpack.c.bf16 %v2096_v37, %v2092_v7  ;;  %3485 = vmatmul.mubr.bf16.vlgmr.msra.gmra.mxu0 %v5039_v31 }
 0x57e   : > { %3509 = vmatpush3.bf16.msra.mxu0 %v4969_v28  ;;  %3524 = vmatprep.mubr.msk.bf16.mxu0 %vm4237_vm1, %v4236_v6 }
 0x57f   : > { %3505 = vmatmul.mubr.bf16.vlgmr.msra.gmra.mxu1 %v5041_v41  ;;  %3510 = vmatprep.subr.bf16.mxu0 %v4236_v6 }
 0x580   : > { %3529 = vmatpush3.bf16.msra.mxu1 %v4969_v28  ;;  %3544 = vmatprep.mubr.msk.bf16.mxu1 %vm4237_vm1, %v4236_v6  ;;  %v3811_v28 = vld [vmem:[#allocation14 + $0x30] sm:$0xff]  }
 0x581   : > { %3530 = vmatprep.subr.bf16.mxu1 %v4236_v6 }
 0x582   : > { %3511 = vmatpush3.bf16.msra.mxu0 %v4974_v0 }
 0x583   : > { %3512 = vmatprep.subr.bf16.mxu0 %v4236_v6 }
 0x584   : > { %3531 = vmatpush3.bf16.msra.mxu1 %v4974_v0  ;;  %v3816_v0 = vld [vmem:[#allocation14 + $0x8] sm:$0xff]  }
 0x585   : > { %3532 = vmatprep.subr.bf16.mxu1 %v4236_v6 }
 0x586   : > { %3513 = vmatpush3.bf16.msra.mxu0 %v4980_v8 }
 0x587   : > { %3514 = vmatprep.subr.bf16.mxu0 %v4236_v6 }
 0x588   : > { %3533 = vmatpush3.bf16.msra.mxu1 %v4980_v8 }
 0x589   : > { %3534 = vmatprep.subr.bf16.mxu1 %v4236_v6 }
 0x58a   : > { %3515 = vmatpush3.bf16.msra.mxu0 %v4984_v10 }
 0x58b   : > { %3516 = vmatprep.subr.bf16.mxu0 %v4236_v6 }
 0x58c   : > { %3535 = vmatpush3.bf16.msra.mxu1 %v4984_v10 }
 0x58d   : > { %3536 = vmatprep.subr.bf16.mxu1 %v4236_v6 }
 0x58e   : > { %3517 = vmatpush3.bf16.msra.mxu0 %v4988_v12 }
 0x58f   : > { %3518 = vmatprep.subr.bf16.mxu0 %v4236_v6 }
 0x590   : > { %3537 = vmatpush3.bf16.msra.mxu1 %v4988_v12 }
 0x591   : > { %3538 = vmatprep.subr.bf16.mxu1 %v4236_v6 }
 0x592   : > { %3519 = vmatpush3.bf16.msra.mxu0 %v4996_v45 }
 0x593   : > { %3520 = vmatprep.subr.bf16.mxu0 %v4236_v6 }
 0x594   : > { %3539 = vmatpush3.bf16.msra.mxu1 %v4996_v45 }
 0x595   : > { %3540 = vmatprep.subr.bf16.mxu1 %v4236_v6 }
 0x596   : > { %3521 = vmatpush3.bf16.msra.mxu0 %v5006_v35 }
 0x597   : > { %v2133_v33 = vpop.f32.mrf.mxu1  ;;  %3522 = vmatprep.subr.bf16.mxu0 %v4236_v6 }
 0x598   : > { %3541 = vmatpush3.bf16.msra.mxu1 %v5006_v35 }
 0x599   : > { %v2135_v40 = vpop.f32.mrf.mxu1  ;;  %3542 = vmatprep.subr.bf16.mxu1 %v4236_v6 }
 0x59a   : > { %3523 = vmatpush3.bf16.msra.mxu0 %v3809_v61 }
 0x59b   : > { %v2137_v14 = vpop.f32.mrf.mxu1  ;;  %3548 = vmatprep.subr.bf16.mxu0 %v4236_v6 }
 0x59c   : > { %v5077_v59 = vpack.c.bf16 %v2137_v14, %v2133_v33  ;;  %3543 = vmatpush3.bf16.msra.mxu1 %v3809_v61  ;;  %v2599_v14 = vrot.slane %v2055_v1, %v4696_v26 }
 0x59d   : > { %v2139_v36 = vpop.f32.mrf.mxu1  ;;  %3568 = vmatprep.subr.bf16.mxu1 %v4236_v6 }
 0x59e   : > { %v5080_v44 = vpack.c.bf16 %v2139_v36, %v2135_v40  ;;  %3525 = vmatmul.mubr.bf16.vlgmr.msra.gmra.mxu0 %v5077_v59  ;;  %v2603_v36 = vrot.slane %v2055_v1, %v4698_v29 }
 0x59f   : > { %3549 = vmatpush3.bf16.msra.mxu0 %v3810_v34  ;;  %3564 = vmatprep.mubr.msk.bf16.mxu0 %vm4237_vm1, %v4236_v6 }
 0x5a0   : > { %3545 = vmatmul.mubr.bf16.vlgmr.msra.gmra.mxu1 %v5080_v44  ;;  %3550 = vmatprep.subr.bf16.mxu0 %v4236_v6 }
 0x5a1   : > { %3569 = vmatpush3.bf16.msra.mxu1 %v3810_v34  ;;  %3584 = vmatprep.mubr.msk.bf16.mxu1 %vm4237_vm1, %v4236_v6 }
 0x5a2   : > { %3570 = vmatprep.subr.bf16.mxu1 %v4236_v6 }
 0x5a3   : > { %3551 = vmatpush3.bf16.msra.mxu0 %v3811_v28 }
 0x5a4   : > { %3552 = vmatprep.subr.bf16.mxu0 %v4236_v6 }
 0x5a5   : > { %3571 = vmatpush3.bf16.msra.mxu1 %v3811_v28 }
 0x5a6   : > { %3572 = vmatprep.subr.bf16.mxu1 %v4236_v6 }
 0x5a7   : > { %3553 = vmatpush3.bf16.msra.mxu0 %v3812_v50 }
 0x5a8   : > { %3554 = vmatprep.subr.bf16.mxu0 %v4236_v6 }
 0x5a9   : > { %3573 = vmatpush3.bf16.msra.mxu1 %v3812_v50 }
 0x5aa   : > { %3574 = vmatprep.subr.bf16.mxu1 %v4236_v6 }
 0x5ab   : > { %3555 = vmatpush3.bf16.msra.mxu0 %v3813_v39 }
 0x5ac   : > { %3556 = vmatprep.subr.bf16.mxu0 %v4236_v6 }
 0x5ad   : > { %3575 = vmatpush3.bf16.msra.mxu1 %v3813_v39 }
 0x5ae   : > { %3576 = vmatprep.subr.bf16.mxu1 %v4236_v6 }
 0x5af   : > { %3557 = vmatpush3.bf16.msra.mxu0 %v3814_v48 }
 0x5b0   : > { %3558 = vmatprep.subr.bf16.mxu0 %v4236_v6 }
 0x5b1   : > { %3577 = vmatpush3.bf16.msra.mxu1 %v3814_v48 }
 0x5b2   : > { %3578 = vmatprep.subr.bf16.mxu1 %v4236_v6 }
 0x5b3   : > { %3559 = vmatpush3.bf16.msra.mxu0 %v3815_v43 }
 0x5b4   : > { %3560 = vmatprep.subr.bf16.mxu0 %v4236_v6 }
 0x5b5   : > { %3579 = vmatpush3.bf16.msra.mxu1 %v3815_v43 }
 0x5b6   : > { %3580 = vmatprep.subr.bf16.mxu1 %v4236_v6 }
 0x5b7   : > { %3561 = vmatpush3.bf16.msra.mxu0 %v3816_v0 }
 0x5b8   : > { %3562 = vmatprep.subr.bf16.mxu0 %v4236_v6 }
 0x5b9   : > { %3581 = vmatpush3.bf16.msra.mxu1 %v3816_v0 }
 0x5ba   : > { %3582 = vmatprep.subr.bf16.mxu1 %v4236_v6 }
 0x5bb   : > { %3563 = vmatpush3.bf16.msra.mxu0 %v3817_v60 }
 0x5bc   : > { %3588 = vmatprep.subr.bf16.mxu0 %v4236_v6 }
 0x5bd   : > { %3583 = vmatpush3.bf16.msra.mxu1 %v3817_v60 }
 0x5be   : > { %3565 = vmatmul.mubr.bf16.vlgmr.msra.gmra.mxu0 %v5039_v31  ;;  %3608 = vmatprep.subr.bf16.mxu1 %v4236_v6 }
 0x5bf   : > { %3589 = vmatpush3.bf16.msra.mxu0 %v3810_v34  ;;  %3604 = vmatprep.mubr.msk.bf16.mxu0 %vm4237_vm1, %v4236_v6 }
 0x5c0   : > { %3585 = vmatmul.mubr.bf16.vlgmr.msra.gmra.mxu1 %v5041_v41  ;;  %3590 = vmatprep.subr.bf16.mxu0 %v4236_v6 }
 0x5c1   : > { %3609 = vmatpush3.bf16.msra.mxu1 %v3810_v34  ;;  %3624 = vmatprep.mubr.msk.bf16.mxu1 %vm4237_vm1, %v4236_v6 }
 0x5c2   : > { %3610 = vmatprep.subr.bf16.mxu1 %v4236_v6 }
 0x5c3   : > { %3591 = vmatpush3.bf16.msra.mxu0 %v3811_v28 }
 0x5c4   : > { %3592 = vmatprep.subr.bf16.mxu0 %v4236_v6 }
 0x5c5   : > { %3611 = vmatpush3.bf16.msra.mxu1 %v3811_v28 }
 0x5c6   : > { %3612 = vmatprep.subr.bf16.mxu1 %v4236_v6 }
 0x5c7   : > { %3593 = vmatpush3.bf16.msra.mxu0 %v3812_v50 }
 0x5c8   : > { %3594 = vmatprep.subr.bf16.mxu0 %v4236_v6 }
 0x5c9   : > { %3613 = vmatpush3.bf16.msra.mxu1 %v3812_v50  ;;  %v2038_v50 = vld [vmem:[%s5210_s11] sm:$0xf] }
 0x5ca   : > { %3614 = vmatprep.subr.bf16.mxu1 %v4236_v6 }
 0x5cb   : > { %3595 = vmatpush3.bf16.msra.mxu0 %v3813_v39 }
 0x5cc   : > { %3596 = vmatprep.subr.bf16.mxu0 %v4236_v6 }
 0x5cd   : > { %3615 = vmatpush3.bf16.msra.mxu1 %v3813_v39 }
 0x5ce   : > { %3616 = vmatprep.subr.bf16.mxu1 %v4236_v6 }
 0x5cf   : > { %3597 = vmatpush3.bf16.msra.mxu0 %v3814_v48 }
 0x5d0   : > { %3598 = vmatprep.subr.bf16.mxu0 %v4236_v6 }
 0x5d1   : > { %3617 = vmatpush3.bf16.msra.mxu1 %v3814_v48 }
 0x5d2   : > { %3618 = vmatprep.subr.bf16.mxu1 %v4236_v6 }
 0x5d3   : > { %3599 = vmatpush3.bf16.msra.mxu0 %v3815_v43 }
 0x5d4   : > { %3600 = vmatprep.subr.bf16.mxu0 %v4236_v6 }
 0x5d5   : > { %3619 = vmatpush3.bf16.msra.mxu1 %v3815_v43 }
 0x5d6   : > { %3620 = vmatprep.subr.bf16.mxu1 %v4236_v6 }
 0x5d7   : > { %3601 = vmatpush3.bf16.msra.mxu0 %v3816_v0 }
 0x5d8   : > { %3602 = vmatprep.subr.bf16.mxu0 %v4236_v6 }
 0x5d9   : > { %3621 = vmatpush3.bf16.msra.mxu1 %v3816_v0 }
 0x5da   : > { %3622 = vmatprep.subr.bf16.mxu1 %v4236_v6 }
 0x5db   : > { %3603 = vmatpush3.bf16.msra.mxu0 %v3817_v60 }
 0x5dd   : > { %3623 = vmatpush3.bf16.msra.mxu1 %v3817_v60 }
 0x5de   : > { %3605 = vmatmul.mubr.bf16.vlgmr.msra.gmra.mxu0 %v5077_v59 }
 0x5e0   : > { %3625 = vmatmul.mubr.bf16.vlgmr.msra.gmra.mxu1 %v5080_v44 }
 0x63d   : > { %v2228_v62 = vpop.f32.mrf.mxu0 }
 0x63e   : > { %v2358_v62 = vrot.slane %v2038_v50, %v4678_v54  ;;  %v2014_v54 = vmax.f32 %v4731_v30, %v4960_v32 }
 0x63f   : > { %v3486_v2 = vpop.f32.mrf.mxu0  ;;  %v2268_v5 = vpop.f32.mrf.mxu1 }
 0x641   : > { %v5127_v8 = vpop.f32.mrf.mxu0  ;;  %v3506_v10 = vpop.f32.mrf.mxu1 }
 0x643   : > { %v3487_v11 = vpop.f32.mrf.mxu0  ;;  %v5129_v12 = vpop.f32.mrf.mxu1 }
 0x645   : > { %v3507_v52 = vpop.f32.mrf.mxu1 }
 0x646   : > { %v2362_v52 = vrot.slane %v2038_v50, %v4680_v55 }
 0x65e   : > { %v2308_v15 = vpop.f32.mrf.mxu0 }
 0x660   : > { %v3526_v16 = vpop.f32.mrf.mxu0  ;;  %v2348_v46 = vpop.f32.mrf.mxu1 }
 0x662   : > { %v5131_v6 = vpop.f32.mrf.mxu0  ;;  %v3546_v18 = vpop.f32.mrf.mxu1 }
 0x664   : > { %v3527_v45 = vpop.f32.mrf.mxu0  ;;  %v5133_v49 = vpop.f32.mrf.mxu1 }
 0x665   : > { %v2375_v45 = vadd.f32 %v2358_v62, %v5127_v8 }
 0x666   : > { %v3547_v3 = vpop.f32.mrf.mxu1 }
 0x67e   : > { %v2461_v19 = vpop.f32.mrf.mxu0 }
 0x680   : > { %v3566_v22 = vpop.f32.mrf.mxu0  ;;  %v2501_v47 = vpop.f32.mrf.mxu1 }
 0x681   : > { %v2015_v47 = vmax.f32 %v4733_v63, %v4966_v13  ;;  %v2370_v63 = vrot.slane %v2038_v50, %v4698_v29  ;;  %v2017_v29 = vmax.f32 %v4782_v17, %v5013_v56 }
 0x682   : > { %v2463_v24 = vpop.f32.mrf.mxu0  ;;  %v3586_v21 = vpop.f32.mrf.mxu1 }
 0x683   : > { %v2608_v35 = vadd.f32 %v2591_v20, %v2463_v24  ;;  %v2376_v20 = vadd.f32 %v2362_v52, %v5129_v12 }
 0x684   : > { %v3567_v9 = vpop.f32.mrf.mxu0  ;;  %v2503_v25 = vpop.f32.mrf.mxu1 }
 0x685   : > { %v2612_v53 = vand.u32 2147483647, %v2608_v35  ;;  %v2609_v58 = vadd.f32 %v2595_v23, %v2503_v25  ;;  %vm2636_vm0 = vcmp.ge.f32.partialorder %v2608_v35, 0.0  ;;  %v2366_v9 = vrot.slane %v2038_v50, %v4696_v26 }
 0x686   : > { %v3587_v57 = vpop.f32.mrf.mxu1 }
 0x687   : > { %v2616_v4 = vsub.f32 0.0, %v2612_v53  ;;  %v2613_v61 = vand.u32 2147483647, %v2609_v58  ;;  %vm2637_vm1 = vcmp.ge.f32.partialorder %v2609_v58, 0.0  ;;  %v2377_v58 = vadd.f32 %v2366_v9, %v5131_v6 }
 0x689   : > { %v2620_v51 = vmul.f32 1.442695, %v2616_v4  ;;  %v2617_v7 = vsub.f32 0.0, %v2613_v61  ;;  %v2016_v61 = vmax.f32 %v4780_v42, %v5009_v27 }
 0x68b   : > { %3882 = vpow2.f32 %v2620_v51  ;;  %v2622_v38 = vmul.f32 1.442695, %v2617_v7  ;;  %v2378_v51 = vadd.f32 %v2370_v63, %v5133_v49 }
 0x68d   : > { %3884 = vpow2.f32 %v2622_v38 }
 0x698   : > { %v3883_v31 = vpop.eup %3882 }
 0x699   : > { %v2628_v37 = vadd.f32 1.0, %v3883_v31 }
 0x69a   : > { %v3885_v41 = vpop.eup %3884 }
 0x69b   : > { %3886 = vrcp.f32 %v2628_v37  ;;  %v2629_v33 = vadd.f32 1.0, %v3885_v41 }
 0x69d   : > { %3888 = vrcp.f32 %v2629_v33 }
 0x69e   : > { %v2541_v40 = vpop.f32.mrf.mxu0 }
 0x6a0   : > { %v3606_v34 = vpop.f32.mrf.mxu0  ;;  %v2581_v59 = vpop.f32.mrf.mxu1 }
 0x6a2   : > { %v2543_v44 = vpop.f32.mrf.mxu0  ;;  %v3626_v28 = vpop.f32.mrf.mxu1 }
 0x6a3   : > { %v2610_v39 = vadd.f32 %v2599_v14, %v2543_v44 }
 0x6a4   : > { %v3607_v48 = vpop.f32.mrf.mxu0  ;;  %v2583_v43 = vpop.f32.mrf.mxu1 }
 0x6a5   : > { %v2614_v0 = vand.u32 2147483647, %v2610_v39  ;;  %v2611_v60 = vadd.f32 %v2603_v36, %v2583_v43  ;;  %vm2638_vm4 = vcmp.ge.f32.partialorder %v2610_v39, 0.0 }
 0x6a6   : > { %v3627_v2 = vpop.f32.mrf.mxu1 }
 0x6a7   : > { %v2618_v5 = vsub.f32 0.0, %v2614_v0  ;;  %v2615_v10 = vand.u32 2147483647, %v2611_v60  ;;  %vm2639_vm5 = vcmp.ge.f32.partialorder %v2611_v60, 0.0 }
 0x6a8   : > { %v3887_v11 = vpop.eup %3886 }
 0x6a9   : > { %v2640_v15 = vmul.f32 %v3887_v11, %v3883_v31  ;;  %v2624_v16 = vmul.f32 1.442695, %v2618_v5  ;;  %v2619_v46 = vsub.f32 0.0, %v2615_v10 }
 0x6aa   : > { %v3889_v18 = vpop.eup %3888 }
 0x6ab   : > { %v2644_v3 = vsel %vm2636_vm0, %v3887_v11, %v2640_v15  ;;  %v2641_v1 = vmul.f32 %v3889_v18, %v3885_v41  ;;  %3890 = vpow2.f32 %v2624_v16  ;;  %v2626_v19 = vmul.f32 1.442695, %v2619_v46 }
 0x6ac   : > { %v2648_v22 = vmul.f32 %v2644_v3, %v2375_v45 }
 0x6ad   : > { %v2645_v55 = vsel %vm2637_vm1, %v3889_v18, %v2641_v1  ;;  %3892 = vpow2.f32 %v2626_v19 }
 0x6ae   : > { %v2652_v23 = vmax.f32 %v2014_v54, %v2648_v22  ;;  %v2649_v24 = vmul.f32 %v2645_v55, %v2376_v20 }
 0x6b0   : > { %v2653_v8 = vmax.f32 %v2015_v47, %v2649_v24 }
 0x6b2   : > { %v2929_v21 = vpack.c.bf16 %v2653_v8, %v2652_v23 }
 0x6b4   : > { %2672 = vst [vmem:[%s5151_s19] sm:$0xff] %v2929_v21 }
 0x6b8   : > { %v3891_v35 = vpop.eup %3890 }
 0x6b9   : > { %v2630_v30 = vadd.f32 1.0, %v3891_v35 }
 0x6ba   : > { %v3893_v32 = vpop.eup %3892 }
 0x6bb   : > { %3894 = vrcp.f32 %v2630_v30  ;;  %v2631_v12 = vadd.f32 1.0, %v3893_v32 }
 0x6bd   : > { %3896 = vrcp.f32 %v2631_v12 }
 0x6c8   : > { %v3895_v25 = vpop.eup %3894 }
 0x6c9   : > { %v2642_v13 = vmul.f32 %v3895_v25, %v3891_v35 }
 0x6ca   : > { %v3897_v53 = vpop.eup %3896 }
 0x6cb   : > { %v2646_v57 = vsel %vm2638_vm4, %v3895_v25, %v2642_v13  ;;  %v2643_v4 = vmul.f32 %v3897_v53, %v3893_v32 }
 0x6cc   : > { %v2650_v26 = vmul.f32 %v2646_v57, %v2377_v58 }
 0x6cd   : > { %v2647_v7 = vsel %vm2639_vm5, %v3897_v53, %v2643_v4 }
 0x6ce   : > { %v2654_v38 = vmax.f32 %v2016_v61, %v2650_v26  ;;  %v2651_v31 = vmul.f32 %v2647_v7, %v2378_v51 }
 0x6d0   : > { %v2655_v6 = vmax.f32 %v2017_v29, %v2651_v31 }
 0x6d2   : > { %v2930_v37 = vpack.c.bf16 %v2655_v6, %v2654_v38 }
 0x6d4   : > { %2673 = vst [vmem:[%s5151_s19 + $0x8] sm:$0xff] %v2930_v37 }
 0x6d5   : > { %4148 = shalt.err (!%p4145_p8)
}
 0x6d6   : > { %s4149_s17 = scalar_lea.hbm %s2687_s4, 256  ;;  %s4153_s12 = scalar_lea.hbm %s5254_s18, 512 }
 0x6d7   : > { %p4150_p7 = scmp.ne.s32.totalorder %s2687_s4, %s4149_s17  ;;  %p4154_p0 = scmp.lt.s32.totalorder %s2687_s4, %s5254_s18 }
 0x6d8   : > { %p4155_p2 = scmp.lt.s32.totalorder %s4153_s12, %s4149_s17 }
 0x6d9   : > { %p4151_p11 = pnand %p4150_p7, %p5255_p12 }
 0x6da   : > { %p4156_p5 = por %p4155_p2, %p4154_p0 }
 0x6db   : > { %p4152_p13 = pneg %p4151_p11 }
 0x6dd   : > { %p4157_p9 = pnand %p4156_p5, %p4152_p13 }
 0x6df   : > { %4160 = shalt.err (!%p4157_p9)
}
 0x6e0   : > { %3662 = dma.vmem_to_hbm [thread:$0]  (%p5255_p12), %s2690_s8, 256, %s2687_s4, %s2675_s25  }
 0x6e1 PF: > { %s2701_s0 = sand.u32 1, %s4207_s29   ;;  %p5256_p1 = scmp.ne.s32.totalorder %s5240_s20, 0 }
 0x6e2   : > { %p5257_p4 = scmp.ge.s32.totalorder %s4219_s16, 2  ;;  %s2702_s6 = scalar_lea.sflag [#allocation4], %s2701_s0 }
 0x6e4   : > { %p3694_p10 = pnand %p5257_p4, %p5256_p1 }
 0x6e6   : > { %p3695_p3 = pneg %p3694_p10 }
 0x6e8   : > { %4202 = dma.done.wait (%p3695_p3), %s2702_s6, 256  }
 0x6e9   : > { %4204 = vsyncadd (%p3695_p3), %s2702_s6, 4294967040  ;;  %p31_p6 = scmp.ge.s32.totalorder %s4452_s23, 4   ;;  %s5258_s29 = smov %s4211_s30 }
 0x6ea   : > { %s5259_s30 = smov %s4215_s15  ;;  %s5260_s15 = smov %s4463_s14 }
 0x6eb   : > { %s5261_s16 = smov %s4452_s23  ;;  %33 = sbr.rel (!%p31_p6) target bundleno = 18 (0x12), region = 154 }
 0x6f0   :  { %2707 = vsyncpa [#allocation3], 1 }
 0x6f1   :  { %2709 = vsyncpa [#allocation3 + $0x1], 1 }
 0x6f2   :  { %2710 = vsyncpa [#allocation6], 1 }
 0x6f3   :  { %2712 = vsyncpa [#allocation6 + $0x1], 1 }
 0x6f4   :  { %2713 = vsyncpa [#allocation9], 1 }
 0x6f5   :  { %2714 = vsyncpa [#allocation12], 1 }
 0x6f6   :  { %2715 = vsyncpa [#allocation15], 1 }
 0x6f7   :  { %2716 = vsyncpa [#allocation4], 1 }
 0x6f8   :  { %2718 = vsyncpa [#allocation4 + $0x1], 1 }

// kernel: tpu_custom_call.1
= control target key start
LH: loop header
LB: loop body
LE: loop exit
PB: predicated region body
PF: predicated region fallthrough
CT: control target
= control target key end

     0   :  { %s5199_s0 = inlined_call_operand.hbm [shape: bf16[16,16], index: 0, kind: input, shape index: {}]   ;;  %s5200_s1 = inlined_call_operand.hbm [shape: bf16[16,1024], index: 1, kind: input, shape index: {}]   ;;  %s5201_s2 = inlined_call_operand.hbm [shape: bf16[128,128], index: 2, kind: input, shape index: {}]   ;;  %s5202_s3 = inlined_call_operand.vmem [shape: f32[1,512], index: 3, kind: input, shape index: {}]   ;;  %s5203_s4 = inlined_call_operand.hbm [shape: bf16[128,128], index: 4, kind: input, shape index: {}]   ;;  %s5204_s5 = inlined_call_operand.vmem [shape: f32[1,512], index: 5, kind: input, shape index: {}]   ;;  %s5205_s6 = inlined_call_operand.hbm [shape: bf16[128,128], index: 6, kind: input, shape index: {}]   ;;  %s5206_s7 = inlined_call_operand.vmem [shape: f32[1,512], index: 7, kind: input, shape index: {}]   ;;  %s5207_s8 = inlined_call_operand.hbm [shape: bf16[128,128], index: 8, kind: input, shape index: {}]   ;;  %s5208_s9 = inlined_call_operand.vmem [shape: f32[1,512], index: 9, kind: input, shape index: {}]   ;;  %s5209_s10 = inlined_call_operand.hbm [shape: bf16[128,128], index: 10, kind: input, shape index: {}]   ;;  %s5210_s11 = inlined_call_operand.vmem [shape: f32[1,512], index: 11, kind: input, shape index: {}]   ;;  %s5211_s12 = inlined_call_operand.hbm [shape: bf16[128,128], index: 12, kind: input, shape index: {}]   ;;  %s5212_s13 = inlined_call_operand.hbm [shape: f32[1,512], index: 13, kind: input, shape index: {}]   ;;  %s5213_s14 = inlined_call_operand.hbm [shape: bf16[8,1024], index: 14, kind: output, shape index: {}]  }
   0x1   :  { %5219 = sst [smem:[#allocation25_spill]] %s5199_s0 }
   0x2   :  { %5220 = sst [smem:[#allocation26_spill]] %s5201_s2 }
   0x3   :  { %5221 = sst [smem:[#allocation27_spill]] %s5203_s4 }
   0x4   :  { %5222 = sst [smem:[#allocation28_spill]] %s5205_s6 }
   0x5   :  { %5223 = sst [smem:[#allocation29_spill]] %s5207_s8 }
   0x6   :  { %5224 = sst [smem:[#allocation30_spill]] %s5209_s10 }
   0x7   :  { %5225 = sst [smem:[#allocation31_spill]] %s5211_s12 }
   0x8   :  { %5226 = sst [smem:[#allocation32_spill]] %s5213_s14 }
   0x9   :  { %19 = vsyncpa [#allocation3], 0 }
   0xa   :  { %20 = vsyncpa [#allocation6], 0 }
   0xb   :  { %22 = vsyncpa [#allocation6 + $0x1], 0 }
   0xc   :  { %23 = vsyncpa [#allocation9], 0 }
   0xd   :  { %24 = vsyncpa [#allocation12], 0 }
   0xe   :  { %25 = vsyncpa [#allocation15], 0 }
   0xf   :  { %26 = vsyncpa [#allocation4], 0 }
  0x10   :  { %28 = vsyncpa [#allocation4 + $0x1], 0  ;;  %s4314_s29 = smov 0   ;;  %s4316_s30 = smov 0  }
  0x11   :  { %s4318_s15 = smov 0   ;;  %s4320_s16 = smov 0  }
  0x12 LB: > { %s4335_s17 = sadd.s32 4294967295, %s4219_s16   ;;  %p2838_p0 = scmp.ge.s32.totalorder %s4219_s16, 1  ;;  %s4219_s16 = sphi %s4320_s16, %s5261_s16   ;;  %s4215_s15 = sphi %s4318_s15, %s5260_s15   ;;  %s4211_s30 = sphi %s4316_s30, %s5259_s30   ;;  %s4207_s29 = sphi %s4314_s29, %s5258_s29  }
  0x13   : > { %p5215_p1 = scmp.eq.s32.totalorder %s4335_s17, 0  ;;  %p364_p2 = scmp.lt.s32.totalorder %s4219_s16, 3 }
  0x14   : > { %s4221_s19 = smov [#allocation7]   ;;  %s4222_s21 = smov [#allocation8]  }
  0x15   : > { %p4340_p3 = pnand %p2838_p0, %p364_p2  ;;  %s389_s20 = sshll.u32 %s4221_s19, 4  ;;  %s390_s20 = int_to_ptr.vmem [resolvable:$true] %s389_s20 }
  0x16   : > { %s405_s22 = sshll.u32 %s4222_s21, 4  ;;  %s4223_s24 = smov [#allocation11]   ;;  %s4353_s22 = int_to_ptr.vmem [resolvable:$true] %s405_s22 }
  0x17   : > { %s5227_s18 = scalar_select %p4340_p3, 1, 0 }
  0x18   : > { %p3664_p5 = pneg %p4340_p3  ;;  %s437_s25 = sshll.u32 %s4223_s24, 4  ;;  %s4355_s25 = int_to_ptr.vmem [resolvable:$true] %s437_s25 }
  0x19   : > { %s3910_s27 = scalar_lea.vmem %s390_s20, 1024  ;;  %p3918_p11 = scmp.lt.s32.totalorder %s390_s20, %s390_s20 }
  0x1a   : > { %p4349_p6 = pnand %p3664_p5, %p5215_p1  ;;  %p3911_p8 = scmp.ne.s32.totalorder %s390_s20, %s3910_s27 }
  0x1b   : > { %p3919_p12 = scmp.lt.s32.totalorder %s3910_s27, %s3910_s27 }
  0x1c   : > { %p4359_p7 = pneg %p4349_p6 }
  0x1d   : > { %p3920_p13 = por %p3919_p12, %p3918_p11 }
  0x1e   : > { %p3913_p9 = pnand %p3911_p8, %p4359_p7 }
  0x20   : > { %p3914_p10 = pneg %p3913_p9 }
  0x22   : > { %p3921_p0 = pnand %p3920_p13, %p3914_p10 }
  0x24   : > { %3924 = shalt.err (!%p3921_p0)
}
  0x25   : > { %s4224_s28 = smov 64   ;;  %s4225_s19 = smov 4  }
  0x26   : > { %s5230_s2 = sld [smem:[#allocation26_spill]]  ;;  %s3936_s14 = scalar_lea.vmem %s4353_s22, 1024 }
  0x27   : > { %p3937_p2 = scmp.ne.s32.totalorder %s4353_s22, %s3936_s14  ;;  %p3944_p9 = scmp.lt.s32.totalorder %s4353_s22, %s4353_s22 }
  0x28   : > { %p3945_p10 = scmp.lt.s32.totalorder %s3936_s14, %s3936_s14 }
  0x29   : > { %p3939_p5 = pnand %p3937_p2, %p4359_p7 }
  0x2a   : > { %p3946_p11 = por %p3945_p10, %p3944_p9 }
  0x2b   : > { %p3940_p8 = pneg %p3939_p5 }
  0x2c   : > { %3670 = dma.hbm_to_vmem [thread:$0]  (!%p4349_p6), %s5230_s2, 1024, %s390_s20, [#allocation6], %s4224_s28, %s4224_s28, %s4225_s19  }
  0x2d   : > { %p3947_p12 = pnand %p3946_p11, %p3940_p8 }
  0x2f   : > { %3950 = shalt.err (!%p3947_p12)
}
  0x30   : > { %s5231_s4 = sld [smem:[#allocation27_spill]]  ;;  %s3962_s20 = scalar_lea.vmem %s4355_s25, 1024 }
  0x31   : > { %p3963_p13 = scmp.ne.s32.totalorder %s4355_s25, %s3962_s20  ;;  %p3970_p5 = scmp.lt.s32.totalorder %s4355_s25, %s4355_s25 }
  0x32   : > { %p3971_p8 = scmp.lt.s32.totalorder %s3962_s20, %s3962_s20 }
  0x33   : > { %p3965_p0 = pnand %p3963_p13, %p4359_p7 }
  0x34   : > { %p3972_p9 = por %p3971_p8, %p3970_p5 }
  0x35   : > { %p3966_p2 = pneg %p3965_p0 }
  0x36   : > { %3673 = dma.hbm_to_vmem [thread:$0]  (!%p4349_p6), %s5231_s4, 1024, %s4353_s22, [#allocation9], %s4224_s28, %s4224_s28, %s4225_s19  }
  0x37   : > { %p3973_p10 = pnand %p3972_p9, %p3966_p2 }
  0x39   : > { %3976 = shalt.err (!%p3973_p10)
}
  0x3a   : > { %s5232_s8 = sld [smem:[#allocation29_spill]]  ;;  %s4226_s22 = smov [#allocation14]  }
  0x3b   : > { %s469_s27 = sshll.u32 %s4226_s22, 4  ;;  %s4227_s21 = smov [#allocation2]   ;;  %s470_s27 = int_to_ptr.vmem [resolvable:$true] %s469_s27 }
  0x3c   : > { %s376_s2 = sshll.u32 %s4227_s21, 4  ;;  %s3988_s20 = scalar_lea.vmem %s470_s27, 1024  ;;  %s377_s2 = int_to_ptr.vmem [resolvable:$true] %s376_s2 }
  0x3d   : > { %p3989_p11 = scmp.ne.s32.totalorder %s470_s27, %s3988_s20  ;;  %p3996_p0 = scmp.lt.s32.totalorder %s470_s27, %s470_s27 }
  0x3e   : > { %p3997_p2 = scmp.lt.s32.totalorder %s3988_s20, %s3988_s20 }
  0x3f   : > { %p3991_p12 = pnand %p3989_p11, %p4359_p7 }
  0x40   : > { %3679 = dma.hbm_to_vmem [thread:$0]  (!%p4349_p6), %s5232_s8, 1024, %s4355_s25, [#allocation12], %s4224_s28, %s4224_s28, %s4225_s19  }
  0x41   : > { %p3992_p13 = pneg %p3991_p12  ;;  %p3998_p5 = por %p3997_p2, %p3996_p0 }
  0x43   : > { %p3999_p8 = pnand %p3998_p5, %p3992_p13 }
  0x45   : > { %4002 = shalt.err (!%p3999_p8)
}
  0x46   : > { %s5233_s12 = sld [smem:[#allocation31_spill]]  ;;  %s4014_s24 = scalar_lea.vmem %s377_s2, 128 }
  0x47   : > { %p4015_p9 = scmp.ne.s32.totalorder %s377_s2, %s4014_s24  ;;  %p4022_p12 = scmp.lt.s32.totalorder %s377_s2, %s377_s2 }
  0x48   : > { %p4023_p0 = scmp.lt.s32.totalorder %s4014_s24, %s4014_s24 }
  0x49   : > { %p4017_p10 = pnand %p4015_p9, %p4359_p7 }
  0x4a   : > { %p4024_p13 = por %p4023_p0, %p4022_p12 }
  0x4b   : > { %p4018_p11 = pneg %p4017_p10 }
  0x4c   : > { %3685 = dma.hbm_to_vmem [thread:$0]  (!%p4349_p6), %s5233_s12, 1024, %s470_s27, [#allocation15], %s4224_s28, %s4224_s28, %s4225_s19  }
  0x4d   : > { %p4025_p2 = pnand %p4024_p13, %p4018_p11 }
  0x4f   : > { %4028 = shalt.err (!%p4025_p2)
}
  0x50   : > { %s5234_s0 = sld [smem:[#allocation25_spill]]  ;;  %s4228_s27 = smov [#allocation10]  }
  0x51   : > { %s421_s20 = sshll.u32 %s4228_s27, 4  ;;  %s4229_s25 = smov [#allocation13]   ;;  %s422_s20 = int_to_ptr.vmem [resolvable:$true] %s421_s20 }
  0x52   : > { %s453_s14 = sshll.u32 %s4229_s25, 4  ;;  %s4040_s4 = scalar_lea.vmem %s422_s20, 1024  ;;  %s454_s14 = int_to_ptr.vmem [resolvable:$true] %s453_s14 }
  0x53   : > { %p4041_p5 = scmp.ne.s32.totalorder %s422_s20, %s4040_s4  ;;  %p4048_p10 = scmp.lt.s32.totalorder %s422_s20, %s422_s20 }
  0x54   : > { %p4049_p11 = scmp.lt.s32.totalorder %s4040_s4, %s4040_s4 }
  0x55   : > { %p4043_p8 = pnand %p4041_p5, %p4359_p7 }
  0x56   : > { %3667 = dma.hbm_to_vmem [thread:$0]  (!%p4349_p6), %s5234_s0, 128, %s377_s2, [#allocation3], %s4224_s28, %s4224_s28, %s4225_s19  }
  0x57   : > { %p4044_p9 = pneg %p4043_p8  ;;  %p4050_p12 = por %p4049_p11, %p4048_p10 }
  0x59   : > { %p4051_p0 = pnand %p4050_p12, %p4044_p9 }
  0x5b   : > { %4054 = shalt.err (!%p4051_p0)
}
  0x5c   : > { %s5235_s6 = sld [smem:[#allocation28_spill]]  ;;  %s4066_s22 = scalar_lea.vmem %s454_s14, 1024 }
  0x5d   : > { %p4067_p13 = scmp.ne.s32.totalorder %s454_s14, %s4066_s22  ;;  %p4074_p8 = scmp.lt.s32.totalorder %s454_s14, %s454_s14 }
  0x5e   : > { %p4075_p10 = scmp.lt.s32.totalorder %s4066_s22, %s4066_s22 }
  0x5f   : > { %p4069_p2 = pnand %p4067_p13, %p4359_p7 }
  0x60   : > { %p4076_p9 = por %p4075_p10, %p4074_p8 }
  0x61   : > { %p4070_p5 = pneg %p4069_p2 }
  0x62   : > { %3676 = dma.hbm_to_vmem [thread:$0]  (!%p4349_p6), %s5235_s6, 1024, %s422_s20, [#allocation9], %s4224_s28, %s4224_s28, %s4225_s19  }
  0x63   : > { %p4077_p11 = pnand %p4076_p9, %p4070_p5 }
  0x65   : > { %4080 = shalt.err (!%p4077_p11)
}
  0x66   : > { %s5236_s10 = sld [smem:[#allocation30_spill]]  ;;  %s4230_s27 = smov [#allocation16]  }
  0x67   : > { %s483_s20 = sshll.u32 %s4230_s27, 4  ;;  %s484_s20 = int_to_ptr.vmem [resolvable:$true] %s483_s20 }
  0x68   : > { %s4092_s25 = scalar_lea.vmem %s484_s20, 64  ;;  %p4100_p2 = scmp.lt.s32.totalorder %s484_s20, %s484_s20 }
  0x69   : > { %p4093_p12 = scmp.ne.s32.totalorder %s484_s20, %s4092_s25  ;;  %p4101_p5 = scmp.lt.s32.totalorder %s4092_s25, %s4092_s25 }
  0x6b   : > { %p4095_p0 = pnand %p4093_p12, %p4359_p7  ;;  %p4102_p8 = por %p4101_p5, %p4100_p2 }
  0x6c   : > { %3682 = dma.hbm_to_vmem [thread:$0]  (!%p4349_p6), %s5236_s10, 1024, %s454_s14, [#allocation12], %s4224_s28, %s4224_s28, %s4225_s19  }
  0x6d   : > { %p4096_p13 = pneg %p4095_p0 }
  0x6f   : > { %p4103_p10 = pnand %p4102_p8, %p4096_p13 }
  0x71   : > { %4106 = shalt.err (!%p4103_p10)
}
  0x72   : > { %3688 = dma.hbm_to_vmem [thread:$0]  (!%p4349_p6), %s5212_s13, 64, %s484_s20, [#allocation15]  }
  0x73   : > { %s2837_s26 = sadd.s32 4294967294, %s4219_s16   ;;  %s4452_s23 = sadd.s32 1, %s4219_s16  }
  0x74   : > { %s59_s28 = ssub.s32 %s4219_s16, %s4452_s23  ;;  %s62_s19 = sadd.s32 1, %s4215_s15 }
  0x75   : > { %p60_p7 = scmp.eq.s32.totalorder %s59_s28, 0  ;;  %p69_p9 = scmp.ne.s32.totalorder %s4215_s15, %s4211_s30 }
  0x76   : > { %p70_p11 = scmp.eq.s32.totalorder %s4219_s16, 0  ;;  %p75_p12 = scmp.ne.s32.totalorder %s4211_s30, %s4207_s29 }
  0x77   : > { %s4463_s14 = scalar_select %p60_p7, %s4215_s15, %s62_s19  }
  0x78   : > { %p4465_p0 = por %p70_p11, %p69_p9  ;;  %p4471_p6 = por %p5215_p1, %p75_p12 }
  0x79   : > { %p351_p13 = scmp.eq.s32.totalorder %s4335_s17, 1  ;;  %p357_p2 = scmp.eq.s32.totalorder %s2837_s26, 1 }
  0x7a   : > { %s5238_s4 = scalar_select %p4471_p6, 1, 0 }
  0x7b   : > { %p3705_p5 = scmp.lt.s32.totalorder %s4219_s16, 2  ;;  %s494_s21 = sand.u32 1, %s4219_s16  }
  0x7c   : > { %p4478_p8 = por %p351_p13, %p69_p9  ;;  %p4482_p10 = por %p357_p2, %p75_p12 }
  0x7d   : > { %s496_s25 = sand.u32 1, %s4215_s15   ;;  %s2928_s24 = sshll.u32 %s4219_s16, 8 }
  0x7e   : > { %s5239_s27 = scalar_select %p4478_p8, 1, 0 }
  0x7f   : > { %s5240_s20 = scalar_select %p4482_p10, 1, 0 }
  0x80   : > { %s2848_s2 = sshll.u32 %s496_s25, 5  ;;  %s4491_s0 = scalar_lea.hbm %s5200_s1, %s2928_s24 }
  0x81   : > { %s498_s26 = scalar_lea.vmem [#allocation5], %s2848_s2  ;;  %p4495_p7 = pnand %p3705_p5, %p4465_p0 }
  0x82   : > { %s505_s6 = sshll.u32 %s498_s26, 4  ;;  %s4501_s25 = scalar_lea.sflag [#allocation6], %s494_s21  ;;  %s4499_s6 = int_to_ptr.vmem [resolvable:$true] %s505_s6 }
  0x83   : > { %s4107_s10 = scalar_lea.hbm %s4491_s0, 512  ;;  %p4109_p11 = pneg %p4495_p7 }
  0x84   : > { %p4108_p9 = scmp.ne.s32.totalorder %s4491_s0, %s4107_s10  ;;  %s4112_s2 = scalar_lea.hbm %s5200_s1, 1024 }
  0x85   : > { %p4113_p0 = scmp.lt.s32.totalorder %s4491_s0, %s5200_s1  ;;  %p4114_p2 = scmp.lt.s32.totalorder %s4112_s2, %s4107_s10 }
  0x86   : > { %p4110_p12 = pnand %p4109_p11, %p4108_p9 }
  0x87   : > { %p4115_p5 = por %p4114_p2, %p4113_p0 }
  0x88   : > { %p4111_p13 = pneg %p4110_p12 }
  0x8a   : > { %p4116_p4 = pnand %p4115_p5, %p4111_p13 }
  0x8c   : > { %4119 = shalt.err (!%p4116_p4)
}
  0x8d   : > { %s4120_s21 = scalar_lea.vmem %s4499_s6, 512  ;;  %s4231_s26 = smov [#allocation5]  }
  0x8e   : > { %p4121_p1 = scmp.ne.s32.totalorder %s4499_s6, %s4120_s21  ;;  %s4125_s12 = sshll.u32 %s4231_s26, 4  ;;  %s4126_s12 = int_to_ptr.vmem [resolvable:$false] %s4125_s12 }
  0x8f   : > { %s4127_s24 = scalar_lea.vmem %s4126_s12, 1024  ;;  %p4128_p12 = scmp.lt.s32.totalorder %s4499_s6, %s4126_s12 }
  0x90   : > { %p4123_p10 = pnand %p4121_p1, %p4109_p11  ;;  %p4129_p8 = scmp.lt.s32.totalorder %s4127_s24, %s4120_s21 }
  0x92   : > { %p4124_p9 = pneg %p4123_p10  ;;  %p4130_p6 = por %p4129_p8, %p4128_p12 }
  0x94   : > { %p4131_p3 = pnand %p4130_p6, %p4124_p9 }
  0x96   : > { %4134 = shalt.err (!%p4131_p3)
}
  0x97   : > { %s4232_s10 = smov 512   ;;  %s4233_s28 = smov 256  }
  0x98   : > { %s4234_s2 = smov 16   ;;  %p5242_p1 = scmp.ne.s32.totalorder %s5227_s18, 0 }
  0x99   : > { %3692 = dma.hbm_to_vmem [thread:$0]  (!%p4495_p7), %s4491_s0, 512, %s4499_s6, %s4501_s25, %s4232_s10, %s4233_s28, %s4234_s2  }
  0x9a   : > { %517 = sbr.rel (%p5242_p1) target bundleno = 1761 (0x6e1), region = 76  ;;  %p5243_p4 = scmp.eq.s32.totalorder (!%p5242_p1), %s4335_s17, 0 }
  0x9f   : > { %4178 = dma.done.wait (%p5243_p4), [#allocation3], 128   ;;  %p5244_p10 = pmov %p5243_p4 }
  0xa0   : > { %s523_s12 = sand.u32 1, %s4335_s17   ;;  %s4530_s22 = sand.u32 1, %s4211_s30  }
  0xa1   : > { %4180 = vsyncadd (%p5244_p10), [#allocation3], 4294967168  ;;  %s2853_s19 = sshll.u32 %s4530_s22, 5  ;;  %s524_s21 = scalar_lea.sflag [#allocation6], %s523_s12 }
  0xa2   : > { %s527_s8 = scalar_lea.vmem [#allocation5], %s2853_s19  ;;  %p5245_p3 = scmp.ne.s32.totalorder %s5238_s4, 0 }
  0xa4   : > { %4182 = dma.done.wait (%p5245_p3), %s524_s21, 512  }
  0xa5   : > { %4184 = vsyncadd (%p5245_p3), %s524_s21, 4294966784  ;;  %p5246_p6 = pmov %p5243_p4 }
  0xa6   : > { %p5247_p8 = pmov %p5243_p4 }
  0xa7   : > { %4186 = dma.done.wait (%p5246_p6), [#allocation6], 1024  }
  0xa8   : > { %4188 = vsyncadd (%p5247_p8), [#allocation6], 4294966272  ;;  %p5248_p7 = pmov %p5243_p4 }
  0xa9   : > { %p5249_p11 = pmov %p5243_p4 }
  0xaa   : > { %4190 = dma.done.wait (%p5248_p7), [#allocation9], 2048  }
  0xab   : > { %4192 = vsyncadd (%p5249_p11), [#allocation9], 4294965248  ;;  %p5250_p13 = pmov %p5243_p4 }
  0xac   : > { %p5251_p0 = pmov %p5243_p4 }
  0xad   : > { %4194 = dma.done.wait (%p5250_p13), [#allocation12], 2048  }
  0xae   : > { %4196 = vsyncadd (%p5251_p0), [#allocation12], 4294965248  ;;  %p5252_p2 = pmov %p5251_p0 }
  0xaf   : > { %p5253_p5 = pmov %p5251_p0 }
  0xb0   : > { %4198 = dma.done.wait (%p5252_p2), [#allocation15], 1088  }
  0xb1   : > { %4200 = vsyncadd (%p5253_p5), [#allocation15], 4294966208  ;;  %v4235_v0 = vmov 0   ;;  %v3763_v1 = vld [vmem:[%s527_s8 + $0x4] ss:$16 sps:$4 sm:$0xff]   ;;  %v4555_v3 = vld [vmem:[#allocation2] sm:$0xff]   ;;  %v975_v51 = vlaneseq }
  0xb2   : > { %704 = vmatprep.mubr.bf16.mxu0 %v4235_v0  ;;  %747 = vmatprep.mubr.bf16.mxu1 %v4235_v0  ;;  %v3765_v2 = vld [vmem:[%s527_s8] ss:$16 sps:$4 sm:$0xff]   ;;  %vm668_vm0 = vcmask 130048   ;;  %v3767_v4 = vld [vmem:[%s527_s8 + $0xc] ss:$16 sps:$4 sm:$0xff]   ;;  %v4236_v6 = vmov 0.0  }
  0xb3   : > { %686 = vmatprep.subr.bf16.mxu0 %v3763_v1  ;;  %v3769_v5 = vld [vmem:[%s527_s8 + $0x8] ss:$16 sps:$4 sm:$0xff]   ;;  %729 = vmatprep.subr.bf16.mxu1 %v3767_v4  ;;  %v3771_v8 = vld [vmem:[#allocation7 + $0x30] sm:$0xff]   ;;  %v3773_v10 = vld [vmem:[#allocation7 + $0x20] sm:$0xff]   ;;  %vm4237_vm1 = vmmov 0   ;;  %v976_v52 = vshrl.u32 %v975_v51, 7 }
  0xb4   : > { %687 = vmatpush1.bf16.msra.mxu0 %v3765_v2  ;;  %v3770_v7 = vld [vmem:[#allocation7 + $0x38] sm:$0xff]   ;;  %730 = vmatpush1.bf16.msra.mxu1 %v3769_v5  ;;  %v3772_v9 = vld [vmem:[#allocation7 + $0x28] sm:$0xff]   ;;  %v3775_v12 = vld [vmem:[#allocation7 + $0x10] sm:$0xff]   ;;  %s2861_s12 = sshll.u32 %s4530_s22, 4  ;;  %s2931_s21 = sshll.u32 %s4335_s17, 8 }
  0xb5   : > { %3148 = vmatprep.subr.bf16.mxu0 %v4236_v6  ;;  %3168 = vmatprep.subr.bf16.mxu1 %v4236_v6  ;;  %v3774_v11 = vld [vmem:[#allocation7 + $0x18] sm:$0xff]   ;;  %v3776_v13 = vld [vmem:[#allocation7 + $0x8] sm:$0xff]   ;;  %v3777_v14 = vld [vmem:[#allocation7] sm:$0xff]   ;;  %v4678_v54 = vsub.s32 0, %v976_v52  ;;  %v4680_v55 = vsub.s32 1, %v976_v52  ;;  %s5151_s19 = scalar_lea.vmem [#allocation17], %s2861_s12 }
  0xb6   : > { %v3778_v25 = vld [vmem:[#allocation8 + $0x38] sm:$0xff]   ;;  %v3779_v28 = vld [vmem:[#allocation8 + $0x30] sm:$0xff]   ;;  %v3780_v29 = vld [vmem:[#allocation8 + $0x28] sm:$0xff]   ;;  %s2689_s8 = sshll.u32 %s5151_s19, 4  ;;  %s5254_s18 = sld [smem:[#allocation32_spill]]  ;;  %s2690_s8 = int_to_ptr.vmem [resolvable:$true] %s2689_s8 }
  0xb7   : > { %2867 = vmatmul.mubr.msk.bf16.vlgmr.msra.gmra.mxu0 %vm668_vm0, %v4555_v3  ;;  %2868 = vmatmul.mubr.msk.bf16.vlgmr.msra.gmra.mxu1 %vm668_vm0, %v4555_v3  ;;  %v3781_v30 = vld [vmem:[#allocation8 + $0x20] sm:$0xff]   ;;  %v3782_v31 = vld [vmem:[#allocation8 + $0x18] sm:$0xff]   ;;  %v3783_v32 = vld [vmem:[#allocation8 + $0x10] sm:$0xff]   ;;  %s2675_s25 = scalar_lea.sflag [#allocation4], %s4530_s22  ;;  %s4135_s26 = scalar_lea.vmem %s2690_s8, 256 }
  0xb8   : > { %3149 = vmatpush3.bf16.msra.mxu0 %v3770_v7  ;;  %3169 = vmatpush3.bf16.msra.mxu1 %v3770_v7  ;;  %v3784_v33 = vld [vmem:[#allocation8 + $0x8] sm:$0xff]   ;;  %v3785_v34 = vld [vmem:[#allocation8] sm:$0xff]   ;;  %v642_v53 = vld [vmem:[%s5204_s5] sm:$0xf]  ;;  %p4136_p9 = scmp.ne.s32.totalorder %s2690_s8, %s4135_s26  ;;  %p5255_p12 = scmp.ne.s32.totalorder %s5239_s27, 0 }
  0xb9   : > { %3150 = vmatprep.subr.bf16.mxu0 %v4236_v6  ;;  %3170 = vmatprep.subr.bf16.mxu1 %v4236_v6  ;;  %v1219_v56 = vrot.slane %v642_v53, %v4678_v54  ;;  %v1223_v57 = vrot.slane %v642_v53, %v4680_v55  ;;  %s4238_s24 = smov [#allocation17]  }
  0xba   : > { %3164 = vmatprep.mubr.msk.bf16.mxu0 %vm4237_vm1, %v4236_v6  ;;  %3184 = vmatprep.mubr.msk.bf16.mxu1 %vm4237_vm1, %v4236_v6  ;;  %p4137_p1 = pnand %p4136_p9, %p5255_p12  ;;  %s4139_s10 = sshll.u32 %s4238_s24, 4  ;;  %s4140_s10 = int_to_ptr.vmem [resolvable:$false] %s4139_s10 }
  0xbb   : > { %s4141_s28 = scalar_lea.vmem %s4140_s10, 512  ;;  %p4142_p10 = scmp.lt.s32.totalorder %s2690_s8, %s4140_s10 }
  0xbc   : > { %3151 = vmatpush3.bf16.msra.mxu0 %v3771_v8  ;;  %3171 = vmatpush3.bf16.msra.mxu1 %v3771_v8  ;;  %s2687_s4 = scalar_lea.hbm %s5254_s18, %s2931_s21  ;;  %p4138_p4 = pneg %p4137_p1 }
  0xbd   : > { %3152 = vmatprep.subr.bf16.mxu0 %v4236_v6  ;;  %3172 = vmatprep.subr.bf16.mxu1 %v4236_v6  ;;  %p4143_p3 = scmp.lt.s32.totalorder %s4141_s28, %s4135_s26 }
  0xbf   : > { %p4144_p6 = por %p4143_p3, %p4142_p10 }
  0xc0   : > { %3153 = vmatpush3.bf16.msra.mxu0 %v3772_v9  ;;  %3173 = vmatpush3.bf16.msra.mxu1 %v3772_v9 }
  0xc1   : > { %3154 = vmatprep.subr.bf16.mxu0 %v4236_v6  ;;  %3174 = vmatprep.subr.bf16.mxu1 %v4236_v6  ;;  %p4145_p8 = pnand %p4144_p6, %p4138_p4 }
  0xc4   : > { %3155 = vmatpush3.bf16.msra.mxu0 %v3773_v10  ;;  %3175 = vmatpush3.bf16.msra.mxu1 %v3773_v10 }
  0xc5   : > { %3156 = vmatprep.subr.bf16.mxu0 %v4236_v6  ;;  %3176 = vmatprep.subr.bf16.mxu1 %v4236_v6 }
  0xc8   : > { %3157 = vmatpush3.bf16.msra.mxu0 %v3774_v11  ;;  %3177 = vmatpush3.bf16.msra.mxu1 %v3774_v11 }
  0xc9   : > { %3158 = vmatprep.subr.bf16.mxu0 %v4236_v6  ;;  %3178 = vmatprep.subr.bf16.mxu1 %v4236_v6 }
  0xcc   : > { %3159 = vmatpush3.bf16.msra.mxu0 %v3775_v12  ;;  %3179 = vmatpush3.bf16.msra.mxu1 %v3775_v12 }
  0xcd   : > { %3160 = vmatprep.subr.bf16.mxu0 %v4236_v6  ;;  %3180 = vmatprep.subr.bf16.mxu1 %v4236_v6 }
  0xd0   : > { %3161 = vmatpush3.bf16.msra.mxu0 %v3776_v13  ;;  %3181 = vmatpush3.bf16.msra.mxu1 %v3776_v13 }
  0xd1   : > { %3162 = vmatprep.subr.bf16.mxu0 %v4236_v6  ;;  %3182 = vmatprep.subr.bf16.mxu1 %v4236_v6 }
  0xd4   : > { %3163 = vmatpush3.bf16.msra.mxu0 %v3777_v14  ;;  %3183 = vmatpush3.bf16.msra.mxu1 %v3777_v14 }
  0xd5   : > { %3188 = vmatprep.subr.bf16.mxu0 %v4236_v6  ;;  %3208 = vmatprep.subr.bf16.mxu1 %v4236_v6 }
 0x177   : > { %v706_v15 = vpop.f32.mrf.mxu0  ;;  %v749_v21 = vpop.f32.mrf.mxu1 }
 0x179   : > { %v708_v16 = vpop.f32.mrf.mxu0  ;;  %v751_v22 = vpop.f32.mrf.mxu1 }
 0x17b   : > { %v710_v17 = vpop.f32.mrf.mxu0  ;;  %v753_v23 = vpop.f32.mrf.mxu1 }
 0x17c   : > { %v4583_v18 = vpack.c.bf16 %v710_v17, %v706_v15  ;;  %v4607_v26 = vpack.c.bf16 %v753_v23, %v749_v21 }
 0x17d   : > { %v712_v19 = vpop.f32.mrf.mxu0  ;;  %v755_v24 = vpop.f32.mrf.mxu1 }
 0x17e   : > { %v4585_v20 = vpack.c.bf16 %v712_v19, %v708_v16  ;;  %3165 = vmatmul.mubr.bf16.vlgmr.msra.gmra.mxu0 %v4583_v18  ;;  %v4610_v27 = vpack.c.bf16 %v755_v24, %v751_v22 }
 0x17f   : > { %3189 = vmatpush3.bf16.msra.mxu0 %v3770_v7  ;;  %3204 = vmatprep.mubr.msk.bf16.mxu0 %vm4237_vm1, %v4236_v6 }
 0x180   : > { %3185 = vmatmul.mubr.bf16.vlgmr.msra.gmra.mxu1 %v4585_v20  ;;  %3190 = vmatprep.subr.bf16.mxu0 %v4236_v6 }
 0x181   : > { %3209 = vmatpush3.bf16.msra.mxu1 %v3770_v7  ;;  %3224 = vmatprep.mubr.msk.bf16.mxu1 %vm4237_vm1, %v4236_v6 }
 0x182   : > { %3210 = vmatprep.subr.bf16.mxu1 %v4236_v6 }
 0x183   : > { %3191 = vmatpush3.bf16.msra.mxu0 %v3771_v8 }
 0x184   : > { %3192 = vmatprep.subr.bf16.mxu0 %v4236_v6 }
 0x185   : > { %3211 = vmatpush3.bf16.msra.mxu1 %v3771_v8 }
 0x186   : > { %3212 = vmatprep.subr.bf16.mxu1 %v4236_v6 }
 0x187   : > { %3193 = vmatpush3.bf16.msra.mxu0 %v3772_v9 }
 0x188   : > { %3194 = vmatprep.subr.bf16.mxu0 %v4236_v6 }
 0x189   : > { %3213 = vmatpush3.bf16.msra.mxu1 %v3772_v9 }
 0x18a   : > { %3214 = vmatprep.subr.bf16.mxu1 %v4236_v6 }
 0x18b   : > { %3195 = vmatpush3.bf16.msra.mxu0 %v3773_v10 }
 0x18c   : > { %3196 = vmatprep.subr.bf16.mxu0 %v4236_v6 }
 0x18d   : > { %3215 = vmatpush3.bf16.msra.mxu1 %v3773_v10 }
 0x18e   : > { %3216 = vmatprep.subr.bf16.mxu1 %v4236_v6 }
 0x18f   : > { %3197 = vmatpush3.bf16.msra.mxu0 %v3774_v11 }
 0x190   : > { %3198 = vmatprep.subr.bf16.mxu0 %v4236_v6 }
 0x191   : > { %3217 = vmatpush3.bf16.msra.mxu1 %v3774_v11 }
 0x192   : > { %3218 = vmatprep.subr.bf16.mxu1 %v4236_v6 }
 0x193   : > { %3199 = vmatpush3.bf16.msra.mxu0 %v3775_v12 }
 0x194   : > { %3200 = vmatprep.subr.bf16.mxu0 %v4236_v6 }
 0x195   : > { %3219 = vmatpush3.bf16.msra.mxu1 %v3775_v12 }
 0x196   : > { %3220 = vmatprep.subr.bf16.mxu1 %v4236_v6 }
 0x197   : > { %3201 = vmatpush3.bf16.msra.mxu0 %v3776_v13 }
 0x198   : > { %3202 = vmatprep.subr.bf16.mxu0 %v4236_v6 }
 0x199   : > { %3221 = vmatpush3.bf16.msra.mxu1 %v3776_v13 }
 0x19a   : > { %3222 = vmatprep.subr.bf16.mxu1 %v4236_v6 }
 0x19b   : > { %3203 = vmatpush3.bf16.msra.mxu0 %v3777_v14 }
 0x19c   : > { %3228 = vmatprep.subr.bf16.mxu0 %v4236_v6 }
 0x19d   : > { %3223 = vmatpush3.bf16.msra.mxu1 %v3777_v14 }
 0x19e   : > { %3205 = vmatmul.mubr.bf16.vlgmr.msra.gmra.mxu0 %v4607_v26  ;;  %3248 = vmatprep.subr.bf16.mxu1 %v4236_v6 }
 0x19f   : > { %3229 = vmatpush3.bf16.msra.mxu0 %v3778_v25  ;;  %3244 = vmatprep.mubr.msk.bf16.mxu0 %vm4237_vm1, %v4236_v6 }
 0x1a0   : > { %3225 = vmatmul.mubr.bf16.vlgmr.msra.gmra.mxu1 %v4610_v27  ;;  %3230 = vmatprep.subr.bf16.mxu0 %v4236_v6 }
 0x1a1   : > { %3249 = vmatpush3.bf16.msra.mxu1 %v3778_v25  ;;  %3264 = vmatprep.mubr.msk.bf16.mxu1 %vm4237_vm1, %v4236_v6 }
 0x1a2   : > { %3250 = vmatprep.subr.bf16.mxu1 %v4236_v6 }
 0x1a3   : > { %3231 = vmatpush3.bf16.msra.mxu0 %v3779_v28 }
 0x1a4   : > { %3232 = vmatprep.subr.bf16.mxu0 %v4236_v6 }
 0x1a5   : > { %3251 = vmatpush3.bf16.msra.mxu1 %v3779_v28 }
 0x1a6   : > { %3252 = vmatprep.subr.bf16.mxu1 %v4236_v6 }
 0x1a7   : > { %3233 = vmatpush3.bf16.msra.mxu0 %v3780_v29 }
 0x1a8   : > { %3234 = vmatprep.subr.bf16.mxu0 %v4236_v6 }
 0x1a9   : > { %3253 = vmatpush3.bf16.msra.mxu1 %v3780_v29 }
 0x1aa   : > { %3254 = vmatprep.subr.bf16.mxu1 %v4236_v6 }
 0x1ab   : > { %3235 = vmatpush3.bf16.msra.mxu0 %v3781_v30 }
 0x1ac   : > { %3236 = vmatprep.subr.bf16.mxu0 %v4236_v6 }
 0x1ad   : > { %3255 = vmatpush3.bf16.msra.mxu1 %v3781_v30 }
 0x1ae   : > { %3256 = vmatprep.subr.bf16.mxu1 %v4236_v6 }
 0x1af   : > { %3237 = vmatpush3.bf16.msra.mxu0 %v3782_v31 }
 0x1b0   : > { %3238 = vmatprep.subr.bf16.mxu0 %v4236_v6 }
 0x1b1   : > { %3257 = vmatpush3.bf16.msra.mxu1 %v3782_v31 }
 0x1b2   : > { %3258 = vmatprep.subr.bf16.mxu1 %v4236_v6 }
 0x1b3   : > { %3239 = vmatpush3.bf16.msra.mxu0 %v3783_v32 }
 0x1b4   : > { %3240 = vmatprep.subr.bf16.mxu0 %v4236_v6 }
 0x1b5   : > { %3259 = vmatpush3.bf16.msra.mxu1 %v3783_v32 }
 0x1b6   : > { %3260 = vmatprep.subr.bf16.mxu1 %v4236_v6 }
 0x1b7   : > { %3241 = vmatpush3.bf16.msra.mxu0 %v3784_v33 }
 0x1b8   : > { %3242 = vmatprep.subr.bf16.mxu0 %v4236_v6 }
 0x1b9   : > { %3261 = vmatpush3.bf16.msra.mxu1 %v3784_v33 }
 0x1ba   : > { %3262 = vmatprep.subr.bf16.mxu1 %v4236_v6 }
 0x1bb   : > { %3243 = vmatpush3.bf16.msra.mxu0 %v3785_v34 }
 0x1bc   : > { %3268 = vmatprep.subr.bf16.mxu0 %v4236_v6 }
 0x1bd   : > { %3263 = vmatpush3.bf16.msra.mxu1 %v3785_v34 }
 0x1be   : > { %3245 = vmatmul.mubr.bf16.vlgmr.msra.gmra.mxu0 %v4583_v18  ;;  %3288 = vmatprep.subr.bf16.mxu1 %v4236_v6 }
 0x1bf   : > { %3269 = vmatpush3.bf16.msra.mxu0 %v3778_v25  ;;  %3284 = vmatprep.mubr.msk.bf16.mxu0 %vm4237_vm1, %v4236_v6 }
 0x1c0   : > { %3265 = vmatmul.mubr.bf16.vlgmr.msra.gmra.mxu1 %v4585_v20  ;;  %3270 = vmatprep.subr.bf16.mxu0 %v4236_v6 }
 0x1c1   : > { %3289 = vmatpush3.bf16.msra.mxu1 %v3778_v25  ;;  %3304 = vmatprep.mubr.msk.bf16.mxu1 %vm4237_vm1, %v4236_v6 }
 0x1c2   : > { %3290 = vmatprep.subr.bf16.mxu1 %v4236_v6 }
 0x1c3   : > { %3271 = vmatpush3.bf16.msra.mxu0 %v3779_v28 }
 0x1c4   : > { %3272 = vmatprep.subr.bf16.mxu0 %v4236_v6 }
 0x1c5   : > { %3291 = vmatpush3.bf16.msra.mxu1 %v3779_v28 }
 0x1c6   : > { %3292 = vmatprep.subr.bf16.mxu1 %v4236_v6 }
 0x1c7   : > { %3273 = vmatpush3.bf16.msra.mxu0 %v3780_v29 }
 0x1c8   : > { %3274 = vmatprep.subr.bf16.mxu0 %v4236_v6 }
 0x1c9   : > { %3293 = vmatpush3.bf16.msra.mxu1 %v3780_v29  ;;  %v4698_v29 = vsub.s32 3, %v976_v52 }
 0x1ca   : > { %3294 = vmatprep.subr.bf16.mxu1 %v4236_v6 }
 0x1cb   : > { %3275 = vmatpush3.bf16.msra.mxu0 %v3781_v30 }
 0x1cc   : > { %3276 = vmatprep.subr.bf16.mxu0 %v4236_v6 }
 0x1cd   : > { %3295 = vmatpush3.bf16.msra.mxu1 %v3781_v30 }
 0x1ce   : > { %3296 = vmatprep.subr.bf16.mxu1 %v4236_v6 }
 0x1cf   : > { %3277 = vmatpush3.bf16.msra.mxu0 %v3782_v31 }
 0x1d0   : > { %3278 = vmatprep.subr.bf16.mxu0 %v4236_v6 }
 0x1d1   : > { %3297 = vmatpush3.bf16.msra.mxu1 %v3782_v31 }
 0x1d2   : > { %3298 = vmatprep.subr.bf16.mxu1 %v4236_v6 }
 0x1d3   : > { %3279 = vmatpush3.bf16.msra.mxu0 %v3783_v32 }
 0x1d4   : > { %3280 = vmatprep.subr.bf16.mxu0 %v4236_v6 }
 0x1d5   : > { %3299 = vmatpush3.bf16.msra.mxu1 %v3783_v32  ;;  %v1231_v32 = vrot.slane %v642_v53, %v4698_v29 }
 0x1d6   : > { %3300 = vmatprep.subr.bf16.mxu1 %v4236_v6 }
 0x1d7   : > { %3281 = vmatpush3.bf16.msra.mxu0 %v3784_v33 }
 0x1d8   : > { %3282 = vmatprep.subr.bf16.mxu0 %v4236_v6 }
 0x1d9   : > { %3301 = vmatpush3.bf16.msra.mxu1 %v3784_v33 }
 0x1da   : > { %3302 = vmatprep.subr.bf16.mxu1 %v4236_v6 }
 0x1db   : > { %3283 = vmatpush3.bf16.msra.mxu0 %v3785_v34 }
 0x1dd   : > { %3303 = vmatpush3.bf16.msra.mxu1 %v3785_v34 }
 0x1de   : > { %3285 = vmatmul.mubr.bf16.vlgmr.msra.gmra.mxu0 %v4607_v26  ;;  %v4696_v26 = vsub.s32 2, %v976_v52  ;;  %v4713_v52 = vld [vmem:[%s5202_s3] sm:$0xf] }
 0x1df   : > { %1394 = vmatprep.mubr.bf16.mxu0 %v4235_v0 }
 0x1e0   : > { %3305 = vmatmul.mubr.bf16.vlgmr.msra.gmra.mxu1 %v4610_v27  ;;  %v1227_v30 = vrot.slane %v642_v53, %v4696_v26 }
 0x1e1   : > { %1437 = vmatprep.mubr.bf16.mxu1 %v4235_v0 }
 0x23e   : > { %v4659_v35 = vpop.f32.mrf.mxu0 }
 0x240   : > { %v3166_v36 = vpop.f32.mrf.mxu0  ;;  %v4661_v37 = vpop.f32.mrf.mxu1 }
 0x242   : > { %v4663_v38 = vpop.f32.mrf.mxu0  ;;  %v3186_v39 = vpop.f32.mrf.mxu1 }
 0x244   : > { %v3167_v40 = vpop.f32.mrf.mxu0  ;;  %v4665_v41 = vpop.f32.mrf.mxu1 }
 0x246   : > { %v3187_v42 = vpop.f32.mrf.mxu1 }
 0x25e   : > { %v4667_v43 = vpop.f32.mrf.mxu0 }
 0x260   : > { %v3206_v44 = vpop.f32.mrf.mxu0  ;;  %v4669_v45 = vpop.f32.mrf.mxu1 }
 0x262   : > { %v4671_v46 = vpop.f32.mrf.mxu0  ;;  %v3226_v47 = vpop.f32.mrf.mxu1 }
 0x264   : > { %v3207_v48 = vpop.f32.mrf.mxu0  ;;  %v4673_v49 = vpop.f32.mrf.mxu1 }
 0x266   : > { %v3227_v50 = vpop.f32.mrf.mxu1 }
 0x27e   : > { %v1085_v58 = vpop.f32.mrf.mxu0 }
 0x27f   : > { %v4684_v59 = vadd.f32 %v1219_v56, %v1085_v58 }
 0x280   : > { %v3246_v60 = vpop.f32.mrf.mxu0  ;;  %v1126_v61 = vpop.f32.mrf.mxu1 }
 0x281   : > { %v1244_v62 = vand.u32 2147483647, %v4684_v59  ;;  %v4687_v63 = vadd.f32 %v1223_v57, %v1126_v61  ;;  %vm1292_vm3 = vcmp.ge.f32.partialorder %v4684_v59, 0.0 }
 0x282   : > { %v1088_v1 = vpop.f32.mrf.mxu0  ;;  %v3266_v2 = vpop.f32.mrf.mxu1 }
 0x283   : > { %v1252_v4 = vsub.f32 0.0, %v1244_v62  ;;  %v1245_v5 = vand.u32 2147483647, %v4687_v63  ;;  %v4690_v7 = vadd.f32 %v1219_v56, %v1088_v1  ;;  %vm1293_vm4 = vcmp.ge.f32.partialorder %v4687_v63, 0.0 }
 0x284   : > { %v3247_v8 = vpop.f32.mrf.mxu0  ;;  %v1129_v9 = vpop.f32.mrf.mxu1 }
 0x285   : > { %v1260_v10 = vmul.f32 1.442695, %v1252_v4  ;;  %v1253_v11 = vsub.f32 0.0, %v1245_v5  ;;  %v1248_v12 = vand.u32 2147483647, %v4690_v7  ;;  %v4693_v13 = vadd.f32 %v1223_v57, %v1129_v9 }
 0x286   : > { %v3267_v14 = vpop.f32.mrf.mxu1  ;;  %v978_v8 = vrot.slane %v4713_v52, %v4678_v54  ;;  %vm1296_vm2 = vcmp.ge.f32.partialorder %v4690_v7, 0.0 }
 0x287   : > { %3818 = vpow2.f32 %v1260_v10  ;;  %v1262_v15 = vmul.f32 1.442695, %v1253_v11  ;;  %v1256_v16 = vsub.f32 0.0, %v1248_v12  ;;  %v1249_v17 = vand.u32 2147483647, %v4693_v13 }
 0x288   : > { %v982_v12 = vrot.slane %v4713_v52, %v4680_v55  ;;  %vm1297_vm5 = vcmp.ge.f32.partialorder %v4693_v13, 0.0  ;;  %v995_v7 = vadd.f32 %v978_v8, %v4659_v35 }
 0x289   : > { %3820 = vpow2.f32 %v1262_v15  ;;  %v1268_v18 = vmul.f32 1.442695, %v1256_v16  ;;  %v1257_v19 = vsub.f32 0.0, %v1249_v17 }
 0x28b   : > { %3822 = vpow2.f32 %v1268_v18  ;;  %v1270_v20 = vmul.f32 1.442695, %v1257_v19  ;;  %v999_v19 = vadd.f32 %v978_v8, %v4663_v38 }
 0x28d   : > { %3824 = vpow2.f32 %v1270_v20 }
 0x294   : > { %v3819_v21 = vpop.eup %3818 }
 0x295   : > { %v1276_v22 = vadd.f32 1.0, %v3819_v21 }
 0x296   : > { %v3821_v23 = vpop.eup %3820 }
 0x297   : > { %v1277_v24 = vadd.f32 1.0, %v3821_v23  ;;  %3826 = vrcp.f32 %v1276_v22 }
 0x298   : > { %v3823_v25 = vpop.eup %3822 }
 0x299   : > { %3828 = vrcp.f32 %v1277_v24  ;;  %v1280_v27 = vadd.f32 1.0, %v3823_v25 }
 0x29a   : > { %v3825_v28 = vpop.eup %3824 }
 0x29b   : > { %3830 = vrcp.f32 %v1280_v27  ;;  %v1281_v31 = vadd.f32 1.0, %v3825_v28 }
 0x29d   : > { %3832 = vrcp.f32 %v1281_v31 }
 0x29e   : > { %v1167_v33 = vpop.f32.mrf.mxu0 }
 0x29f   : > { %v4702_v34 = vadd.f32 %v1227_v30, %v1167_v33 }
 0x2a0   : > { %v3286_v36 = vpop.f32.mrf.mxu0  ;;  %v1208_v39 = vpop.f32.mrf.mxu1 }
 0x2a1   : > { %v1246_v40 = vand.u32 2147483647, %v4702_v34  ;;  %v4705_v42 = vadd.f32 %v1231_v32, %v1208_v39  ;;  %v4743_v36 = vld [vmem:[#allocation10 + $0x30] sm:$0xff]   ;;  %vm1294_vm8 = vcmp.ge.f32.partialorder %v4702_v34, 0.0 }
 0x2a2   : > { %v1170_v44 = vpop.f32.mrf.mxu0  ;;  %v3306_v47 = vpop.f32.mrf.mxu1 }
 0x2a3   : > { %v1254_v48 = vsub.f32 0.0, %v1246_v40  ;;  %v1247_v50 = vand.u32 2147483647, %v4705_v42  ;;  %v4708_v51 = vadd.f32 %v1227_v30, %v1170_v44  ;;  %vm1295_vm6 = vcmp.ge.f32.partialorder %v4705_v42, 0.0 }
 0x2a4   : > { %v3287_v53 = vpop.f32.mrf.mxu0  ;;  %v1211_v56 = vpop.f32.mrf.mxu1 }
 0x2a5   : > { %v3827_v57 = vpop.eup %3826  ;;  %v1264_v58 = vmul.f32 1.442695, %v1254_v48  ;;  %v1255_v60 = vsub.f32 0.0, %v1247_v50  ;;  %v1250_v61 = vand.u32 2147483647, %v4708_v51  ;;  %v4716_v1 = vadd.f32 %v1231_v32, %v1211_v56  ;;  %v4749_v48 = vld [vmem:[#allocation10 + $0x28] sm:$0xff]  }
 0x2a6   : > { %v3829_v62 = vpop.eup %3828  ;;  %v3307_v2 = vpop.f32.mrf.mxu1  ;;  %v1300_v14 = vmul.f32 %v3827_v57, %v3819_v21  ;;  %v996_v21 = vadd.f32 %v982_v12, %v4661_v37  ;;  %v4753_v50 = vld [vmem:[#allocation10 + $0x20] sm:$0xff]   ;;  %v4757_v53 = vld [vmem:[#allocation10 + $0x18] sm:$0xff]   ;;  %vm1298_vm7 = vcmp.ge.f32.partialorder %v4708_v51, 0.0 }
 0x2a7   : > { %3834 = vpow2.f32 %v1264_v58  ;;  %v1266_v4 = vmul.f32 1.442695, %v1255_v60  ;;  %v1301_v9 = vmul.f32 %v3829_v62, %v3821_v23  ;;  %v1258_v10 = vsub.f32 0.0, %v1250_v61  ;;  %v4761_v60 = vld [vmem:[#allocation10 + $0x10] sm:$0xff]  }
 0x2a8   : > { %v3831_v5 = vpop.eup %3830  ;;  %v1251_v11 = vand.u32 2147483647, %v4716_v1  ;;  %v1308_v27 = vsel %vm1292_vm3, %v3827_v57, %v1300_v14  ;;  %v990_v2 = vrot.slane %v4713_v52, %v4698_v29  ;;  %v4773_v14 = vld [vmem:[#allocation10 + $0x8] sm:$0xff]   ;;  %vm1299_vm9 = vcmp.ge.f32.partialorder %v4716_v1, 0.0 }
 0x2a9   : > { %v1304_v15 = vmul.f32 %v3831_v5, %v3823_v25  ;;  %3836 = vpow2.f32 %v1266_v4  ;;  %v1272_v16 = vmul.f32 1.442695, %v1258_v10  ;;  %v1309_v22 = vsel %vm1293_vm4, %v3829_v62, %v1301_v9 }
 0x2aa   : > { %v1259_v17 = vsub.f32 0.0, %v1251_v11  ;;  %v3833_v18 = vpop.eup %3832  ;;  %v1000_v25 = vadd.f32 %v982_v12, %v4665_v41  ;;  %v1317_v59 = vmul.f32 %v1309_v22, %v996_v21  ;;  %v1316_v31 = vmul.f32 %v1308_v27, %v995_v7  ;;  %v4737_v41 = vld [vmem:[#allocation10 + $0x38] sm:$0xff]  }
 0x2ab   : > { %v1312_v20 = vsel %vm1296_vm2, %v3831_v5, %v1304_v15  ;;  %v1305_v23 = vmul.f32 %v3833_v18, %v3825_v28  ;;  %3838 = vpow2.f32 %v1272_v16  ;;  %v986_v62 = vrot.slane %v4713_v52, %v4696_v26  ;;  %v3794_v27 = vld [vmem:[#allocation11 + $0x38] sm:$0xff]  }
 0x2ac   : > { %v1274_v24 = vmul.f32 1.442695, %v1259_v17  ;;  %v4731_v30 = vmul.f32 %v1312_v20, %v999_v19  ;;  %v998_v52 = vadd.f32 %v990_v2, %v4669_v45  ;;  %v1002_v15 = vadd.f32 %v990_v2, %v4673_v49  ;;  %v1361_v2 = vld [vmem:[%s5208_s9] sm:$0xf] }
 0x2ad   : > { %v1313_v38 = vsel %vm1297_vm5, %v3833_v18, %v1305_v23  ;;  %v1001_v9 = vadd.f32 %v986_v62, %v4671_v46  ;;  %v997_v46 = vadd.f32 %v986_v62, %v4667_v43 }
 0x2ae   : > { %3840 = vpow2.f32 %v1274_v24  ;;  %v4733_v63 = vmul.f32 %v1313_v38, %v1000_v25  ;;  %v1324_v32 = vpack.c.bf16 %v4731_v30, %v1316_v31  ;;  %v3795_v31 = vld [vmem:[#allocation11 + $0x30] sm:$0xff]  }
 0x2b0   : > { %v1325_v28 = vpack.c.bf16 %v4733_v63, %v1317_v59 }
 0x2b2   : > { %1376 = vmatprep.subr.bf16.mxu0 %v1325_v28  ;;  %v3796_v28 = vld [vmem:[#allocation11 + $0x28] sm:$0xff]  }
 0x2b3   : > { %1377 = vmatpush1.bf16.msra.mxu0 %v1324_v32  ;;  %v3797_v32 = vld [vmem:[#allocation11 + $0x20] sm:$0xff]  }
 0x2b4   : > { %v3835_v37 = vpop.eup %3834  ;;  %3308 = vmatprep.subr.bf16.mxu0 %v4236_v6 }
 0x2b5   : > { %v1278_v13 = vadd.f32 1.0, %v3835_v37 }
 0x2b6   : > { %v3837_v35 = vpop.eup %3836  ;;  %2885 = vmatmul.mubr.msk.bf16.vlgmr.msra.gmra.mxu0 %vm668_vm0, %v4555_v3 }
 0x2b7   : > { %v1279_v33 = vadd.f32 1.0, %v3837_v35  ;;  %3842 = vrcp.f32 %v1278_v13  ;;  %3309 = vmatpush3.bf16.msra.mxu0 %v4737_v41  ;;  %3324 = vmatprep.mubr.msk.bf16.mxu0 %vm4237_vm1, %v4236_v6  ;;  %v3800_v13 = vld [vmem:[#allocation11 + $0x8] sm:$0xff]  }
 0x2b8   : > { %v3839_v39 = vpop.eup %3838  ;;  %3310 = vmatprep.subr.bf16.mxu0 %v4236_v6 }
 0x2b9   : > { %3844 = vrcp.f32 %v1279_v33  ;;  %v1282_v40 = vadd.f32 1.0, %v3839_v39 }
 0x2bb   : > { %v3841_v44 = vpop.eup %3840  ;;  %3846 = vrcp.f32 %v1282_v40  ;;  %3311 = vmatpush3.bf16.msra.mxu0 %v4743_v36 }
 0x2bc   : > { %v1283_v47 = vadd.f32 1.0, %v3841_v44  ;;  %3312 = vmatprep.subr.bf16.mxu0 %v4236_v6 }
 0x2be   : > { %3848 = vrcp.f32 %v1283_v47 }
 0x2bf   : > { %3313 = vmatpush3.bf16.msra.mxu0 %v4749_v48 }
 0x2c0   : > { %3314 = vmatprep.subr.bf16.mxu0 %v4236_v6 }
 0x2c3   : > { %3315 = vmatpush3.bf16.msra.mxu0 %v4753_v50 }
 0x2c4   : > { %v3843_v56 = vpop.eup %3842  ;;  %3316 = vmatprep.subr.bf16.mxu0 %v4236_v6 }
 0x2c5   : > { %v1302_v4 = vmul.f32 %v3843_v56, %v3835_v37  ;;  %v3798_v37 = vld [vmem:[#allocation11 + $0x18] sm:$0xff]  }
 0x2c6   : > { %v3845_v57 = vpop.eup %3844 }
 0x2c7   : > { %v1303_v58 = vmul.f32 %v3845_v57, %v3837_v35  ;;  %3317 = vmatpush3.bf16.msra.mxu0 %v4757_v53  ;;  %v1310_v16 = vsel %vm1294_vm8, %v3843_v56, %v1302_v4  ;;  %v3801_v35 = vld [vmem:[#allocation11] sm:$0xff]   ;;  %v1909_v4 = vrot.slane %v1361_v2, %v4678_v54 }
 0x2c8   : > { %v3847_v61 = vpop.eup %3846  ;;  %3318 = vmatprep.subr.bf16.mxu0 %v4236_v6  ;;  %v1318_v18 = vmul.f32 %v1310_v16, %v997_v46 }
 0x2c9   : > { %v1306_v5 = vmul.f32 %v3847_v61, %v3839_v39  ;;  %v1311_v10 = vsel %vm1295_vm6, %v3845_v57, %v1303_v58 }
 0x2ca   : > { %v1319_v51 = vmul.f32 %v1311_v10, %v998_v52 }
 0x2cb   : > { %v3849_v8 = vpop.eup %3848  ;;  %v1314_v11 = vsel %vm1298_vm7, %v3847_v61, %v1306_v5  ;;  %3319 = vmatpush3.bf16.msra.mxu0 %v4761_v60  ;;  %v1913_v5 = vrot.slane %v1361_v2, %v4680_v55 }
 0x2cc   : > { %v1307_v12 = vmul.f32 %v3849_v8, %v3841_v44  ;;  %3320 = vmatprep.subr.bf16.mxu0 %v4236_v6  ;;  %v4780_v42 = vmul.f32 %v1314_v11, %v1001_v9 }
 0x2ce   : > { %v1315_v34 = vsel %vm1299_vm9, %v3849_v8, %v1307_v12  ;;  %v1326_v49 = vpack.c.bf16 %v4780_v42, %v1318_v18 }
 0x2cf   : > { %v4782_v17 = vmul.f32 %v1315_v34, %v1002_v15  ;;  %3321 = vmatpush3.bf16.msra.mxu0 %v4773_v14 }
 0x2d0   : > { %3322 = vmatprep.subr.bf16.mxu0 %v4236_v6 }
 0x2d1   : > { %v1327_v45 = vpack.c.bf16 %v4782_v17, %v1319_v51 }
 0x2d3   : > { %1419 = vmatprep.subr.bf16.mxu1 %v1327_v45 }
 0x2d4   : > { %1420 = vmatpush1.bf16.msra.mxu1 %v1326_v49 }
 0x2d5   : > { %3328 = vmatprep.subr.bf16.mxu1 %v4236_v6 }
 0x2d7   : > { %2886 = vmatmul.mubr.msk.bf16.vlgmr.msra.gmra.mxu1 %vm668_vm0, %v4555_v3  ;;  %v3793_v3 = vld [vmem:[#allocation10] sm:$0xff]  }
 0x2d8   : > { %3329 = vmatpush3.bf16.msra.mxu1 %v4737_v41  ;;  %3344 = vmatprep.mubr.msk.bf16.mxu1 %vm4237_vm1, %v4236_v6 }
 0x2d9   : > { %3330 = vmatprep.subr.bf16.mxu1 %v4236_v6  ;;  %3323 = vmatpush3.bf16.msra.mxu0 %v3793_v3 }
 0x2da   : > { %3348 = vmatprep.subr.bf16.mxu0 %v4236_v6 }
 0x2dc   : > { %3331 = vmatpush3.bf16.msra.mxu1 %v4743_v36 }
 0x2dd   : > { %3332 = vmatprep.subr.bf16.mxu1 %v4236_v6 }
 0x2e0   : > { %3333 = vmatpush3.bf16.msra.mxu1 %v4749_v48 }
 0x2e1   : > { %3334 = vmatprep.subr.bf16.mxu1 %v4236_v6 }
 0x2e4   : > { %3335 = vmatpush3.bf16.msra.mxu1 %v4753_v50 }
 0x2e5   : > { %3336 = vmatprep.subr.bf16.mxu1 %v4236_v6 }
 0x2e8   : > { %3337 = vmatpush3.bf16.msra.mxu1 %v4757_v53 }
 0x2e9   : > { %3338 = vmatprep.subr.bf16.mxu1 %v4236_v6 }
 0x2ec   : > { %3339 = vmatpush3.bf16.msra.mxu1 %v4761_v60 }
 0x2ed   : > { %3340 = vmatprep.subr.bf16.mxu1 %v4236_v6 }
 0x2f0   : > { %3341 = vmatpush3.bf16.msra.mxu1 %v4773_v14 }
 0x2f1   : > { %3342 = vmatprep.subr.bf16.mxu1 %v4236_v6 }
 0x2f4   : > { %3343 = vmatpush3.bf16.msra.mxu1 %v3793_v3 }
 0x2f5   : > { %3368 = vmatprep.subr.bf16.mxu1 %v4236_v6 }
 0x376   : > { %v1396_v43 = vpop.f32.mrf.mxu0 }
 0x378   : > { %v1398_v1 = vpop.f32.mrf.mxu0 }
 0x37a   : > { %v1400_v19 = vpop.f32.mrf.mxu0 }
 0x37b   : > { %v4809_v20 = vpack.c.bf16 %v1400_v19, %v1396_v43 }
 0x37c   : > { %v1402_v22 = vpop.f32.mrf.mxu0 }
 0x37d   : > { %v4811_v23 = vpack.c.bf16 %v1402_v22, %v1398_v1  ;;  %3325 = vmatmul.mubr.bf16.vlgmr.msra.gmra.mxu0 %v4809_v20 }
 0x37e   : > { %3349 = vmatpush3.bf16.msra.mxu0 %v4737_v41  ;;  %3364 = vmatprep.mubr.msk.bf16.mxu0 %vm4237_vm1, %v4236_v6 }
 0x37f   : > { %3345 = vmatmul.mubr.bf16.vlgmr.msra.gmra.mxu1 %v4811_v23  ;;  %3350 = vmatprep.subr.bf16.mxu0 %v4236_v6 }
 0x380   : > { %3369 = vmatpush3.bf16.msra.mxu1 %v4737_v41  ;;  %3384 = vmatprep.mubr.msk.bf16.mxu1 %vm4237_vm1, %v4236_v6  ;;  %v3799_v41 = vld [vmem:[#allocation11 + $0x10] sm:$0xff]  }
 0x381   : > { %3370 = vmatprep.subr.bf16.mxu1 %v4236_v6 }
 0x382   : > { %3351 = vmatpush3.bf16.msra.mxu0 %v4743_v36 }
 0x383   : > { %3352 = vmatprep.subr.bf16.mxu0 %v4236_v6 }
 0x384   : > { %3371 = vmatpush3.bf16.msra.mxu1 %v4743_v36 }
 0x385   : > { %3372 = vmatprep.subr.bf16.mxu1 %v4236_v6 }
 0x386   : > { %3353 = vmatpush3.bf16.msra.mxu0 %v4749_v48 }
 0x387   : > { %3354 = vmatprep.subr.bf16.mxu0 %v4236_v6 }
 0x388   : > { %3373 = vmatpush3.bf16.msra.mxu1 %v4749_v48 }
 0x389   : > { %3374 = vmatprep.subr.bf16.mxu1 %v4236_v6 }
 0x38a   : > { %3355 = vmatpush3.bf16.msra.mxu0 %v4753_v50 }
 0x38b   : > { %3356 = vmatprep.subr.bf16.mxu0 %v4236_v6 }
 0x38c   : > { %3375 = vmatpush3.bf16.msra.mxu1 %v4753_v50 }
 0x38d   : > { %3376 = vmatprep.subr.bf16.mxu1 %v4236_v6 }
 0x38e   : > { %3357 = vmatpush3.bf16.msra.mxu0 %v4757_v53 }
 0x38f   : > { %3358 = vmatprep.subr.bf16.mxu0 %v4236_v6 }
 0x390   : > { %3377 = vmatpush3.bf16.msra.mxu1 %v4757_v53 }
 0x391   : > { %3378 = vmatprep.subr.bf16.mxu1 %v4236_v6 }
 0x392   : > { %3359 = vmatpush3.bf16.msra.mxu0 %v4761_v60 }
 0x393   : > { %3360 = vmatprep.subr.bf16.mxu0 %v4236_v6 }
 0x394   : > { %3379 = vmatpush3.bf16.msra.mxu1 %v4761_v60 }
 0x395   : > { %3380 = vmatprep.subr.bf16.mxu1 %v4236_v6 }
 0x396   : > { %3361 = vmatpush3.bf16.msra.mxu0 %v4773_v14 }
 0x397   : > { %v1439_v24 = vpop.f32.mrf.mxu1  ;;  %3362 = vmatprep.subr.bf16.mxu0 %v4236_v6 }
 0x398   : > { %3381 = vmatpush3.bf16.msra.mxu1 %v4773_v14 }
 0x399   : > { %v1441_v21 = vpop.f32.mrf.mxu1  ;;  %3382 = vmatprep.subr.bf16.mxu1 %v4236_v6 }
 0x39a   : > { %3363 = vmatpush3.bf16.msra.mxu0 %v3793_v3 }
 0x39b   : > { %v1443_v25 = vpop.f32.mrf.mxu1  ;;  %3388 = vmatprep.subr.bf16.mxu0 %v4236_v6 }
 0x39c   : > { %v4847_v7 = vpack.c.bf16 %v1443_v25, %v1439_v24  ;;  %3383 = vmatpush3.bf16.msra.mxu1 %v3793_v3 }
 0x39d   : > { %v1445_v38 = vpop.f32.mrf.mxu1  ;;  %3408 = vmatprep.subr.bf16.mxu1 %v4236_v6 }
 0x39e   : > { %v4850_v59 = vpack.c.bf16 %v1445_v38, %v1441_v21  ;;  %3365 = vmatmul.mubr.bf16.vlgmr.msra.gmra.mxu0 %v4847_v7 }
 0x39f   : > { %3389 = vmatpush3.bf16.msra.mxu0 %v3794_v27  ;;  %3404 = vmatprep.mubr.msk.bf16.mxu0 %vm4237_vm1, %v4236_v6 }
 0x3a0   : > { %3385 = vmatmul.mubr.bf16.vlgmr.msra.gmra.mxu1 %v4850_v59  ;;  %3390 = vmatprep.subr.bf16.mxu0 %v4236_v6 }
 0x3a1   : > { %3409 = vmatpush3.bf16.msra.mxu1 %v3794_v27  ;;  %3424 = vmatprep.mubr.msk.bf16.mxu1 %vm4237_vm1, %v4236_v6 }
 0x3a2   : > { %3410 = vmatprep.subr.bf16.mxu1 %v4236_v6 }
 0x3a3   : > { %3391 = vmatpush3.bf16.msra.mxu0 %v3795_v31 }
 0x3a4   : > { %3392 = vmatprep.subr.bf16.mxu0 %v4236_v6 }
 0x3a5   : > { %3411 = vmatpush3.bf16.msra.mxu1 %v3795_v31 }
 0x3a6   : > { %3412 = vmatprep.subr.bf16.mxu1 %v4236_v6 }
 0x3a7   : > { %3393 = vmatpush3.bf16.msra.mxu0 %v3796_v28 }
 0x3a8   : > { %3394 = vmatprep.subr.bf16.mxu0 %v4236_v6 }
 0x3a9   : > { %3413 = vmatpush3.bf16.msra.mxu1 %v3796_v28 }
 0x3aa   : > { %3414 = vmatprep.subr.bf16.mxu1 %v4236_v6 }
 0x3ab   : > { %3395 = vmatpush3.bf16.msra.mxu0 %v3797_v32 }
 0x3ac   : > { %3396 = vmatprep.subr.bf16.mxu0 %v4236_v6 }
 0x3ad   : > { %3415 = vmatpush3.bf16.msra.mxu1 %v3797_v32 }
 0x3ae   : > { %3416 = vmatprep.subr.bf16.mxu1 %v4236_v6 }
 0x3af   : > { %3397 = vmatpush3.bf16.msra.mxu0 %v3798_v37 }
 0x3b0   : > { %3398 = vmatprep.subr.bf16.mxu0 %v4236_v6 }
 0x3b1   : > { %3417 = vmatpush3.bf16.msra.mxu1 %v3798_v37 }
 0x3b2   : > { %3418 = vmatprep.subr.bf16.mxu1 %v4236_v6 }
 0x3b3   : > { %3399 = vmatpush3.bf16.msra.mxu0 %v3799_v41 }
 0x3b4   : > { %3400 = vmatprep.subr.bf16.mxu0 %v4236_v6 }
 0x3b5   : > { %3419 = vmatpush3.bf16.msra.mxu1 %v3799_v41 }
 0x3b6   : > { %3420 = vmatprep.subr.bf16.mxu1 %v4236_v6 }
 0x3b7   : > { %3401 = vmatpush3.bf16.msra.mxu0 %v3800_v13 }
 0x3b8   : > { %3402 = vmatprep.subr.bf16.mxu0 %v4236_v6 }
 0x3b9   : > { %3421 = vmatpush3.bf16.msra.mxu1 %v3800_v13 }
 0x3ba   : > { %3422 = vmatprep.subr.bf16.mxu1 %v4236_v6 }
 0x3bb   : > { %3403 = vmatpush3.bf16.msra.mxu0 %v3801_v35 }
 0x3bc   : > { %3428 = vmatprep.subr.bf16.mxu0 %v4236_v6 }
 0x3bd   : > { %3423 = vmatpush3.bf16.msra.mxu1 %v3801_v35 }
 0x3be   : > { %3405 = vmatmul.mubr.bf16.vlgmr.msra.gmra.mxu0 %v4809_v20  ;;  %3448 = vmatprep.subr.bf16.mxu1 %v4236_v6 }
 0x3bf   : > { %3429 = vmatpush3.bf16.msra.mxu0 %v3794_v27  ;;  %3444 = vmatprep.mubr.msk.bf16.mxu0 %vm4237_vm1, %v4236_v6 }
 0x3c0   : > { %3425 = vmatmul.mubr.bf16.vlgmr.msra.gmra.mxu1 %v4811_v23  ;;  %3430 = vmatprep.subr.bf16.mxu0 %v4236_v6 }
 0x3c1   : > { %3449 = vmatpush3.bf16.msra.mxu1 %v3794_v27  ;;  %3464 = vmatprep.mubr.msk.bf16.mxu1 %vm4237_vm1, %v4236_v6 }
 0x3c2   : > { %3450 = vmatprep.subr.bf16.mxu1 %v4236_v6 }
 0x3c3   : > { %3431 = vmatpush3.bf16.msra.mxu0 %v3795_v31 }
 0x3c4   : > { %3432 = vmatprep.subr.bf16.mxu0 %v4236_v6 }
 0x3c5   : > { %3451 = vmatpush3.bf16.msra.mxu1 %v3795_v31 }
 0x3c6   : > { %3452 = vmatprep.subr.bf16.mxu1 %v4236_v6 }
 0x3c7   : > { %3433 = vmatpush3.bf16.msra.mxu0 %v3796_v28 }
 0x3c8   : > { %3434 = vmatprep.subr.bf16.mxu0 %v4236_v6 }
 0x3c9   : > { %3453 = vmatpush3.bf16.msra.mxu1 %v3796_v28 }
 0x3ca   : > { %3454 = vmatprep.subr.bf16.mxu1 %v4236_v6 }
 0x3cb   : > { %3435 = vmatpush3.bf16.msra.mxu0 %v3797_v32 }
 0x3cc   : > { %3436 = vmatprep.subr.bf16.mxu0 %v4236_v6 }
 0x3cd   : > { %3455 = vmatpush3.bf16.msra.mxu1 %v3797_v32  ;;  %v1917_v32 = vrot.slane %v1361_v2, %v4696_v26 }
 0x3ce   : > { %3456 = vmatprep.subr.bf16.mxu1 %v4236_v6 }
 0x3cf   : > { %3437 = vmatpush3.bf16.msra.mxu0 %v3798_v37 }
 0x3d0   : > { %3438 = vmatprep.subr.bf16.mxu0 %v4236_v6 }
 0x3d1   : > { %3457 = vmatpush3.bf16.msra.mxu1 %v3798_v37 }
 0x3d2   : > { %3458 = vmatprep.subr.bf16.mxu1 %v4236_v6 }
 0x3d3   : > { %3439 = vmatpush3.bf16.msra.mxu0 %v3799_v41 }
 0x3d4   : > { %3440 = vmatprep.subr.bf16.mxu0 %v4236_v6 }
 0x3d5   : > { %3459 = vmatpush3.bf16.msra.mxu1 %v3799_v41  ;;  %v1921_v41 = vrot.slane %v1361_v2, %v4698_v29 }
 0x3d6   : > { %3460 = vmatprep.subr.bf16.mxu1 %v4236_v6 }
 0x3d7   : > { %3441 = vmatpush3.bf16.msra.mxu0 %v3800_v13 }
 0x3d8   : > { %3442 = vmatprep.subr.bf16.mxu0 %v4236_v6 }
 0x3d9   : > { %3461 = vmatpush3.bf16.msra.mxu1 %v3800_v13 }
 0x3da   : > { %3462 = vmatprep.subr.bf16.mxu1 %v4236_v6 }
 0x3db   : > { %3443 = vmatpush3.bf16.msra.mxu0 %v3801_v35 }
 0x3dd   : > { %3463 = vmatpush3.bf16.msra.mxu1 %v3801_v35 }
 0x3de   : > { %3445 = vmatmul.mubr.bf16.vlgmr.msra.gmra.mxu0 %v4847_v7 }
 0x3df   : > { %2088 = vmatprep.mubr.bf16.mxu0 %v4235_v0 }
 0x3e0   : > { %3465 = vmatmul.mubr.bf16.vlgmr.msra.gmra.mxu1 %v4850_v59 }
 0x3e1   : > { %2131 = vmatprep.mubr.bf16.mxu1 %v4235_v0 }
 0x43d   : > { %v4899_v33 = vpop.f32.mrf.mxu0 }
 0x43f   : > { %v3326_v36 = vpop.f32.mrf.mxu0  ;;  %v4901_v39 = vpop.f32.mrf.mxu1 }
 0x441   : > { %v4903_v40 = vpop.f32.mrf.mxu0  ;;  %v3346_v44 = vpop.f32.mrf.mxu1 }
 0x443   : > { %v3327_v47 = vpop.f32.mrf.mxu0  ;;  %v4905_v48 = vpop.f32.mrf.mxu1 }
 0x444   : > { %v4939_v47 = vld [vmem:[%s5206_s7] sm:$0xf] }
 0x445   : > { %v3347_v50 = vpop.f32.mrf.mxu1 }
 0x45e   : > { %v4907_v53 = vpop.f32.mrf.mxu0 }
 0x460   : > { %v3366_v56 = vpop.f32.mrf.mxu0  ;;  %v4909_v57 = vpop.f32.mrf.mxu1 }
 0x462   : > { %v4911_v58 = vpop.f32.mrf.mxu0  ;;  %v3386_v0 = vpop.f32.mrf.mxu1 }
 0x464   : > { %v3367_v60 = vpop.f32.mrf.mxu0  ;;  %v4913_v61 = vpop.f32.mrf.mxu1 }
 0x466   : > { %v3387_v62 = vpop.f32.mrf.mxu1 }
 0x47e   : > { %v1775_v8 = vpop.f32.mrf.mxu0 }
 0x47f   : > { %v4920_v9 = vadd.f32 %v1909_v4, %v1775_v8  ;;  %v1668_v8 = vrot.slane %v4939_v47, %v4678_v54 }
 0x480   : > { %v3406_v10 = vpop.f32.mrf.mxu0  ;;  %v1816_v11 = vpop.f32.mrf.mxu1 }
 0x481   : > { %v1934_v12 = vand.u32 2147483647, %v4920_v9  ;;  %v4923_v14 = vadd.f32 %v1913_v5, %v1816_v11  ;;  %vm1982_vm10 = vcmp.ge.f32.partialorder %v4920_v9, 0.0 }
 0x482   : > { %v1778_v52 = vpop.f32.mrf.mxu0  ;;  %v3426_v15 = vpop.f32.mrf.mxu1 }
 0x483   : > { %v1942_v16 = vsub.f32 0.0, %v1934_v12  ;;  %v1935_v46 = vand.u32 2147483647, %v4923_v14  ;;  %v4926_v34 = vadd.f32 %v1909_v4, %v1778_v52  ;;  %vm1983_vm11 = vcmp.ge.f32.partialorder %v4923_v14, 0.0 }
 0x484   : > { %v3407_v51 = vpop.f32.mrf.mxu0  ;;  %v1819_v18 = vpop.f32.mrf.mxu1 }
 0x485   : > { %v1950_v45 = vmul.f32 1.442695, %v1942_v16  ;;  %v1943_v49 = vsub.f32 0.0, %v1935_v46  ;;  %v1938_v3 = vand.u32 2147483647, %v4926_v34  ;;  %v4929_v43 = vadd.f32 %v1913_v5, %v1819_v18 }
 0x486   : > { %v3427_v1 = vpop.f32.mrf.mxu1  ;;  %vm1986_vm12 = vcmp.ge.f32.partialorder %v4926_v34, 0.0 }
 0x487   : > { %3850 = vpow2.f32 %v1950_v45  ;;  %v1952_v19 = vmul.f32 1.442695, %v1943_v49  ;;  %v1946_v20 = vsub.f32 0.0, %v1938_v3  ;;  %v1939_v22 = vand.u32 2147483647, %v4929_v43 }
 0x488   : > { %v1672_v1 = vrot.slane %v4939_v47, %v4680_v55  ;;  %vm1987_vm13 = vcmp.ge.f32.partialorder %v4929_v43, 0.0  ;;  %v3898_v43 = vld [vmem:[#allocation2] sm:$0xff]  }
 0x489   : > { %3852 = vpow2.f32 %v1952_v19  ;;  %v1958_v23 = vmul.f32 1.442695, %v1946_v20  ;;  %v1947_v24 = vsub.f32 0.0, %v1939_v22 }
 0x48b   : > { %3854 = vpow2.f32 %v1958_v23  ;;  %v1960_v21 = vmul.f32 1.442695, %v1947_v24  ;;  %v1685_v23 = vadd.f32 %v1668_v8, %v4899_v33  ;;  %v1689_v24 = vadd.f32 %v1668_v8, %v4903_v40  ;;  %v4980_v8 = vld [vmem:[#allocation13 + $0x28] sm:$0xff]  }
 0x48c   : > { %v1686_v33 = vadd.f32 %v1672_v1, %v4901_v39  ;;  %v1690_v40 = vadd.f32 %v1672_v1, %v4905_v48 }
 0x48d   : > { %3856 = vpow2.f32 %v1960_v21 }
 0x494   : > { %v3851_v25 = vpop.eup %3850 }
 0x495   : > { %v1966_v27 = vadd.f32 1.0, %v3851_v25 }
 0x496   : > { %v3853_v7 = vpop.eup %3852 }
 0x497   : > { %3858 = vrcp.f32 %v1966_v27  ;;  %v1967_v38 = vadd.f32 1.0, %v3853_v7 }
 0x498   : > { %v3855_v59 = vpop.eup %3854 }
 0x499   : > { %3860 = vrcp.f32 %v1967_v38  ;;  %v1970_v31 = vadd.f32 1.0, %v3855_v59 }
 0x49a   : > { %v3857_v28 = vpop.eup %3856 }
 0x49b   : > { %3862 = vrcp.f32 %v1970_v31  ;;  %v1971_v37 = vadd.f32 1.0, %v3857_v28 }
 0x49d   : > { %3864 = vrcp.f32 %v1971_v37 }
 0x49e   : > { %v1857_v13 = vpop.f32.mrf.mxu0 }
 0x49f   : > { %v4934_v35 = vadd.f32 %v1917_v32, %v1857_v13 }
 0x4a0   : > { %v3446_v36 = vpop.f32.mrf.mxu0  ;;  %v1898_v44 = vpop.f32.mrf.mxu1 }
 0x4a1   : > { %v1936_v50 = vand.u32 2147483647, %v4934_v35  ;;  %v4942_v56 = vadd.f32 %v1921_v41, %v1898_v44  ;;  %vm1984_vm14 = vcmp.ge.f32.partialorder %v4934_v35, 0.0  ;;  %v5006_v35 = vld [vmem:[#allocation13 + $0x8] sm:$0xff]  }
 0x4a2   : > { %v1860_v0 = vpop.f32.mrf.mxu0  ;;  %v3466_v60 = vpop.f32.mrf.mxu1 }
 0x4a3   : > { %v1944_v62 = vsub.f32 0.0, %v1936_v50  ;;  %v1937_v2 = vand.u32 2147483647, %v4942_v56  ;;  %v4945_v4 = vadd.f32 %v1917_v32, %v1860_v0  ;;  %v4974_v0 = vld [vmem:[#allocation13 + $0x30] sm:$0xff]   ;;  %vm1985_vm15 = vcmp.ge.f32.partialorder %v4942_v56, 0.0 }
 0x4a4   : > { %v3859_v5 = vpop.eup %3858  ;;  %v3447_v10 = vpop.f32.mrf.mxu0 }
 0x4a5   : > { %v1901_v11 = vpop.f32.mrf.mxu1  ;;  %v1990_v12 = vmul.f32 %v3859_v5, %v3851_v25  ;;  %v1954_v52 = vmul.f32 1.442695, %v1944_v62  ;;  %v1945_v15 = vsub.f32 0.0, %v1937_v2  ;;  %v1940_v16 = vand.u32 2147483647, %v4945_v4  ;;  %v4984_v10 = vld [vmem:[#allocation13 + $0x20] sm:$0xff]  }
 0x4a6   : > { %v3861_v46 = vpop.eup %3860  ;;  %v4950_v51 = vadd.f32 %v1921_v41, %v1901_v11  ;;  %vm1988_vm2 = vcmp.ge.f32.partialorder %v4945_v4, 0.0 }
 0x4a7   : > { %v3467_v18 = vpop.f32.mrf.mxu1  ;;  %v1991_v45 = vmul.f32 %v3861_v46, %v3853_v7  ;;  %3866 = vpow2.f32 %v1954_v52  ;;  %v1956_v49 = vmul.f32 1.442695, %v1945_v15  ;;  %v1998_v19 = vsel %vm1982_vm10, %v3859_v5, %v1990_v12  ;;  %v4988_v12 = vld [vmem:[#allocation13 + $0x18] sm:$0xff]  }
 0x4a8   : > { %v3863_v3 = vpop.eup %3862  ;;  %v1948_v20 = vsub.f32 0.0, %v1940_v16  ;;  %v1941_v22 = vand.u32 2147483647, %v4950_v51  ;;  %v2006_v7 = vmul.f32 %v1998_v19, %v1685_v23  ;;  %v1676_v16 = vrot.slane %v4939_v47, %v4696_v26 }
 0x4a9   : > { %v1994_v21 = vmul.f32 %v3863_v3, %v3855_v59  ;;  %3868 = vpow2.f32 %v1956_v49  ;;  %v1999_v38 = vsel %vm1983_vm11, %v3861_v46, %v1991_v45  ;;  %v1680_v46 = vrot.slane %v4939_v47, %v4698_v29  ;;  %v4996_v45 = vld [vmem:[#allocation13 + $0x10] sm:$0xff]  }
 0x4aa   : > { %v1962_v9 = vmul.f32 1.442695, %v1948_v20  ;;  %v1949_v25 = vsub.f32 0.0, %v1941_v22  ;;  %v3865_v27 = vpop.eup %3864  ;;  %v2007_v59 = vmul.f32 %v1999_v38, %v1686_v33  ;;  %v1687_v20 = vadd.f32 %v1676_v16, %v4907_v53 }
 0x4ab   : > { %v2002_v31 = vsel %vm1986_vm12, %v3863_v3, %v1994_v21  ;;  %v1995_v37 = vmul.f32 %v3865_v27, %v3857_v28  ;;  %v4969_v28 = vld [vmem:[#allocation13 + $0x38] sm:$0xff]   ;;  %v1691_v22 = vadd.f32 %v1676_v16, %v4911_v58  ;;  %v1688_v47 = vadd.f32 %v1680_v46, %v4909_v57 }
 0x4ac   : > { %v4960_v32 = vmul.f32 %v2002_v31, %v1689_v24  ;;  %3870 = vpow2.f32 %v1962_v9  ;;  %v1964_v41 = vmul.f32 1.442695, %v1949_v25  ;;  %v1692_v9 = vadd.f32 %v1680_v46, %v4913_v61  ;;  %v3809_v61 = vld [vmem:[#allocation13] sm:$0xff]  }
 0x4ad   : > { %v2003_v14 = vsel %vm1987_vm13, %v3865_v27, %v1995_v37  ;;  %vm1989_vm3 = vcmp.ge.f32.partialorder %v4950_v51, 0.0 }
 0x4ae   : > { %3872 = vpow2.f32 %v1964_v41  ;;  %v2018_v34 = vpack.c.bf16 %v4960_v32, %v2006_v7  ;;  %v4966_v13 = vmul.f32 %v2003_v14, %v1690_v40 }
 0x4b0   : > { %v2019_v36 = vpack.c.bf16 %v4966_v13, %v2007_v59 }
 0x4b2   : > { %2070 = vmatprep.subr.bf16.mxu0 %v2019_v36 }
 0x4b3   : > { %2071 = vmatpush1.bf16.msra.mxu0 %v2018_v34  ;;  %v3810_v34 = vld [vmem:[#allocation14 + $0x38] sm:$0xff]  }
 0x4b4   : > { %v3867_v44 = vpop.eup %3866  ;;  %3468 = vmatprep.subr.bf16.mxu0 %v4236_v6 }
 0x4b5   : > { %v1968_v50 = vadd.f32 1.0, %v3867_v44 }
 0x4b6   : > { %v3869_v39 = vpop.eup %3868  ;;  %2903 = vmatmul.mubr.msk.bf16.vlgmr.msra.gmra.mxu0 %vm668_vm0, %v3898_v43 }
 0x4b7   : > { %3874 = vrcp.f32 %v1968_v50  ;;  %v1969_v48 = vadd.f32 1.0, %v3869_v39  ;;  %3469 = vmatpush3.bf16.msra.mxu0 %v4969_v28  ;;  %3484 = vmatprep.mubr.msk.bf16.mxu0 %vm4237_vm1, %v4236_v6  ;;  %v3812_v50 = vld [vmem:[#allocation14 + $0x28] sm:$0xff]  }
 0x4b8   : > { %3470 = vmatprep.subr.bf16.mxu0 %v4236_v6 }
 0x4b9   : > { %v3871_v60 = vpop.eup %3870  ;;  %3876 = vrcp.f32 %v1969_v48  ;;  %v3814_v48 = vld [vmem:[#allocation14 + $0x18] sm:$0xff]  }
 0x4ba   : > { %v1972_v62 = vadd.f32 1.0, %v3871_v60 }
 0x4bb   : > { %v3873_v2 = vpop.eup %3872  ;;  %3471 = vmatpush3.bf16.msra.mxu0 %v4974_v0 }
 0x4bc   : > { %3878 = vrcp.f32 %v1972_v62  ;;  %v1973_v5 = vadd.f32 1.0, %v3873_v2  ;;  %3472 = vmatprep.subr.bf16.mxu0 %v4236_v6 }
 0x4be   : > { %3880 = vrcp.f32 %v1973_v5 }
 0x4bf   : > { %3473 = vmatpush3.bf16.msra.mxu0 %v4980_v8 }
 0x4c0   : > { %3474 = vmatprep.subr.bf16.mxu0 %v4236_v6 }
 0x4c3   : > { %3475 = vmatpush3.bf16.msra.mxu0 %v4984_v10 }
 0x4c4   : > { %v3875_v11 = vpop.eup %3874  ;;  %3476 = vmatprep.subr.bf16.mxu0 %v4236_v6 }
 0x4c5   : > { %v1992_v15 = vmul.f32 %v3875_v11, %v3867_v44 }
 0x4c6   : > { %v3877_v52 = vpop.eup %3876 }
 0x4c7   : > { %v1993_v18 = vmul.f32 %v3877_v52, %v3869_v39  ;;  %3477 = vmatpush3.bf16.msra.mxu0 %v4988_v12  ;;  %v2000_v3 = vsel %vm1984_vm14, %v3875_v11, %v1992_v15  ;;  %v3813_v39 = vld [vmem:[#allocation14 + $0x20] sm:$0xff]  }
 0x4c8   : > { %3478 = vmatprep.subr.bf16.mxu0 %v4236_v6  ;;  %v2008_v25 = vmul.f32 %v2000_v3, %v1687_v20 }
 0x4c9   : > { %v3879_v49 = vpop.eup %3878  ;;  %v2001_v23 = vsel %vm1985_vm15, %v3877_v52, %v1993_v18 }
 0x4ca   : > { %v1996_v1 = vmul.f32 %v3879_v49, %v3871_v60  ;;  %v2009_v58 = vmul.f32 %v2001_v23, %v1688_v47  ;;  %v3817_v60 = vld [vmem:[#allocation14] sm:$0xff]  }
 0x4cb   : > { %v3881_v19 = vpop.eup %3880  ;;  %3479 = vmatpush3.bf16.msra.mxu0 %v4996_v45 }
 0x4cc   : > { %v2004_v24 = vsel %vm1988_vm2, %v3879_v49, %v1996_v1  ;;  %v1997_v21 = vmul.f32 %v3881_v19, %v3873_v2  ;;  %3480 = vmatprep.subr.bf16.mxu0 %v4236_v6  ;;  %v2055_v1 = vld [vmem:[#allocation16] sm:$0xf] }
 0x4cd   : > { %v5009_v27 = vmul.f32 %v2004_v24, %v1691_v22  ;;  %v2591_v20 = vrot.slane %v2055_v1, %v4678_v54  ;;  %v2595_v23 = vrot.slane %v2055_v1, %v4680_v55 }
 0x4ce   : > { %v2005_v53 = vsel %vm1989_vm3, %v3881_v19, %v1997_v21 }
 0x4cf   : > { %v5013_v56 = vmul.f32 %v2005_v53, %v1692_v9  ;;  %v2020_v57 = vpack.c.bf16 %v5009_v27, %v2008_v25  ;;  %3481 = vmatpush3.bf16.msra.mxu0 %v5006_v35 }
 0x4d0   : > { %3482 = vmatprep.subr.bf16.mxu0 %v4236_v6 }
 0x4d1   : > { %v2021_v4 = vpack.c.bf16 %v5013_v56, %v2009_v58 }
 0x4d3   : > { %2113 = vmatprep.subr.bf16.mxu1 %v2021_v4  ;;  %3483 = vmatpush3.bf16.msra.mxu0 %v3809_v61 }
 0x4d4   : > { %2114 = vmatpush1.bf16.msra.mxu1 %v2020_v57  ;;  %3508 = vmatprep.subr.bf16.mxu0 %v4236_v6 }
 0x4d5   : > { %3488 = vmatprep.subr.bf16.mxu1 %v4236_v6 }
 0x4d7   : > { %2904 = vmatmul.mubr.msk.bf16.vlgmr.msra.gmra.mxu1 %vm668_vm0, %v3898_v43  ;;  %v3815_v43 = vld [vmem:[#allocation14 + $0x10] sm:$0xff]  }
 0x4d8   : > { %3489 = vmatpush3.bf16.msra.mxu1 %v4969_v28  ;;  %3504 = vmatprep.mubr.msk.bf16.mxu1 %vm4237_vm1, %v4236_v6 }
 0x4d9   : > { %3490 = vmatprep.subr.bf16.mxu1 %v4236_v6 }
 0x4dc   : > { %3491 = vmatpush3.bf16.msra.mxu1 %v4974_v0 }
 0x4dd   : > { %3492 = vmatprep.subr.bf16.mxu1 %v4236_v6 }
 0x4e0   : > { %3493 = vmatpush3.bf16.msra.mxu1 %v4980_v8 }
 0x4e1   : > { %3494 = vmatprep.subr.bf16.mxu1 %v4236_v6 }
 0x4e4   : > { %3495 = vmatpush3.bf16.msra.mxu1 %v4984_v10 }
 0x4e5   : > { %3496 = vmatprep.subr.bf16.mxu1 %v4236_v6 }
 0x4e8   : > { %3497 = vmatpush3.bf16.msra.mxu1 %v4988_v12 }
 0x4e9   : > { %3498 = vmatprep.subr.bf16.mxu1 %v4236_v6 }
 0x4ec   : > { %3499 = vmatpush3.bf16.msra.mxu1 %v4996_v45 }
 0x4ed   : > { %3500 = vmatprep.subr.bf16.mxu1 %v4236_v6 }
 0x4f0   : > { %3501 = vmatpush3.bf16.msra.mxu1 %v5006_v35 }
 0x4f1   : > { %3502 = vmatprep.subr.bf16.mxu1 %v4236_v6 }
 0x4f4   : > { %3503 = vmatpush3.bf16.msra.mxu1 %v3809_v61 }
 0x4f5   : > { %3528 = vmatprep.subr.bf16.mxu1 %v4236_v6 }
 0x576   : > { %v2090_v51 = vpop.f32.mrf.mxu0 }
 0x578   : > { %v2092_v7 = vpop.f32.mrf.mxu0 }
 0x57a   : > { %v2094_v38 = vpop.f32.mrf.mxu0 }
 0x57b   : > { %v5039_v31 = vpack.c.bf16 %v2094_v38, %v2090_v51 }
 0x57c   : > { %v2096_v37 = vpop.f32.mrf.mxu0 }
 0x57d   : > { %v5041_v41 = vpack.c.bf16 %v2096_v37, %v2092_v7  ;;  %3485 = vmatmul.mubr.bf16.vlgmr.msra.gmra.mxu0 %v5039_v31 }
 0x57e   : > { %3509 = vmatpush3.bf16.msra.mxu0 %v4969_v28  ;;  %3524 = vmatprep.mubr.msk.bf16.mxu0 %vm4237_vm1, %v4236_v6 }
 0x57f   : > { %3505 = vmatmul.mubr.bf16.vlgmr.msra.gmra.mxu1 %v5041_v41  ;;  %3510 = vmatprep.subr.bf16.mxu0 %v4236_v6 }
 0x580   : > { %3529 = vmatpush3.bf16.msra.mxu1 %v4969_v28  ;;  %3544 = vmatprep.mubr.msk.bf16.mxu1 %vm4237_vm1, %v4236_v6  ;;  %v3811_v28 = vld [vmem:[#allocation14 + $0x30] sm:$0xff]  }
 0x581   : > { %3530 = vmatprep.subr.bf16.mxu1 %v4236_v6 }
 0x582   : > { %3511 = vmatpush3.bf16.msra.mxu0 %v4974_v0 }
 0x583   : > { %3512 = vmatprep.subr.bf16.mxu0 %v4236_v6 }
 0x584   : > { %3531 = vmatpush3.bf16.msra.mxu1 %v4974_v0  ;;  %v3816_v0 = vld [vmem:[#allocation14 + $0x8] sm:$0xff]  }
 0x585   : > { %3532 = vmatprep.subr.bf16.mxu1 %v4236_v6 }
 0x586   : > { %3513 = vmatpush3.bf16.msra.mxu0 %v4980_v8 }
 0x587   : > { %3514 = vmatprep.subr.bf16.mxu0 %v4236_v6 }
 0x588   : > { %3533 = vmatpush3.bf16.msra.mxu1 %v4980_v8 }
 0x589   : > { %3534 = vmatprep.subr.bf16.mxu1 %v4236_v6 }
 0x58a   : > { %3515 = vmatpush3.bf16.msra.mxu0 %v4984_v10 }
 0x58b   : > { %3516 = vmatprep.subr.bf16.mxu0 %v4236_v6 }
 0x58c   : > { %3535 = vmatpush3.bf16.msra.mxu1 %v4984_v10 }
 0x58d   : > { %3536 = vmatprep.subr.bf16.mxu1 %v4236_v6 }
 0x58e   : > { %3517 = vmatpush3.bf16.msra.mxu0 %v4988_v12 }
 0x58f   : > { %3518 = vmatprep.subr.bf16.mxu0 %v4236_v6 }
 0x590   : > { %3537 = vmatpush3.bf16.msra.mxu1 %v4988_v12 }
 0x591   : > { %3538 = vmatprep.subr.bf16.mxu1 %v4236_v6 }
 0x592   : > { %3519 = vmatpush3.bf16.msra.mxu0 %v4996_v45 }
 0x593   : > { %3520 = vmatprep.subr.bf16.mxu0 %v4236_v6 }
 0x594   : > { %3539 = vmatpush3.bf16.msra.mxu1 %v4996_v45 }
 0x595   : > { %3540 = vmatprep.subr.bf16.mxu1 %v4236_v6 }
 0x596   : > { %3521 = vmatpush3.bf16.msra.mxu0 %v5006_v35 }
 0x597   : > { %v2133_v33 = vpop.f32.mrf.mxu1  ;;  %3522 = vmatprep.subr.bf16.mxu0 %v4236_v6 }
 0x598   : > { %3541 = vmatpush3.bf16.msra.mxu1 %v5006_v35 }
 0x599   : > { %v2135_v40 = vpop.f32.mrf.mxu1  ;;  %3542 = vmatprep.subr.bf16.mxu1 %v4236_v6 }
 0x59a   : > { %3523 = vmatpush3.bf16.msra.mxu0 %v3809_v61 }
 0x59b   : > { %v2137_v14 = vpop.f32.mrf.mxu1  ;;  %3548 = vmatprep.subr.bf16.mxu0 %v4236_v6 }
 0x59c   : > { %v5077_v59 = vpack.c.bf16 %v2137_v14, %v2133_v33  ;;  %3543 = vmatpush3.bf16.msra.mxu1 %v3809_v61  ;;  %v2599_v14 = vrot.slane %v2055_v1, %v4696_v26 }
 0x59d   : > { %v2139_v36 = vpop.f32.mrf.mxu1  ;;  %3568 = vmatprep.subr.bf16.mxu1 %v4236_v6 }
 0x59e   : > { %v5080_v44 = vpack.c.bf16 %v2139_v36, %v2135_v40  ;;  %3525 = vmatmul.mubr.bf16.vlgmr.msra.gmra.mxu0 %v5077_v59  ;;  %v2603_v36 = vrot.slane %v2055_v1, %v4698_v29 }
 0x59f   : > { %3549 = vmatpush3.bf16.msra.mxu0 %v3810_v34  ;;  %3564 = vmatprep.mubr.msk.bf16.mxu0 %vm4237_vm1, %v4236_v6 }
 0x5a0   : > { %3545 = vmatmul.mubr.bf16.vlgmr.msra.gmra.mxu1 %v5080_v44  ;;  %3550 = vmatprep.subr.bf16.mxu0 %v4236_v6 }
 0x5a1   : > { %3569 = vmatpush3.bf16.msra.mxu1 %v3810_v34  ;;  %3584 = vmatprep.mubr.msk.bf16.mxu1 %vm4237_vm1, %v4236_v6 }
 0x5a2   : > { %3570 = vmatprep.subr.bf16.mxu1 %v4236_v6 }
 0x5a3   : > { %3551 = vmatpush3.bf16.msra.mxu0 %v3811_v28 }
 0x5a4   : > { %3552 = vmatprep.subr.bf16.mxu0 %v4236_v6 }
 0x5a5   : > { %3571 = vmatpush3.bf16.msra.mxu1 %v3811_v28 }
 0x5a6   : > { %3572 = vmatprep.subr.bf16.mxu1 %v4236_v6 }
 0x5a7   : > { %3553 = vmatpush3.bf16.msra.mxu0 %v3812_v50 }
 0x5a8   : > { %3554 = vmatprep.subr.bf16.mxu0 %v4236_v6 }
 0x5a9   : > { %3573 = vmatpush3.bf16.msra.mxu1 %v3812_v50 }
 0x5aa   : > { %3574 = vmatprep.subr.bf16.mxu1 %v4236_v6 }
 0x5ab   : > { %3555 = vmatpush3.bf16.msra.mxu0 %v3813_v39 }
 0x5ac   : > { %3556 = vmatprep.subr.bf16.mxu0 %v4236_v6 }
 0x5ad   : > { %3575 = vmatpush3.bf16.msra.mxu1 %v3813_v39 }
 0x5ae   : > { %3576 = vmatprep.subr.bf16.mxu1 %v4236_v6 }
 0x5af   : > { %3557 = vmatpush3.bf16.msra.mxu0 %v3814_v48 }
 0x5b0   : > { %3558 = vmatprep.subr.bf16.mxu0 %v4236_v6 }
 0x5b1   : > { %3577 = vmatpush3.bf16.msra.mxu1 %v3814_v48 }
 0x5b2   : > { %3578 = vmatprep.subr.bf16.mxu1 %v4236_v6 }
 0x5b3   : > { %3559 = vmatpush3.bf16.msra.mxu0 %v3815_v43 }
 0x5b4   : > { %3560 = vmatprep.subr.bf16.mxu0 %v4236_v6 }
 0x5b5   : > { %3579 = vmatpush3.bf16.msra.mxu1 %v3815_v43 }
 0x5b6   : > { %3580 = vmatprep.subr.bf16.mxu1 %v4236_v6 }
 0x5b7   : > { %3561 = vmatpush3.bf16.msra.mxu0 %v3816_v0 }
 0x5b8   : > { %3562 = vmatprep.subr.bf16.mxu0 %v4236_v6 }
 0x5b9   : > { %3581 = vmatpush3.bf16.msra.mxu1 %v3816_v0 }
 0x5ba   : > { %3582 = vmatprep.subr.bf16.mxu1 %v4236_v6 }
 0x5bb   : > { %3563 = vmatpush3.bf16.msra.mxu0 %v3817_v60 }
 0x5bc   : > { %3588 = vmatprep.subr.bf16.mxu0 %v4236_v6 }
 0x5bd   : > { %3583 = vmatpush3.bf16.msra.mxu1 %v3817_v60 }
 0x5be   : > { %3565 = vmatmul.mubr.bf16.vlgmr.msra.gmra.mxu0 %v5039_v31  ;;  %3608 = vmatprep.subr.bf16.mxu1 %v4236_v6 }
 0x5bf   : > { %3589 = vmatpush3.bf16.msra.mxu0 %v3810_v34  ;;  %3604 = vmatprep.mubr.msk.bf16.mxu0 %vm4237_vm1, %v4236_v6 }
 0x5c0   : > { %3585 = vmatmul.mubr.bf16.vlgmr.msra.gmra.mxu1 %v5041_v41  ;;  %3590 = vmatprep.subr.bf16.mxu0 %v4236_v6 }
 0x5c1   : > { %3609 = vmatpush3.bf16.msra.mxu1 %v3810_v34  ;;  %3624 = vmatprep.mubr.msk.bf16.mxu1 %vm4237_vm1, %v4236_v6 }
 0x5c2   : > { %3610 = vmatprep.subr.bf16.mxu1 %v4236_v6 }
 0x5c3   : > { %3591 = vmatpush3.bf16.msra.mxu0 %v3811_v28 }
 0x5c4   : > { %3592 = vmatprep.subr.bf16.mxu0 %v4236_v6 }
 0x5c5   : > { %3611 = vmatpush3.bf16.msra.mxu1 %v3811_v28 }
 0x5c6   : > { %3612 = vmatprep.subr.bf16.mxu1 %v4236_v6 }
 0x5c7   : > { %3593 = vmatpush3.bf16.msra.mxu0 %v3812_v50 }
 0x5c8   : > { %3594 = vmatprep.subr.bf16.mxu0 %v4236_v6 }
 0x5c9   : > { %3613 = vmatpush3.bf16.msra.mxu1 %v3812_v50  ;;  %v2038_v50 = vld [vmem:[%s5210_s11] sm:$0xf] }
 0x5ca   : > { %3614 = vmatprep.subr.bf16.mxu1 %v4236_v6 }
 0x5cb   : > { %3595 = vmatpush3.bf16.msra.mxu0 %v3813_v39 }
 0x5cc   : > { %3596 = vmatprep.subr.bf16.mxu0 %v4236_v6 }
 0x5cd   : > { %3615 = vmatpush3.bf16.msra.mxu1 %v3813_v39 }
 0x5ce   : > { %3616 = vmatprep.subr.bf16.mxu1 %v4236_v6 }
 0x5cf   : > { %3597 = vmatpush3.bf16.msra.mxu0 %v3814_v48 }
 0x5d0   : > { %3598 = vmatprep.subr.bf16.mxu0 %v4236_v6 }
 0x5d1   : > { %3617 = vmatpush3.bf16.msra.mxu1 %v3814_v48 }
 0x5d2   : > { %3618 = vmatprep.subr.bf16.mxu1 %v4236_v6 }
 0x5d3   : > { %3599 = vmatpush3.bf16.msra.mxu0 %v3815_v43 }
 0x5d4   : > { %3600 = vmatprep.subr.bf16.mxu0 %v4236_v6 }
 0x5d5   : > { %3619 = vmatpush3.bf16.msra.mxu1 %v3815_v43 }
 0x5d6   : > { %3620 = vmatprep.subr.bf16.mxu1 %v4236_v6 }
 0x5d7   : > { %3601 = vmatpush3.bf16.msra.mxu0 %v3816_v0 }
 0x5d8   : > { %3602 = vmatprep.subr.bf16.mxu0 %v4236_v6 }
 0x5d9   : > { %3621 = vmatpush3.bf16.msra.mxu1 %v3816_v0 }
 0x5da   : > { %3622 = vmatprep.subr.bf16.mxu1 %v4236_v6 }
 0x5db   : > { %3603 = vmatpush3.bf16.msra.mxu0 %v3817_v60 }
 0x5dd   : > { %3623 = vmatpush3.bf16.msra.mxu1 %v3817_v60 }
 0x5de   : > { %3605 = vmatmul.mubr.bf16.vlgmr.msra.gmra.mxu0 %v5077_v59 }
 0x5e0   : > { %3625 = vmatmul.mubr.bf16.vlgmr.msra.gmra.mxu1 %v5080_v44 }
 0x63d   : > { %v2228_v62 = vpop.f32.mrf.mxu0 }
 0x63e   : > { %v2358_v62 = vrot.slane %v2038_v50, %v4678_v54  ;;  %v2014_v54 = vmax.f32 %v4731_v30, %v4960_v32 }
 0x63f   : > { %v3486_v2 = vpop.f32.mrf.mxu0  ;;  %v2268_v5 = vpop.f32.mrf.mxu1 }
 0x641   : > { %v5127_v8 = vpop.f32.mrf.mxu0  ;;  %v3506_v10 = vpop.f32.mrf.mxu1 }
 0x643   : > { %v3487_v11 = vpop.f32.mrf.mxu0  ;;  %v5129_v12 = vpop.f32.mrf.mxu1 }
 0x645   : > { %v3507_v52 = vpop.f32.mrf.mxu1 }
 0x646   : > { %v2362_v52 = vrot.slane %v2038_v50, %v4680_v55 }
 0x65e   : > { %v2308_v15 = vpop.f32.mrf.mxu0 }
 0x660   : > { %v3526_v16 = vpop.f32.mrf.mxu0  ;;  %v2348_v46 = vpop.f32.mrf.mxu1 }
 0x662   : > { %v5131_v6 = vpop.f32.mrf.mxu0  ;;  %v3546_v18 = vpop.f32.mrf.mxu1 }
 0x664   : > { %v3527_v45 = vpop.f32.mrf.mxu0  ;;  %v5133_v49 = vpop.f32.mrf.mxu1 }
 0x665   : > { %v2375_v45 = vadd.f32 %v2358_v62, %v5127_v8 }
 0x666   : > { %v3547_v3 = vpop.f32.mrf.mxu1 }
 0x67e   : > { %v2461_v19 = vpop.f32.mrf.mxu0 }
 0x680   : > { %v3566_v22 = vpop.f32.mrf.mxu0  ;;  %v2501_v47 = vpop.f32.mrf.mxu1 }
 0x681   : > { %v2015_v47 = vmax.f32 %v4733_v63, %v4966_v13  ;;  %v2370_v63 = vrot.slane %v2038_v50, %v4698_v29  ;;  %v2017_v29 = vmax.f32 %v4782_v17, %v5013_v56 }
 0x682   : > { %v2463_v24 = vpop.f32.mrf.mxu0  ;;  %v3586_v21 = vpop.f32.mrf.mxu1 }
 0x683   : > { %v2608_v35 = vadd.f32 %v2591_v20, %v2463_v24  ;;  %v2376_v20 = vadd.f32 %v2362_v52, %v5129_v12 }
 0x684   : > { %v3567_v9 = vpop.f32.mrf.mxu0  ;;  %v2503_v25 = vpop.f32.mrf.mxu1 }
 0x685   : > { %v2612_v53 = vand.u32 2147483647, %v2608_v35  ;;  %v2609_v58 = vadd.f32 %v2595_v23, %v2503_v25  ;;  %vm2636_vm0 = vcmp.ge.f32.partialorder %v2608_v35, 0.0  ;;  %v2366_v9 = vrot.slane %v2038_v50, %v4696_v26 }
 0x686   : > { %v3587_v57 = vpop.f32.mrf.mxu1 }
 0x687   : > { %v2616_v4 = vsub.f32 0.0, %v2612_v53  ;;  %v2613_v61 = vand.u32 2147483647, %v2609_v58  ;;  %vm2637_vm1 = vcmp.ge.f32.partialorder %v2609_v58, 0.0  ;;  %v2377_v58 = vadd.f32 %v2366_v9, %v5131_v6 }
 0x689   : > { %v2620_v51 = vmul.f32 1.442695, %v2616_v4  ;;  %v2617_v7 = vsub.f32 0.0, %v2613_v61  ;;  %v2016_v61 = vmax.f32 %v4780_v42, %v5009_v27 }
 0x68b   : > { %3882 = vpow2.f32 %v2620_v51  ;;  %v2622_v38 = vmul.f32 1.442695, %v2617_v7  ;;  %v2378_v51 = vadd.f32 %v2370_v63, %v5133_v49 }
 0x68d   : > { %3884 = vpow2.f32 %v2622_v38 }
 0x698   : > { %v3883_v31 = vpop.eup %3882 }
 0x699   : > { %v2628_v37 = vadd.f32 1.0, %v3883_v31 }
 0x69a   : > { %v3885_v41 = vpop.eup %3884 }
 0x69b   : > { %3886 = vrcp.f32 %v2628_v37  ;;  %v2629_v33 = vadd.f32 1.0, %v3885_v41 }
 0x69d   : > { %3888 = vrcp.f32 %v2629_v33 }
 0x69e   : > { %v2541_v40 = vpop.f32.mrf.mxu0 }
 0x6a0   : > { %v3606_v34 = vpop.f32.mrf.mxu0  ;;  %v2581_v59 = vpop.f32.mrf.mxu1 }
 0x6a2   : > { %v2543_v44 = vpop.f32.mrf.mxu0  ;;  %v3626_v28 = vpop.f32.mrf.mxu1 }
 0x6a3   : > { %v2610_v39 = vadd.f32 %v2599_v14, %v2543_v44 }
 0x6a4   : > { %v3607_v48 = vpop.f32.mrf.mxu0  ;;  %v2583_v43 = vpop.f32.mrf.mxu1 }
 0x6a5   : > { %v2614_v0 = vand.u32 2147483647, %v2610_v39  ;;  %v2611_v60 = vadd.f32 %v2603_v36, %v2583_v43  ;;  %vm2638_vm4 = vcmp.ge.f32.partialorder %v2610_v39, 0.0 }
 0x6a6   : > { %v3627_v2 = vpop.f32.mrf.mxu1 }
 0x6a7   : > { %v2618_v5 = vsub.f32 0.0, %v2614_v0  ;;  %v2615_v10 = vand.u32 2147483647, %v2611_v60  ;;  %vm2639_vm5 = vcmp.ge.f32.partialorder %v2611_v60, 0.0 }
 0x6a8   : > { %v3887_v11 = vpop.eup %3886 }
 0x6a9   : > { %v2640_v15 = vmul.f32 %v3887_v11, %v3883_v31  ;;  %v2624_v16 = vmul.f32 1.442695, %v2618_v5  ;;  %v2619_v46 = vsub.f32 0.0, %v2615_v10 }
 0x6aa   : > { %v3889_v18 = vpop.eup %3888 }
 0x6ab   : > { %v2644_v3 = vsel %vm2636_vm0, %v3887_v11, %v2640_v15  ;;  %v2641_v1 = vmul.f32 %v3889_v18, %v3885_v41  ;;  %3890 = vpow2.f32 %v2624_v16  ;;  %v2626_v19 = vmul.f32 1.442695, %v2619_v46 }
 0x6ac   : > { %v2648_v22 = vmul.f32 %v2644_v3, %v2375_v45 }
 0x6ad   : > { %v2645_v55 = vsel %vm2637_vm1, %v3889_v18, %v2641_v1  ;;  %3892 = vpow2.f32 %v2626_v19 }
 0x6ae   : > { %v2652_v23 = vmax.f32 %v2014_v54, %v2648_v22  ;;  %v2649_v24 = vmul.f32 %v2645_v55, %v2376_v20 }
 0x6b0   : > { %v2653_v8 = vmax.f32 %v2015_v47, %v2649_v24 }
 0x6b2   : > { %v2929_v21 = vpack.c.bf16 %v2653_v8, %v2652_v23 }
 0x6b4   : > { %2672 = vst [vmem:[%s5151_s19] sm:$0xff] %v2929_v21 }
 0x6b8   : > { %v3891_v35 = vpop.eup %3890 }
 0x6b9   : > { %v2630_v30 = vadd.f32 1.0, %v3891_v35 }
 0x6ba   : > { %v3893_v32 = vpop.eup %3892 }
 0x6bb   : > { %3894 = vrcp.f32 %v2630_v30  ;;  %v2631_v12 = vadd.f32 1.0, %v3893_v32 }
 0x6bd   : > { %3896 = vrcp.f32 %v2631_v12 }
 0x6c8   : > { %v3895_v25 = vpop.eup %3894 }
 0x6c9   : > { %v2642_v13 = vmul.f32 %v3895_v25, %v3891_v35 }
 0x6ca   : > { %v3897_v53 = vpop.eup %3896 }
 0x6cb   : > { %v2646_v57 = vsel %vm2638_vm4, %v3895_v25, %v2642_v13  ;;  %v2643_v4 = vmul.f32 %v3897_v53, %v3893_v32 }
 0x6cc   : > { %v2650_v26 = vmul.f32 %v2646_v57, %v2377_v58 }
 0x6cd   : > { %v2647_v7 = vsel %vm2639_vm5, %v3897_v53, %v2643_v4 }
 0x6ce   : > { %v2654_v38 = vmax.f32 %v2016_v61, %v2650_v26  ;;  %v2651_v31 = vmul.f32 %v2647_v7, %v2378_v51 }
 0x6d0   : > { %v2655_v6 = vmax.f32 %v2017_v29, %v2651_v31 }
 0x6d2   : > { %v2930_v37 = vpack.c.bf16 %v2655_v6, %v2654_v38 }
 0x6d4   : > { %2673 = vst [vmem:[%s5151_s19 + $0x8] sm:$0xff] %v2930_v37 }
 0x6d5   : > { %4148 = shalt.err (!%p4145_p8)
}
 0x6d6   : > { %s4149_s17 = scalar_lea.hbm %s2687_s4, 256  ;;  %s4153_s12 = scalar_lea.hbm %s5254_s18, 512 }
 0x6d7   : > { %p4150_p7 = scmp.ne.s32.totalorder %s2687_s4, %s4149_s17  ;;  %p4154_p0 = scmp.lt.s32.totalorder %s2687_s4, %s5254_s18 }
 0x6d8   : > { %p4155_p2 = scmp.lt.s32.totalorder %s4153_s12, %s4149_s17 }
 0x6d9   : > { %p4151_p11 = pnand %p4150_p7, %p5255_p12 }
 0x6da   : > { %p4156_p5 = por %p4155_p2, %p4154_p0 }
 0x6db   : > { %p4152_p13 = pneg %p4151_p11 }
 0x6dd   : > { %p4157_p9 = pnand %p4156_p5, %p4152_p13 }
 0x6df   : > { %4160 = shalt.err (!%p4157_p9)
}
 0x6e0   : > { %3662 = dma.vmem_to_hbm [thread:$0]  (%p5255_p12), %s2690_s8, 256, %s2687_s4, %s2675_s25  }
 0x6e1 PF: > { %s2701_s0 = sand.u32 1, %s4207_s29   ;;  %p5256_p1 = scmp.ne.s32.totalorder %s5240_s20, 0 }
 0x6e2   : > { %p5257_p4 = scmp.ge.s32.totalorder %s4219_s16, 2  ;;  %s2702_s6 = scalar_lea.sflag [#allocation4], %s2701_s0 }
 0x6e4   : > { %p3694_p10 = pnand %p5257_p4, %p5256_p1 }
 0x6e6   : > { %p3695_p3 = pneg %p3694_p10 }
 0x6e8   : > { %4202 = dma.done.wait (%p3695_p3), %s2702_s6, 256  }
 0x6e9   : > { %4204 = vsyncadd (%p3695_p3), %s2702_s6, 4294967040  ;;  %p31_p6 = scmp.ge.s32.totalorder %s4452_s23, 4   ;;  %s5258_s29 = smov %s4211_s30 }
 0x6ea   : > { %s5259_s30 = smov %s4215_s15  ;;  %s5260_s15 = smov %s4463_s14 }
 0x6eb   : > { %s5261_s16 = smov %s4452_s23  ;;  %33 = sbr.rel (!%p31_p6) target bundleno = 18 (0x12), region = 154 }
 0x6f0   :  { %2707 = vsyncpa [#allocation3], 1 }
 0x6f1   :  { %2709 = vsyncpa [#allocation3 + $0x1], 1 }
 0x6f2   :  { %2710 = vsyncpa [#allocation6], 1 }
 0x6f3   :  { %2712 = vsyncpa [#allocation6 + $0x1], 1 }
 0x6f4   :  { %2713 = vsyncpa [#allocation9], 1 }
 0x6f5   :  { %2714 = vsyncpa [#allocation12], 1 }
 0x6f6   :  { %2715 = vsyncpa [#allocation15], 1 }
 0x6f7   :  { %2716 = vsyncpa [#allocation4], 1 }
 0x6f8   :  { %2718 = vsyncpa [#allocation4 + $0x1], 1 }

</bundles_post_ra>
